<compile_context>
chip_gen: v7x
topology: tpu7x:2x2x1
jax: 0.10.0
libtpu: 0.0.40
codegen_flags: <defaults>
</compile_context>

<pallas_src>
import jax
import jax.numpy as jnp
from jax.experimental import pallas as pl
from jax.experimental.pallas import tpu as pltpu


def _round_up(x, m):
    return (x + m - 1) // m * m


# ---------------------------------------------------------------------------
# Fused kernel: conv1 -> relu -> conv2 -> relu -> conv3 -> relu (one batch/step)
# ---------------------------------------------------------------------------
def _make_disc_kernel(w, hw, hidn, scratch_rows):
    """w: conv1 output width; hw: conv1 output H*W; hidn: hidden channels."""

    def kernel(x1_ref, w1_ref, b1_ref, w2_ref, b2_ref, w3_ref, b3_ref,
               o_ref, y1_ref):
        # ---- conv1: relu(x_patches @ w1 + b1) -> (HW, hidn) ----------------
        h1 = jnp.dot(x1_ref[0], w1_ref[...], preferred_element_type=jnp.float32)
        h1 = jnp.maximum(h1 + b1_ref[...], 0.0)

        # Stash conv1 activation in VMEM; zero the tail rows so bottom-edge taps
        # (whose outputs are discarded by the wrapper slice) read zeros rather
        # than stale VMEM.
        y1_ref[pl.ds(0, hw), :] = h1
        y1_ref[pl.ds(hw, scratch_rows - hw), :] = jnp.zeros(
            (scratch_rows - hw, hidn), jnp.float32)

        # ---- conv2 (4x4, valid): 16 accumulating taps, static row offsets ---
        # Output position p = r*w + c reads input row p + di*w + dj, which equals
        # flat(r+di, c+dj) for every kept position (r <= H-4, c <= W-4).  Wrapped
        # or overflowed reads only affect positions the wrapper slices away.
        acc = jnp.zeros((hw, hidn), jnp.float32)
        for di in range(4):
            for dj in range(4):
                tap = di * 4 + dj
                acc = acc + jnp.dot(y1_ref[pl.ds(di * w + dj, hw), :],
                                    w2_ref[tap],
                                    preferred_element_type=jnp.float32)
        h2 = jnp.maximum(acc + b2_ref[...], 0.0)

        # ---- conv3 (1x1): relu(h2 @ w3 + b3) --------------------------------
        y3 = jnp.dot(h2, w3_ref[...], preferred_element_type=jnp.float32)
        o_ref[0] = jnp.maximum(y3 + b3_ref[...], 0.0).astype(o_ref.dtype)

    return kernel


# ---------------------------------------------------------------------------
# Wrapper: small XLA glue (conv1 patches + weight prep) + one pallas_call
# ---------------------------------------------------------------------------
def disc_layer_first(x_nchw, params, scales):
    """DiscLayer.forward with first=True.  x: (N, in_ch+1, H, W) -> (N, out_ch, H-3, W-3)."""
    n, cin, h, w = x_nchw.shape
    hidn = params["w1"].shape[0]
    out_ch = params["w3"].shape[0]
    hw = h * w
    ho, wo = h - 3, w - 3                        # conv2 4x4 valid; conv3 1x1

    x = jnp.transpose(x_nchw, (0, 2, 3, 1)).astype(jnp.float32)   # NCHW -> NHWC

    # conv1 patches (3x3, pad 1): tap-major, channel-minor -> (N, H*W, 9*Cin).
    # Only 9 small slices on a 4-channel input (~72 KiB total); ordering matches
    # the weight reshape below exactly.
    xp = jnp.pad(x, ((0, 0), (1, 1), (1, 1), (0, 0)))
    cols = [xp[:, i:i + h, j:j + w, :] for i in range(3) for j in range(3)]
    x_cols = jnp.concatenate(cols, axis=-1).reshape(n, hw, 9 * cin)

    # Weight / bias prep: fold the WS scale into the weights ((s*x)@W == x@(s*W)).
    w1m = (jnp.transpose(params["w1"], (2, 3, 1, 0))
           .reshape(9 * cin, hidn).astype(jnp.float32) * scales[0])       # (36, hidn)
    b1 = params["b1"].astype(jnp.float32).reshape(1, hidn)
    w2t = (jnp.transpose(params["w2"], (2, 3, 1, 0))
           .reshape(16, hidn, hidn).astype(jnp.float32) * scales[1])      # (16, hidn, hidn)
    b2 = params["b2"].astype(jnp.float32).reshape(1, hidn)
    w3m = (params["w3"].reshape(out_ch, hidn).T
           .astype(jnp.float32) * scales[2])                              # (hidn, out_ch)
    b3 = params["b3"].astype(jnp.float32).reshape(1, out_ch)

    # VMEM scratch rows: conv2 taps read up to row (HW-1) + 3*W + 3.
    scratch_rows = hw + _round_up(3 * w + 3, 8)

    kernel = _make_disc_kernel(w, hw, hidn, scratch_rows)
    out = pl.pallas_call(
        kernel,
        out_shape=jax.ShapeDtypeStruct((n, hw, out_ch), jnp.float32),
        grid_spec=pltpu.PrefetchScalarGridSpec(
            num_scalar_prefetch=0,
            grid=(n,),
            in_specs=[
                pl.BlockSpec((1, hw, 9 * cin), lambda b: (b, 0, 0)),  # per-batch patches
                pl.BlockSpec((9 * cin, hidn), lambda b: (0, 0)),      # VMEM-resident weights
                pl.BlockSpec((1, hidn), lambda b: (0, 0)),
                pl.BlockSpec((16, hidn, hidn), lambda b: (0, 0, 0)),
                pl.BlockSpec((1, hidn), lambda b: (0, 0)),
                pl.BlockSpec((hidn, out_ch), lambda b: (0, 0)),
                pl.BlockSpec((1, out_ch), lambda b: (0, 0)),
            ],
            out_specs=pl.BlockSpec((1, hw, out_ch), lambda b: (b, 0, 0)),
            scratch_shapes=[pltpu.VMEM((scratch_rows, hidn), jnp.float32)],
        ),
        compiler_params=pltpu.CompilerParams(dimension_semantics=("parallel",)),
    )(x_cols, w1m, b1, w2t, b2, w3m, b3)

    y = out.reshape(n, h, w, out_ch)[:, :ho, :wo, :]   # drop invalid edge positions
    return jnp.transpose(y, (0, 3, 1, 2))              # NHWC -> NCHW


# ---------------------------------------------------------------------------
# Pure-JAX reference (lax.conv, HIGHEST precision) for verification
# ---------------------------------------------------------------------------
def disc_layer_first_ref(x_nchw, params, scales):
    def conv(x, wgt, b, pad, scale):
        y = jax.lax.conv_general_dilated(
            x * scale, wgt, window_strides=(1, 1),
            padding=[(pad, pad), (pad, pad)],
            dimension_numbers=("NCHW", "OIHW", "NCHW"),
            precision=jax.lax.Precision.HIGHEST)
        return jax.nn.relu(y + b[None, :, None, None])

    x = conv(x_nchw, params["w1"], params["b1"], 1, scales[0])
    x = conv(x, params["w2"], params["b2"], 0, scales[1])
    x = conv(x, params["w3"], params["b3"], 0, scales[2])
    return x


if __name__ == "__main__":
    in_ch, out_ch, hidn_ch = 3, 8, 32
    N, H, W = 2, 16, 16

    key = jax.random.PRNGKey(0)
    k1, k2, k3, kx = jax.random.split(key, 4)

    # WS init: weights ~ N(0, 1), biases zero.
    params = {
        "w1": jax.random.normal(k1, (hidn_ch, in_ch + 1, 3, 3), jnp.float32),
        "b1": jnp.zeros((hidn_ch,), jnp.float32),
        "w2": jax.random.normal(k2, (hidn_ch, hidn_ch, 4, 4), jnp.float32),
        "b2": jnp.zeros((hidn_ch,), jnp.float32),
        "w3": jax.random.normal(k3, (out_ch, hidn_ch, 1, 1), jnp.float32),
        "b3": jnp.zeros((out_ch,), jnp.float32),
    }
    # WS scale = sqrt(2 / (in_channels * k^2))
    scales = (
        (2.0 / ((in_ch + 1) * 3 * 3)) ** 0.5,
        (2.0 / (hidn_ch * 4 * 4)) ** 0.5,
        (2.0 / (hidn_ch * 1 * 1)) ** 0.5,
    )

    # first=True path: conv1 consumes in_ch + 1 channels.
    x = jax.random.normal(kx, (N, in_ch + 1, H, W), jnp.float32)

    y = disc_layer_first(x, params, scales)
    y = jax.block_until_ready(y)

    y_ref = disc_layer_first_ref(x, params, scales)
    assert y.shape == (N, out_ch, 13, 13), y.shape
    assert jnp.allclose(y, y_ref, rtol=1e-3, atol=1e-3), float(jnp.max(jnp.abs(y - y_ref)))

    print("KERNEL_OK")
</pallas_src>

<mosaic_0001>
module attributes {stable_mosaic.version = 11 : i64} {
  func.func @kernel(%arg0: i32, %arg1: memref<1x256x36xf32, #tpu.memory_space<vmem>>, %arg2: memref<36x32xf32, #tpu.memory_space<vmem>>, %arg3: memref<1x32xf32, #tpu.memory_space<vmem>>, %arg4: memref<16x32x32xf32, #tpu.memory_space<vmem>>, %arg5: memref<1x32xf32, #tpu.memory_space<vmem>>, %arg6: memref<32x8xf32, #tpu.memory_space<vmem>>, %arg7: memref<1x8xf32, #tpu.memory_space<vmem>>, %arg8: memref<1x256x8xf32, #tpu.memory_space<vmem>>, %arg9: memref<312x32xf32, #tpu.memory_space<vmem>>) attributes {dimension_semantics = [#tpu.dimension_semantics<parallel>], iteration_bounds = array<i64: 2>, scalar_prefetch = 0 : i64, scratch_operands = 1 : i64, tpu.core_type = #tpu.core_type<tc>, window_params = [{transform_indices = @transform_0, window_bounds = array<i64: 1, 256, 36>}, {pipeline_mode = #tpu.pipeline_mode<synchronous>, transform_indices = @transform_1, window_bounds = array<i64: 36, 32>}, {pipeline_mode = #tpu.pipeline_mode<synchronous>, transform_indices = @transform_2, window_bounds = array<i64: 1, 32>}, {pipeline_mode = #tpu.pipeline_mode<synchronous>, transform_indices = @transform_3, window_bounds = array<i64: 16, 32, 32>}, {pipeline_mode = #tpu.pipeline_mode<synchronous>, transform_indices = @transform_4, window_bounds = array<i64: 1, 32>}, {pipeline_mode = #tpu.pipeline_mode<synchronous>, transform_indices = @transform_5, window_bounds = array<i64: 32, 8>}, {pipeline_mode = #tpu.pipeline_mode<synchronous>, transform_indices = @transform_6, window_bounds = array<i64: 1, 8>}, {transform_indices = @transform_7, window_bounds = array<i64: 1, 256, 8>}]} {
    %c0 = arith.constant 0 : index
    %c0_0 = arith.constant 0 : index
    %c0_1 = arith.constant 0 : index
    %0 = vector.load %arg1[%c0, %c0_0, %c0_1] : memref<1x256x36xf32, #tpu.memory_space<vmem>>, vector<1x256x36xf32>
    %1 = vector.shape_cast %0 : vector<1x256x36xf32> to vector<256x36xf32>
    %c0_2 = arith.constant 0 : index
    %c0_3 = arith.constant 0 : index
    %2 = vector.load %arg2[%c0_2, %c0_3] : memref<36x32xf32, #tpu.memory_space<vmem>>, vector<36x32xf32>
    %cst = arith.constant dense<0.000000e+00> : vector<256x32xf32>
    %3 = tpu.matmul %1, %2, %cst {dimension_numbers = #tpu.dot_dimension_numbers<[1], [0], [0], [1], [0, 0, 1, 1], [], []>} : vector<256x36xf32>, vector<36x32xf32>, vector<256x32xf32> -> vector<256x32xf32>
    %c0_4 = arith.constant 0 : index
    %c0_5 = arith.constant 0 : index
    %4 = vector.load %arg3[%c0_4, %c0_5] : memref<1x32xf32, #tpu.memory_space<vmem>>, vector<1x32xf32>
    %5 = vector.broadcast %4 : vector<1x32xf32> to vector<256x32xf32>
    %6 = arith.addf %3, %5 : vector<256x32xf32>
    %cst_6 = arith.constant 0.000000e+00 : f32
    %7 = vector.broadcast %cst_6 : f32 to vector<256x32xf32>
    %8 = arith.maximumf %6, %7 : vector<256x32xf32>
    %c0_7 = arith.constant 0 : index
    %c0_8 = arith.constant 0 : index
    %9 = vector.load %arg9[%c0_7, %c0_8] : memref<312x32xf32, #tpu.memory_space<vmem>>, vector<256x32xf32>
    tpu.vector_store %arg9[%c0_7, %c0_8], %8 {strides = array<i32>} : memref<312x32xf32, #tpu.memory_space<vmem>>, vector<256x32xf32>,
    %cst_9 = arith.constant 0.000000e+00 : f32
    %10 = vector.broadcast %cst_9 : f32 to vector<56x32xf32>
    %c256 = arith.constant 256 : index
    %c0_10 = arith.constant 0 : index
    %11 = vector.load %arg9[%c256, %c0_10] : memref<312x32xf32, #tpu.memory_space<vmem>>, vector<56x32xf32>
    tpu.vector_store %arg9[%c256, %c0_10], %10 {strides = array<i32>} : memref<312x32xf32, #tpu.memory_space<vmem>>, vector<56x32xf32>,
    %cst_11 = arith.constant 0.000000e+00 : f32
    %12 = vector.broadcast %cst_11 : f32 to vector<256x32xf32>
    %c0_12 = arith.constant 0 : index
    %c0_13 = arith.constant 0 : index
    %13 = vector.load %arg9[%c0_12, %c0_13] : memref<312x32xf32, #tpu.memory_space<vmem>>, vector<256x32xf32>
    %c0_14 = arith.constant 0 : index
    %c0_15 = arith.constant 0 : index
    %c0_16 = arith.constant 0 : index
    %14 = vector.load %arg4[%c0_14, %c0_15, %c0_16] : memref<16x32x32xf32, #tpu.memory_space<vmem>>, vector<1x32x32xf32>
    %15 = vector.shape_cast %14 : vector<1x32x32xf32> to vector<32x32xf32>
    %cst_17 = arith.constant dense<0.000000e+00> : vector<256x32xf32>
    %16 = tpu.matmul %13, %15, %cst_17 {dimension_numbers = #tpu.dot_dimension_numbers<[1], [0], [0], [1], [0, 0, 1, 1], [], []>} : vector<256x32xf32>, vector<32x32xf32>, vector<256x32xf32> -> vector<256x32xf32>
    %17 = arith.addf %12, %16 : vector<256x32xf32>
    %c1 = arith.constant 1 : index
    %c0_18 = arith.constant 0 : index
    %18 = vector.load %arg9[%c1, %c0_18] : memref<312x32xf32, #tpu.memory_space<vmem>>, vector<256x32xf32>
    %c1_19 = arith.constant 1 : index
    %c0_20 = arith.constant 0 : index
    %c0_21 = arith.constant 0 : index
    %19 = vector.load %arg4[%c1_19, %c0_20, %c0_21] : memref<16x32x32xf32, #tpu.memory_space<vmem>>, vector<1x32x32xf32>
    %20 = vector.shape_cast %19 : vector<1x32x32xf32> to vector<32x32xf32>
    %cst_22 = arith.constant dense<0.000000e+00> : vector<256x32xf32>
    %21 = tpu.matmul %18, %20, %cst_22 {dimension_numbers = #tpu.dot_dimension_numbers<[1], [0], [0], [1], [0, 0, 1, 1], [], []>} : vector<256x32xf32>, vector<32x32xf32>, vector<256x32xf32> -> vector<256x32xf32>
    %22 = arith.addf %17, %21 : vector<256x32xf32>
    %c2 = arith.constant 2 : index
    %c0_23 = arith.constant 0 : index
    %23 = vector.load %arg9[%c2, %c0_23] : memref<312x32xf32, #tpu.memory_space<vmem>>, vector<256x32xf32>
    %c2_24 = arith.constant 2 : index
    %c0_25 = arith.constant 0 : index
    %c0_26 = arith.constant 0 : index
    %24 = vector.load %arg4[%c2_24, %c0_25, %c0_26] : memref<16x32x32xf32, #tpu.memory_space<vmem>>, vector<1x32x32xf32>
    %25 = vector.shape_cast %24 : vector<1x32x32xf32> to vector<32x32xf32>
    %cst_27 = arith.constant dense<0.000000e+00> : vector<256x32xf32>
    %26 = tpu.matmul %23, %25, %cst_27 {dimension_numbers = #tpu.dot_dimension_numbers<[1], [0], [0], [1], [0, 0, 1, 1], [], []>} : vector<256x32xf32>, vector<32x32xf32>, vector<256x32xf32> -> vector<256x32xf32>
    %27 = arith.addf %22, %26 : vector<256x32xf32>
    %c3 = arith.constant 3 : index
    %c0_28 = arith.constant 0 : index
    %28 = vector.load %arg9[%c3, %c0_28] : memref<312x32xf32, #tpu.memory_space<vmem>>, vector<256x32xf32>
    %c3_29 = arith.constant 3 : index
    %c0_30 = arith.constant 0 : index
    %c0_31 = arith.constant 0 : index
    %29 = vector.load %arg4[%c3_29, %c0_30, %c0_31] : memref<16x32x32xf32, #tpu.memory_space<vmem>>, vector<1x32x32xf32>
    %30 = vector.shape_cast %29 : vector<1x32x32xf32> to vector<32x32xf32>
    %cst_32 = arith.constant dense<0.000000e+00> : vector<256x32xf32>
    %31 = tpu.matmul %28, %30, %cst_32 {dimension_numbers = #tpu.dot_dimension_numbers<[1], [0], [0], [1], [0, 0, 1, 1], [], []>} : vector<256x32xf32>, vector<32x32xf32>, vector<256x32xf32> -> vector<256x32xf32>
    %32 = arith.addf %27, %31 : vector<256x32xf32>
    %c16 = arith.constant 16 : index
    %c0_33 = arith.constant 0 : index
    %33 = vector.load %arg9[%c16, %c0_33] : memref<312x32xf32, #tpu.memory_space<vmem>>, vector<256x32xf32>
    %c4 = arith.constant 4 : index
    %c0_34 = arith.constant 0 : index
    %c0_35 = arith.constant 0 : index
    %34 = vector.load %arg4[%c4, %c0_34, %c0_35] : memref<16x32x32xf32, #tpu.memory_space<vmem>>, vector<1x32x32xf32>
    %35 = vector.shape_cast %34 : vector<1x32x32xf32> to vector<32x32xf32>
    %cst_36 = arith.constant dense<0.000000e+00> : vector<256x32xf32>
    %36 = tpu.matmul %33, %35, %cst_36 {dimension_numbers = #tpu.dot_dimension_numbers<[1], [0], [0], [1], [0, 0, 1, 1], [], []>} : vector<256x32xf32>, vector<32x32xf32>, vector<256x32xf32> -> vector<256x32xf32>
    %37 = arith.addf %32, %36 : vector<256x32xf32>
    %c17 = arith.constant 17 : index
    %c0_37 = arith.constant 0 : index
    %38 = vector.load %arg9[%c17, %c0_37] : memref<312x32xf32, #tpu.memory_space<vmem>>, vector<256x32xf32>
    %c5 = arith.constant 5 : index
    %c0_38 = arith.constant 0 : index
    %c0_39 = arith.constant 0 : index
    %39 = vector.load %arg4[%c5, %c0_38, %c0_39] : memref<16x32x32xf32, #tpu.memory_space<vmem>>, vector<1x32x32xf32>
    %40 = vector.shape_cast %39 : vector<1x32x32xf32> to vector<32x32xf32>
    %cst_40 = arith.constant dense<0.000000e+00> : vector<256x32xf32>
    %41 = tpu.matmul %38, %40, %cst_40 {dimension_numbers = #tpu.dot_dimension_numbers<[1], [0], [0], [1], [0, 0, 1, 1], [], []>} : vector<256x32xf32>, vector<32x32xf32>, vector<256x32xf32> -> vector<256x32xf32>
    %42 = arith.addf %37, %41 : vector<256x32xf32>
    %c18 = arith.constant 18 : index
    %c0_41 = arith.constant 0 : index
    %43 = vector.load %arg9[%c18, %c0_41] : memref<312x32xf32, #tpu.memory_space<vmem>>, vector<256x32xf32>
    %c6 = arith.constant 6 : index
    %c0_42 = arith.constant 0 : index
    %c0_43 = arith.constant 0 : index
    %44 = vector.load %arg4[%c6, %c0_42, %c0_43] : memref<16x32x32xf32, #tpu.memory_space<vmem>>, vector<1x32x32xf32>
    %45 = vector.shape_cast %44 : vector<1x32x32xf32> to vector<32x32xf32>
    %cst_44 = arith.constant dense<0.000000e+00> : vector<256x32xf32>
    %46 = tpu.matmul %43, %45, %cst_44 {dimension_numbers = #tpu.dot_dimension_numbers<[1], [0], [0], [1], [0, 0, 1, 1], [], []>} : vector<256x32xf32>, vector<32x32xf32>, vector<256x32xf32> -> vector<256x32xf32>
    %47 = arith.addf %42, %46 : vector<256x32xf32>
    %c19 = arith.constant 19 : index
    %c0_45 = arith.constant 0 : index
    %48 = vector.load %arg9[%c19, %c0_45] : memref<312x32xf32, #tpu.memory_space<vmem>>, vector<256x32xf32>
    %c7 = arith.constant 7 : index
    %c0_46 = arith.constant 0 : index
    %c0_47 = arith.constant 0 : index
    %49 = vector.load %arg4[%c7, %c0_46, %c0_47] : memref<16x32x32xf32, #tpu.memory_space<vmem>>, vector<1x32x32xf32>
    %50 = vector.shape_cast %49 : vector<1x32x32xf32> to vector<32x32xf32>
    %cst_48 = arith.constant dense<0.000000e+00> : vector<256x32xf32>
    %51 = tpu.matmul %48, %50, %cst_48 {dimension_numbers = #tpu.dot_dimension_numbers<[1], [0], [0], [1], [0, 0, 1, 1], [], []>} : vector<256x32xf32>, vector<32x32xf32>, vector<256x32xf32> -> vector<256x32xf32>
    %52 = arith.addf %47, %51 : vector<256x32xf32>
    %c32 = arith.constant 32 : index
    %c0_49 = arith.constant 0 : index
    %53 = vector.load %arg9[%c32, %c0_49] : memref<312x32xf32, #tpu.memory_space<vmem>>, vector<256x32xf32>
    %c8 = arith.constant 8 : index
    %c0_50 = arith.constant 0 : index
    %c0_51 = arith.constant 0 : index
    %54 = vector.load %arg4[%c8, %c0_50, %c0_51] : memref<16x32x32xf32, #tpu.memory_space<vmem>>, vector<1x32x32xf32>
    %55 = vector.shape_cast %54 : vector<1x32x32xf32> to vector<32x32xf32>
    %cst_52 = arith.constant dense<0.000000e+00> : vector<256x32xf32>
    %56 = tpu.matmul %53, %55, %cst_52 {dimension_numbers = #tpu.dot_dimension_numbers<[1], [0], [0], [1], [0, 0, 1, 1], [], []>} : vector<256x32xf32>, vector<32x32xf32>, vector<256x32xf32> -> vector<256x32xf32>
    %57 = arith.addf %52, %56 : vector<256x32xf32>
    %c33 = arith.constant 33 : index
    %c0_53 = arith.constant 0 : index
    %58 = vector.load %arg9[%c33, %c0_53] : memref<312x32xf32, #tpu.memory_space<vmem>>, vector<256x32xf32>
    %c9 = arith.constant 9 : index
    %c0_54 = arith.constant 0 : index
    %c0_55 = arith.constant 0 : index
    %59 = vector.load %arg4[%c9, %c0_54, %c0_55] : memref<16x32x32xf32, #tpu.memory_space<vmem>>, vector<1x32x32xf32>
    %60 = vector.shape_cast %59 : vector<1x32x32xf32> to vector<32x32xf32>
    %cst_56 = arith.constant dense<0.000000e+00> : vector<256x32xf32>
    %61 = tpu.matmul %58, %60, %cst_56 {dimension_numbers = #tpu.dot_dimension_numbers<[1], [0], [0], [1], [0, 0, 1, 1], [], []>} : vector<256x32xf32>, vector<32x32xf32>, vector<256x32xf32> -> vector<256x32xf32>
    %62 = arith.addf %57, %61 : vector<256x32xf32>
    %c34 = arith.constant 34 : index
    %c0_57 = arith.constant 0 : index
    %63 = vector.load %arg9[%c34, %c0_57] : memref<312x32xf32, #tpu.memory_space<vmem>>, vector<256x32xf32>
    %c10 = arith.constant 10 : index
    %c0_58 = arith.constant 0 : index
    %c0_59 = arith.constant 0 : index
    %64 = vector.load %arg4[%c10, %c0_58, %c0_59] : memref<16x32x32xf32, #tpu.memory_space<vmem>>, vector<1x32x32xf32>
    %65 = vector.shape_cast %64 : vector<1x32x32xf32> to vector<32x32xf32>
    %cst_60 = arith.constant dense<0.000000e+00> : vector<256x32xf32>
    %66 = tpu.matmul %63, %65, %cst_60 {dimension_numbers = #tpu.dot_dimension_numbers<[1], [0], [0], [1], [0, 0, 1, 1], [], []>} : vector<256x32xf32>, vector<32x32xf32>, vector<256x32xf32> -> vector<256x32xf32>
    %67 = arith.addf %62, %66 : vector<256x32xf32>
    %c35 = arith.constant 35 : index
    %c0_61 = arith.constant 0 : index
    %68 = vector.load %arg9[%c35, %c0_61] : memref<312x32xf32, #tpu.memory_space<vmem>>, vector<256x32xf32>
    %c11 = arith.constant 11 : index
    %c0_62 = arith.constant 0 : index
    %c0_63 = arith.constant 0 : index
    %69 = vector.load %arg4[%c11, %c0_62, %c0_63] : memref<16x32x32xf32, #tpu.memory_space<vmem>>, vector<1x32x32xf32>
    %70 = vector.shape_cast %69 : vector<1x32x32xf32> to vector<32x32xf32>
    %cst_64 = arith.constant dense<0.000000e+00> : vector<256x32xf32>
    %71 = tpu.matmul %68, %70, %cst_64 {dimension_numbers = #tpu.dot_dimension_numbers<[1], [0], [0], [1], [0, 0, 1, 1], [], []>} : vector<256x32xf32>, vector<32x32xf32>, vector<256x32xf32> -> vector<256x32xf32>
    %72 = arith.addf %67, %71 : vector<256x32xf32>
    %c48 = arith.constant 48 : index
    %c0_65 = arith.constant 0 : index
    %73 = vector.load %arg9[%c48, %c0_65] : memref<312x32xf32, #tpu.memory_space<vmem>>, vector<256x32xf32>
    %c12 = arith.constant 12 : index
    %c0_66 = arith.constant 0 : index
    %c0_67 = arith.constant 0 : index
    %74 = vector.load %arg4[%c12, %c0_66, %c0_67] : memref<16x32x32xf32, #tpu.memory_space<vmem>>, vector<1x32x32xf32>
    %75 = vector.shape_cast %74 : vector<1x32x32xf32> to vector<32x32xf32>
    %cst_68 = arith.constant dense<0.000000e+00> : vector<256x32xf32>
    %76 = tpu.matmul %73, %75, %cst_68 {dimension_numbers = #tpu.dot_dimension_numbers<[1], [0], [0], [1], [0, 0, 1, 1], [], []>} : vector<256x32xf32>, vector<32x32xf32>, vector<256x32xf32> -> vector<256x32xf32>
    %77 = arith.addf %72, %76 : vector<256x32xf32>
    %c49 = arith.constant 49 : index
    %c0_69 = arith.constant 0 : index
    %78 = vector.load %arg9[%c49, %c0_69] : memref<312x32xf32, #tpu.memory_space<vmem>>, vector<256x32xf32>
    %c13 = arith.constant 13 : index
    %c0_70 = arith.constant 0 : index
    %c0_71 = arith.constant 0 : index
    %79 = vector.load %arg4[%c13, %c0_70, %c0_71] : memref<16x32x32xf32, #tpu.memory_space<vmem>>, vector<1x32x32xf32>
    %80 = vector.shape_cast %79 : vector<1x32x32xf32> to vector<32x32xf32>
    %cst_72 = arith.constant dense<0.000000e+00> : vector<256x32xf32>
    %81 = tpu.matmul %78, %80, %cst_72 {dimension_numbers = #tpu.dot_dimension_numbers<[1], [0], [0], [1], [0, 0, 1, 1], [], []>} : vector<256x32xf32>, vector<32x32xf32>, vector<256x32xf32> -> vector<256x32xf32>
    %82 = arith.addf %77, %81 : vector<256x32xf32>
    %c50 = arith.constant 50 : index
    %c0_73 = arith.constant 0 : index
    %83 = vector.load %arg9[%c50, %c0_73] : memref<312x32xf32, #tpu.memory_space<vmem>>, vector<256x32xf32>
    %c14 = arith.constant 14 : index
    %c0_74 = arith.constant 0 : index
    %c0_75 = arith.constant 0 : index
    %84 = vector.load %arg4[%c14, %c0_74, %c0_75] : memref<16x32x32xf32, #tpu.memory_space<vmem>>, vector<1x32x32xf32>
    %85 = vector.shape_cast %84 : vector<1x32x32xf32> to vector<32x32xf32>
    %cst_76 = arith.constant dense<0.000000e+00> : vector<256x32xf32>
    %86 = tpu.matmul %83, %85, %cst_76 {dimension_numbers = #tpu.dot_dimension_numbers<[1], [0], [0], [1], [0, 0, 1, 1], [], []>} : vector<256x32xf32>, vector<32x32xf32>, vector<256x32xf32> -> vector<256x32xf32>
    %87 = arith.addf %82, %86 : vector<256x32xf32>
    %c51 = arith.constant 51 : index
    %c0_77 = arith.constant 0 : index
    %88 = vector.load %arg9[%c51, %c0_77] : memref<312x32xf32, #tpu.memory_space<vmem>>, vector<256x32xf32>
    %c15 = arith.constant 15 : index
    %c0_78 = arith.constant 0 : index
    %c0_79 = arith.constant 0 : index
    %89 = vector.load %arg4[%c15, %c0_78, %c0_79] : memref<16x32x32xf32, #tpu.memory_space<vmem>>, vector<1x32x32xf32>
    %90 = vector.shape_cast %89 : vector<1x32x32xf32> to vector<32x32xf32>
    %cst_80 = arith.constant dense<0.000000e+00> : vector<256x32xf32>
    %91 = tpu.matmul %88, %90, %cst_80 {dimension_numbers = #tpu.dot_dimension_numbers<[1], [0], [0], [1], [0, 0, 1, 1], [], []>} : vector<256x32xf32>, vector<32x32xf32>, vector<256x32xf32> -> vector<256x32xf32>
    %92 = arith.addf %87, %91 : vector<256x32xf32>
    %c0_81 = arith.constant 0 : index
    %c0_82 = arith.constant 0 : index
    %93 = vector.load %arg5[%c0_81, %c0_82] : memref<1x32xf32, #tpu.memory_space<vmem>>, vector<1x32xf32>
    %94 = vector.broadcast %93 : vector<1x32xf32> to vector<256x32xf32>
    %95 = arith.addf %92, %94 : vector<256x32xf32>
    %cst_83 = arith.constant 0.000000e+00 : f32
    %96 = vector.broadcast %cst_83 : f32 to vector<256x32xf32>
    %97 = arith.maximumf %95, %96 : vector<256x32xf32>
    %c0_84 = arith.constant 0 : index
    %c0_85 = arith.constant 0 : index
    %98 = vector.load %arg6[%c0_84, %c0_85] : memref<32x8xf32, #tpu.memory_space<vmem>>, vector<32x8xf32>
    %cst_86 = arith.constant dense<0.000000e+00> : vector<256x8xf32>
    %99 = tpu.matmul %97, %98, %cst_86 {dimension_numbers = #tpu.dot_dimension_numbers<[1], [0], [0], [1], [0, 0, 1, 1], [], []>} : vector<256x32xf32>, vector<32x8xf32>, vector<256x8xf32> -> vector<256x8xf32>
    %c0_87 = arith.constant 0 : index
    %c0_88 = arith.constant 0 : index
    %100 = vector.load %arg7[%c0_87, %c0_88] : memref<1x8xf32, #tpu.memory_space<vmem>>, vector<1x8xf32>
    %101 = vector.broadcast %100 : vector<1x8xf32> to vector<256x8xf32>
    %102 = arith.addf %99, %101 : vector<256x8xf32>
    %cst_89 = arith.constant 0.000000e+00 : f32
    %103 = vector.broadcast %cst_89 : f32 to vector<256x8xf32>
    %104 = arith.maximumf %102, %103 : vector<256x8xf32>
    %c0_90 = arith.constant 0 : index
    %c0_91 = arith.constant 0 : index
    %c0_92 = arith.constant 0 : index
    %105 = vector.load %arg8[%c0_90, %c0_91, %c0_92] : memref<1x256x8xf32, #tpu.memory_space<vmem>>, vector<1x256x8xf32>
    %106 = vector.shape_cast %105 : vector<1x256x8xf32> to vector<256x8xf32>
    %107 = vector.shape_cast %104 : vector<256x8xf32> to vector<1x256x8xf32>
    tpu.vector_store %arg8[%c0_90, %c0_91, %c0_92], %107 {strides = array<i32>} : memref<1x256x8xf32, #tpu.memory_space<vmem>>, vector<1x256x8xf32>,
    return
  }
  func.func @transform_0(%arg0: i32) -> (i32, i32, i32) {
    %c0_i32 = arith.constant 0 : i32
    %c0_i32_0 = arith.constant 0 : i32
    %c0_i32_1 = arith.constant 0 : i32
    return %arg0, %c0_i32, %c0_i32_0 : i32, i32, i32
  }
  func.func @transform_1(%arg0: i32) -> (i32, i32) {
    %c0_i32 = arith.constant 0 : i32
    %c0_i32_0 = arith.constant 0 : i32
    %c0_i32_1 = arith.constant 0 : i32
    return %c0_i32, %c0_i32_0 : i32, i32
  }
  func.func @transform_2(%arg0: i32) -> (i32, i32) {
    %c0_i32 = arith.constant 0 : i32
    %c0_i32_0 = arith.constant 0 : i32
    %c0_i32_1 = arith.constant 0 : i32
    return %c0_i32, %c0_i32_0 : i32, i32
  }
  func.func @transform_3(%arg0: i32) -> (i32, i32, i32) {
    %c0_i32 = arith.constant 0 : i32
    %c0_i32_0 = arith.constant 0 : i32
    %c0_i32_1 = arith.constant 0 : i32
    %c0_i32_2 = arith.constant 0 : i32
    return %c0_i32, %c0_i32_0, %c0_i32_1 : i32, i32, i32
  }
  func.func @transform_4(%arg0: i32) -> (i32, i32) {
    %c0_i32 = arith.constant 0 : i32
    %c0_i32_0 = arith.constant 0 : i32
    %c0_i32_1 = arith.constant 0 : i32
    return %c0_i32, %c0_i32_0 : i32, i32
  }
  func.func @transform_5(%arg0: i32) -> (i32, i32) {
    %c0_i32 = arith.constant 0 : i32
    %c0_i32_0 = arith.constant 0 : i32
    %c0_i32_1 = arith.constant 0 : i32
    return %c0_i32, %c0_i32_0 : i32, i32
  }
  func.func @transform_6(%arg0: i32) -> (i32, i32) {
    %c0_i32 = arith.constant 0 : i32
    %c0_i32_0 = arith.constant 0 : i32
    %c0_i32_1 = arith.constant 0 : i32
    return %c0_i32, %c0_i32_0 : i32, i32
  }
  func.func @transform_7(%arg0: i32) -> (i32, i32, i32) {
    %c0_i32 = arith.constant 0 : i32
    %c0_i32_0 = arith.constant 0 : i32
    %c0_i32_1 = arith.constant 0 : i32
    return %arg0, %c0_i32, %c0_i32_0 : i32, i32, i32
  }
}

</mosaic_0001>

<bundles_post_ra>
// kernel: tpu_custom_call.1
= control target key start
LH: loop header
LB: loop body
LE: loop exit
PB: predicated region body
PF: predicated region fallthrough
CT: control target
= control target key end

     0   :  { %s10413_s24 = smov 0   ;;  %s12401_s0 = inlined_call_operand.vmem [shape: f32[2,256,36], index: 0, kind: input, shape index: {}]   ;;  %s12402_s1 = inlined_call_operand.vmem [shape: f32[36,32], index: 1, kind: input, shape index: {}]   ;;  %s12403_s2 = inlined_call_operand.vmem [shape: f32[1,32], index: 2, kind: input, shape index: {}]   ;;  %s12404_s3 = inlined_call_operand.vmem [shape: f32[16,32,32], index: 3, kind: input, shape index: {}]   ;;  %s12405_s4 = inlined_call_operand.vmem [shape: f32[1,32], index: 4, kind: input, shape index: {}]   ;;  %s12406_s5 = inlined_call_operand.vmem [shape: f32[32,8], index: 5, kind: input, shape index: {}]   ;;  %s12407_s6 = inlined_call_operand.vmem [shape: f32[1,8], index: 6, kind: input, shape index: {}]   ;;  %s12408_s7 = inlined_call_operand.vmem [shape: f32[2,256,8], index: 7, kind: output, shape index: {}]  }
   0x1 LB: > { %s7419_s25 = sadd.s32 4294967295, %s10370_s24   ;;  %p7423_p0 = scmp.ge.s32.totalorder %s10370_s24, 1  ;;  %s10370_s24 = sphi %s10413_s24, %s17_s24  }
   0x2   : > { %p237_p1 = scmp.lt.s32.totalorder %s10370_s24, 3 }
   0x4   : > { %p238_p2 = pnand %p7423_p0, %p237_p1 }
   0x6   : > { %241 = sbr.rel (%p238_p2) target bundleno = 1270 (0x4f6), region = 48 }
   0xd   : > { %v311_v0 = vld [vmem:[%s12402_s1] sm:$0xff]  ;;  %v312_v1 = vld [vmem:[%s12402_s1 + $0x8] sm:$0xff]  ;;  %v313_v2 = vld [vmem:[%s12402_s1 + $0x10] sm:$0xff]  ;;  %p269_p3 = scmp.lt.s32.totalorder %s7419_s25, 1  ;;  %vm323_vm0 = vcmask 293888   ;;  %vm420_vm1 = vcmask 1043456  }
   0xe   : > { %v9731_v3 = vpack.c.bf16 %v312_v1, %v311_v0  ;;  %v314_v4 = vld [vmem:[%s12402_s1 + $0x18] sm:$0xff]  ;;  %v315_v6 = vld [vmem:[%s12402_s1 + $0x20] sm:$0xf]  ;;  %v7463_v40 = vld [vmem:[%s12404_s3 + $0x28] sm:$0xff]  ;;  %vm681_vm2 = vcmask 261120   ;;  %v10372_v54 = vmov 0.0  }
   0xf   : > { %v9735_v5 = vpack.c.bf16 %v314_v4, %v313_v2  ;;  %s12521_s25 = smov (!%p269_p3, %s7419_s25), 1  ;;  %v7462_v39 = vld [vmem:[%s12404_s3 + $0x20] sm:$0xff]  ;;  %v7711_v43 = vld [vmem:[%s12404_s3 + $0xe8] sm:$0xff]  ;;  %v7464_v44 = vld [vmem:[%s12404_s3 + $0x30] sm:$0xff]  ;;  %714 = vst.msk [vmem:[#allocation2 + $0x100] sm:$0xff] %vm681_vm2, %v10372_v54  ;;  %vm7331_vm3 = vcmask 64512  }
  0x10   : > { %9732 = vmatprep.subr.bf16.mxu0 %v9731_v3  ;;  %s8070_s11 = sshll.u32 %s12521_s25, 8  ;;  %v9739_v41 = vpack.c.bf16 %v7463_v40, %v7462_v39  ;;  %v7710_v42 = vld [vmem:[%s12404_s3 + $0xe0] sm:$0xff]  ;;  %v7465_v46 = vld [vmem:[%s12404_s3 + $0x38] sm:$0xff]  ;;  %v7712_v48 = vld [vmem:[%s12404_s3 + $0xf0] sm:$0xff]  ;;  %715 = vst.msk [vmem:[#allocation2 + $0x108] sm:$0xff] %vm681_vm2, %v10372_v54 }
  0x11   : > { %9734 = vmatpush3.bf16.msra.mxu0 %v9731_v3  ;;  %s10441_s14 = scalar_lea.vmem %s12401_s0, %s8070_s11  ;;  %v9795_v45 = vpack.c.bf16 %v7711_v43, %v7710_v42  ;;  %v9743_v47 = vpack.c.bf16 %v7465_v46, %v7464_v44  ;;  %v7713_v49 = vld [vmem:[%s12404_s3 + $0xf8] sm:$0xff]  ;;  %v7746_v51 = vld [vmem:[%s12404_s3 + $0x100] sm:$0xff]  ;;  %v7747_v52 = vld [vmem:[%s12404_s3 + $0x108] sm:$0xff]  ;;  %716 = vst.msk [vmem:[#allocation2 + $0x110] sm:$0xff] %vm681_vm2, %v10372_v54  ;;  %s12301_s21 = scalar_lea.vmem %s12408_s7, %s8070_s11 }
  0x12   : > { %9736 = vmatprep.subr.bf16.mxu0 %v9735_v5  ;;  %v279_v7 = vld [vmem:[%s10441_s14] sm:$0xff]  ;;  %v280_v8 = vld [vmem:[%s10441_s14 + $0x8] sm:$0xff]  ;;  %v281_v9 = vld [vmem:[%s10441_s14 + $0x10] sm:$0xff]  ;;  %v9799_v50 = vpack.c.bf16 %v7713_v49, %v7712_v48  ;;  %v10540_v53 = vpack.c.bf16 %v7747_v52, %v7746_v51  ;;  %717 = vst.msk [vmem:[#allocation2 + $0x118] sm:$0xff] %vm681_vm2, %v10372_v54 }
  0x13   : > { %8731 = vmatprep.mubr.msk.f32.mxu0 %vm323_vm0, %v279_v7  ;;  %v282_v10 = vld [vmem:[%s10441_s14 + $0x18] sm:$0xff]  ;;  %v283_v11 = vld [vmem:[%s10441_s14 + $0x20] sm:$0xff]  ;;  %v284_v12 = vld [vmem:[%s10441_s14 + $0x28] sm:$0xff]  ;;  %9796 = vmatprep.subr.bf16.mxu1 %v9795_v45  ;;  %718 = vst.msk [vmem:[#allocation2 + $0x120] sm:$0xff] %vm681_vm2, %v10372_v54 }
  0x14   : > { %v285_v13 = vld [vmem:[%s10441_s14 + $0x30] sm:$0xff]  ;;  %v286_v14 = vld [vmem:[%s10441_s14 + $0x38] sm:$0xff]  ;;  %v287_v15 = vld [vmem:[%s10441_s14 + $0x40] sm:$0xff]  ;;  %9798 = vmatpush3.bf16.msra.mxu1 %v9795_v45  ;;  %719 = vst.msk [vmem:[#allocation2 + $0x128] sm:$0xff] %vm681_vm2, %v10372_v54 }
  0x15   : > { %9738 = vmatpush3.bf16.msra.mxu0 %v9735_v5  ;;  %v288_v16 = vld [vmem:[%s10441_s14 + $0x48] sm:$0xff]  ;;  %v289_v17 = vld [vmem:[%s10441_s14 + $0x50] sm:$0xff]  ;;  %v290_v18 = vld [vmem:[%s10441_s14 + $0x58] sm:$0xff]  ;;  %9800 = vmatprep.subr.bf16.mxu1 %v9799_v50  ;;  %720 = vst.msk [vmem:[#allocation2 + $0x130] sm:$0xff] %vm681_vm2, %v10372_v54 }
  0x16   : > { %8729 = vmatprep.subr.msk.mxu0 %vm420_vm1, %v315_v6  ;;  %v291_v19 = vld [vmem:[%s10441_s14 + $0x60] sm:$0xff]  ;;  %v292_v20 = vld [vmem:[%s10441_s14 + $0x68] sm:$0xff]  ;;  %v293_v21 = vld [vmem:[%s10441_s14 + $0x70] sm:$0xff] }
  0x17   : > { %v294_v22 = vld [vmem:[%s10441_s14 + $0x78] sm:$0xff]  ;;  %v295_v23 = vld [vmem:[%s10441_s14 + $0x80] sm:$0xff]  ;;  %v296_v24 = vld [vmem:[%s10441_s14 + $0x88] sm:$0xff] }
  0x18   : > { %v297_v25 = vld [vmem:[%s10441_s14 + $0x90] sm:$0xff]  ;;  %v298_v26 = vld [vmem:[%s10441_s14 + $0x98] sm:$0xff]  ;;  %v299_v27 = vld [vmem:[%s10441_s14 + $0xa0] sm:$0xff]  ;;  %9802 = vmatpush3.bf16.msra.mxu1 %v9799_v50 }
  0x19   : > { %8730 = vmatpush3.msk.msra.mxu0 %vm420_vm1, %v315_v6  ;;  %v300_v28 = vld [vmem:[%s10441_s14 + $0xa8] sm:$0xff]  ;;  %v301_v29 = vld [vmem:[%s10441_s14 + $0xb0] sm:$0xff]  ;;  %v302_v30 = vld [vmem:[%s10441_s14 + $0xb8] sm:$0xff]  ;;  %9804 = vmatprep.subr.bf16.mxu1 %v10540_v53 }
  0x1a   : > { %8732 = vmatmul.mubr.msk.f32.vlgmr.msra.gmra.mrb[0].mxu0 %vm323_vm0, %v280_v8  ;;  %v303_v31 = vld [vmem:[%s10441_s14 + $0xc0] sm:$0xff]  ;;  %v304_v32 = vld [vmem:[%s10441_s14 + $0xc8] sm:$0xff]  ;;  %v305_v33 = vld [vmem:[%s10441_s14 + $0xd0] sm:$0xff]  ;;  %9740 = vmatprep.subr.bf16.mxu0 %v9739_v41 }
  0x1b   : > { %8734 = vmatprep.mubr.msk.f32.mxu0 %vm323_vm0, %v281_v9  ;;  %v306_v34 = vld [vmem:[%s10441_s14 + $0xd8] sm:$0xff]  ;;  %v307_v35 = vld [vmem:[%s10441_s14 + $0xe0] sm:$0xff]  ;;  %v308_v36 = vld [vmem:[%s10441_s14 + $0xe8] sm:$0xff]  ;;  %9742 = vmatpush3.bf16.msra.mxu0 %v9739_v41 }
  0x1c   : > { %v309_v37 = vld [vmem:[%s10441_s14 + $0xf0] sm:$0xff]  ;;  %v310_v38 = vld [vmem:[%s10441_s14 + $0xf8] sm:$0xff]  ;;  %9744 = vmatprep.subr.bf16.mxu0 %v9743_v47  ;;  %v753_v55 = vld [vmem:[%s12404_s3] sm:$0xff] }
  0x1d   : > { %v754_v56 = vld [vmem:[%s12404_s3 + $0x8] sm:$0xff]  ;;  %v10559_v58 = vld [vmem:[%s12403_s2] ss:$0 sm:$0xff] }
  0x1e   : > { %8735 = vmatmul.mubr.msk.f32.gmra.mrb[2].mxu0 %vm323_vm0, %v282_v10  ;;  %v9747_v57 = vpack.c.bf16 %v754_v56, %v753_v55  ;;  %v7782_v45 = vld [vmem:[%s12404_s3 + $0x120] sm:$0xff]  ;;  %v7783_v46 = vld [vmem:[%s12404_s3 + $0x128] sm:$0xff] }
  0x1f   : > { %8737 = vmatprep.mubr.msk.f32.mxu0 %vm323_vm0, %v283_v11  ;;  %9746 = vmatpush3.bf16.msra.mxu0 %v9743_v47 }
  0x20   : > { %9748 = vmatprep.subr.bf16.mxu0 %v9747_v57 }
  0x22   : > { %8738 = vmatmul.mubr.msk.f32.gmra.mrb[4].mxu0 %vm323_vm0, %v284_v12 }
  0x23   : > { %8740 = vmatprep.mubr.msk.f32.mxu0 %vm323_vm0, %v285_v13 }
  0x26   : > { %8741 = vmatmul.mubr.msk.f32.gmra.mrb[6].mxu0 %vm323_vm0, %v286_v14 }
  0x27   : > { %8743 = vmatprep.mubr.msk.f32.mxu0 %vm323_vm0, %v287_v15 }
  0x2a   : > { %8744 = vmatmul.mubr.msk.f32.gmra.mrb[8].mxu0 %vm323_vm0, %v288_v16 }
  0x2b   : > { %8746 = vmatprep.mubr.msk.f32.mxu0 %vm323_vm0, %v289_v17  ;;  %v755_v17 = vld [vmem:[%s12404_s3 + $0x10] sm:$0xff] }
  0x2e   : > { %8747 = vmatmul.mubr.msk.f32.gmra.mrb[10].mxu0 %vm323_vm0, %v290_v18  ;;  %v756_v18 = vld [vmem:[%s12404_s3 + $0x18] sm:$0xff] }
  0x2f   : > { %8749 = vmatprep.mubr.msk.f32.mxu0 %vm323_vm0, %v291_v19 }
  0x32   : > { %8750 = vmatmul.mubr.msk.f32.gmra.mrb[12].mxu0 %vm323_vm0, %v292_v20 }
  0x33   : > { %8752 = vmatprep.mubr.msk.f32.mxu0 %vm323_vm0, %v293_v21 }
  0x36   : > { %8753 = vmatmul.mubr.msk.f32.gmra.mrb[14].mxu0 %vm323_vm0, %v294_v22 }
  0x37   : > { %8755 = vmatprep.mubr.msk.f32.mxu0 %vm323_vm0, %v295_v23  ;;  %v7748_v23 = vld [vmem:[%s12404_s3 + $0x110] sm:$0xff] }
  0x3a   : > { %8756 = vmatmul.mubr.msk.f32.gmra.mrb[16].mxu0 %vm323_vm0, %v296_v24  ;;  %v7749_v24 = vld [vmem:[%s12404_s3 + $0x118] sm:$0xff] }
  0x3b   : > { %8758 = vmatprep.mubr.msk.f32.mxu0 %vm323_vm0, %v297_v25  ;;  %v9751_v25 = vpack.c.bf16 %v756_v18, %v755_v17 }
  0x3e   : > { %8759 = vmatmul.mubr.msk.f32.gmra.mrb[18].mxu0 %vm323_vm0, %v298_v26 }
  0x3f   : > { %8761 = vmatprep.mubr.msk.f32.mxu0 %vm323_vm0, %v299_v27 }
  0x42   : > { %8762 = vmatmul.mubr.msk.f32.gmra.mrb[20].mxu0 %vm323_vm0, %v300_v28 }
  0x43   : > { %8764 = vmatprep.mubr.msk.f32.mxu0 %vm323_vm0, %v301_v29 }
  0x46   : > { %8765 = vmatmul.mubr.msk.f32.gmra.mrb[22].mxu0 %vm323_vm0, %v302_v30 }
  0x47   : > { %8767 = vmatprep.mubr.msk.f32.mxu0 %vm323_vm0, %v303_v31 }
  0x4a   : > { %8768 = vmatmul.mubr.msk.f32.gmra.mrb[24].mxu0 %vm323_vm0, %v304_v32 }
  0x4b   : > { %8770 = vmatprep.mubr.msk.f32.mxu0 %vm323_vm0, %v305_v33 }
  0x4e   : > { %8771 = vmatmul.mubr.msk.f32.gmra.mrb[26].mxu0 %vm323_vm0, %v306_v34 }
  0x4f   : > { %8773 = vmatprep.mubr.msk.f32.mxu0 %vm323_vm0, %v307_v35  ;;  %v9807_v35 = vpack.c.bf16 %v7749_v24, %v7748_v23 }
  0x52   : > { %8774 = vmatmul.mubr.msk.f32.gmra.mrb[28].mxu0 %vm323_vm0, %v308_v36  ;;  %v7530_v36 = vld [vmem:[%s12404_s3 + $0x40] sm:$0xff] }
  0x53   : > { %8776 = vmatprep.mubr.msk.f32.mxu0 %vm323_vm0, %v309_v37  ;;  %v7531_v37 = vld [vmem:[%s12404_s3 + $0x48] sm:$0xff] }
  0x54   : > { %v10619_v50 = vpack.c.bf16 %v7531_v37, %v7530_v36 }
  0x56   : > { %8777 = vmatmul.mubr.msk.f32.gmra.mrb[30].mxu0 %vm323_vm0, %v310_v38 }
  0xed   : > { %v8733_v59 = vpop.f32.mrb[0].mxu0 }
  0xee   : > { %v496_v60 = vadd.f32 %v8733_v59, %v10559_v58  ;;  %v490_v61 = vpop.f32.mrb[1].mxu0 }
  0xef   : > { %v491_v62 = vadd.f32 %v10559_v58, %v490_v61 }
  0xf0   : > { %v650_v63 = vmax.f32 %v496_v60, 0.0 }
  0xf1   : > { %v649_v0 = vmax.f32 %v491_v62, 0.0  ;;  %v8736_v1 = vpop.f32.mrb[2].mxu0 }
  0xf2   : > { %683 = vst.msk [vmem:[#allocation2 + $0x8] sm:$0xff] %vm681_vm2, %v650_v63  ;;  %v506_v2 = vadd.f32 %v8736_v1, %v10559_v58  ;;  %v500_v3 = vpop.f32.mrb[3].mxu0 }
  0xf3   : > { %682 = vst.msk [vmem:[#allocation2] sm:$0xff] %vm681_vm2, %v649_v0  ;;  %v501_v4 = vadd.f32 %v10559_v58, %v500_v3 }
  0xf4   : > { %v652_v5 = vmax.f32 %v506_v2, 0.0 }
  0xf5   : > { %v651_v6 = vmax.f32 %v501_v4, 0.0  ;;  %v8739_v7 = vpop.f32.mrb[4].mxu0 }
  0xf6   : > { %685 = vst.msk [vmem:[#allocation2 + $0x18] sm:$0xff] %vm681_vm2, %v652_v5  ;;  %v516_v8 = vadd.f32 %v8739_v7, %v10559_v58  ;;  %v510_v9 = vpop.f32.mrb[5].mxu0 }
  0xf7   : > { %684 = vst.msk [vmem:[#allocation2 + $0x10] sm:$0xff] %vm681_vm2, %v651_v6  ;;  %v511_v10 = vadd.f32 %v10559_v58, %v510_v9 }
  0xf8   : > { %v654_v11 = vmax.f32 %v516_v8, 0.0 }
  0xf9   : > { %v653_v12 = vmax.f32 %v511_v10, 0.0  ;;  %v8742_v13 = vpop.f32.mrb[6].mxu0 }
  0xfa   : > { %687 = vst.msk [vmem:[#allocation2 + $0x28] sm:$0xff] %vm681_vm2, %v654_v11  ;;  %v526_v14 = vadd.f32 %v8742_v13, %v10559_v58  ;;  %v520_v15 = vpop.f32.mrb[7].mxu0  ;;  %v757_v16 = vld [vmem:[#allocation2 + $0x1] sm:$0xff] }
  0xfb   : > { %686 = vst.msk [vmem:[#allocation2 + $0x20] sm:$0xff] %vm681_vm2, %v653_v12  ;;  %v521_v19 = vadd.f32 %v10559_v58, %v520_v15  ;;  %8787 = vmatprep.mubr.msk.f32.mxu0 %vm681_vm2, %v757_v16 }
  0xfc   : > { %v656_v20 = vmax.f32 %v526_v14, 0.0 }
  0xfd   : > { %v655_v21 = vmax.f32 %v521_v19, 0.0  ;;  %v8745_v22 = vpop.f32.mrb[8].mxu0 }
  0xfe   : > { %689 = vst.msk [vmem:[#allocation2 + $0x38] sm:$0xff] %vm681_vm2, %v656_v20  ;;  %v536_v26 = vadd.f32 %v8745_v22, %v10559_v58  ;;  %v530_v27 = vpop.f32.mrb[9].mxu0  ;;  %v758_v28 = vld [vmem:[#allocation2 + $0x9] sm:$0xff]  ;;  %v3386_v29 = vld [vmem:[#allocation2 + $0x13] sm:$0xff] }
  0xff   : > { %v759_v30 = vld [vmem:[#allocation2 + $0x11] sm:$0xff]  ;;  %688 = vst.msk [vmem:[#allocation2 + $0x30] sm:$0xff] %vm681_vm2, %v655_v21  ;;  %v531_v31 = vadd.f32 %v10559_v58, %v530_v27  ;;  %8788 = vmatmul.mubr.msk.f32.vlgmr.msra.gmra.mrb[32].mxu0 %vm681_vm2, %v758_v28  ;;  %9179 = vmatprep.mubr.msk.f32.mxu1 %vm681_vm2, %v3386_v29 }
 0x100   : > { %v658_v32 = vmax.f32 %v536_v26, 0.0  ;;  %8790 = vmatprep.mubr.msk.f32.mxu0 %vm681_vm2, %v759_v30  ;;  %9750 = vmatpush3.bf16.msra.mxu0 %v9747_v57 }
 0x101   : > { %v657_v33 = vmax.f32 %v531_v31, 0.0  ;;  %v8748_v34 = vpop.f32.mrb[10].mxu0  ;;  %9752 = vmatprep.subr.bf16.mxu0 %v9751_v25 }
 0x102   : > { %691 = vst.msk [vmem:[#allocation2 + $0x48] sm:$0xff] %vm681_vm2, %v658_v32  ;;  %v546_v38 = vadd.f32 %v8748_v34, %v10559_v58  ;;  %v540_v39 = vpop.f32.mrb[11].mxu0  ;;  %v760_v40 = vld [vmem:[#allocation2 + $0x19] sm:$0xff]  ;;  %v10603_v42 = vld [vmem:[#allocation2 + $0x21] sm:$0xff] }
 0x103   : > { %v3387_v41 = vld [vmem:[#allocation2 + $0x1b] sm:$0xff]  ;;  %690 = vst.msk [vmem:[#allocation2 + $0x40] sm:$0xff] %vm681_vm2, %v657_v33  ;;  %v541_v43 = vadd.f32 %v10559_v58, %v540_v39  ;;  %8791 = vmatmul.mubr.msk.f32.gmra.mrb[34].mxu0 %vm681_vm2, %v760_v40  ;;  %v3388_v44 = vld [vmem:[#allocation2 + $0x23] sm:$0xff] }
 0x104   : > { %9180 = vmatmul.mubr.msk.f32.vlgmr.msra.gmra.mrb[0].mxu1 %vm681_vm2, %v3387_v41  ;;  %v660_v47 = vmax.f32 %v546_v38, 0.0  ;;  %8793 = vmatprep.mubr.msk.f32.mxu0 %vm681_vm2, %v10603_v42 }
 0x105   : > { %9806 = vmatpush3.bf16.msra.mxu1 %v10540_v53  ;;  %v659_v48 = vmax.f32 %v541_v43, 0.0  ;;  %9182 = vmatprep.mubr.msk.f32.mxu1 %vm681_vm2, %v3388_v44  ;;  %v8751_v49 = vpop.f32.mrb[12].mxu0  ;;  %v10627_v53 = vpack.c.bf16 %v7783_v46, %v7782_v45 }
 0x106   : > { %9808 = vmatprep.subr.bf16.mxu1 %v9807_v35  ;;  %693 = vst.msk [vmem:[#allocation2 + $0x58] sm:$0xff] %vm681_vm2, %v660_v47  ;;  %v556_v51 = vadd.f32 %v8751_v49, %v10559_v58  ;;  %v550_v52 = vpop.f32.mrb[13].mxu0  ;;  %v10623_v54 = vld [vmem:[#allocation2 + $0x29] sm:$0xff]  ;;  %v10625_v56 = vld [vmem:[#allocation2 + $0x31] sm:$0xff]  ;;  %9754 = vmatpush3.bf16.msra.mxu0 %v9751_v25 }
 0x107   : > { %v3389_v55 = vld [vmem:[#allocation2 + $0x2b] sm:$0xff]  ;;  %692 = vst.msk [vmem:[#allocation2 + $0x50] sm:$0xff] %vm681_vm2, %v659_v48  ;;  %v551_v57 = vadd.f32 %v10559_v58, %v550_v52  ;;  %8794 = vmatmul.mubr.msk.f32.gmra.mrb[36].mxu0 %vm681_vm2, %v10623_v54  ;;  %v3390_v59 = vld [vmem:[#allocation2 + $0x33] sm:$0xff]  ;;  %9756 = vmatprep.subr.bf16.mxu0 %v10619_v50 }
 0x108   : > { %9183 = vmatmul.mubr.msk.f32.gmra.mrb[2].mxu1 %vm681_vm2, %v3389_v55  ;;  %v662_v60 = vmax.f32 %v556_v51, 0.0  ;;  %8796 = vmatprep.mubr.msk.f32.mxu0 %vm681_vm2, %v10625_v56 }
 0x109   : > { %9185 = vmatprep.mubr.msk.f32.mxu1 %vm681_vm2, %v3390_v59  ;;  %v661_v61 = vmax.f32 %v551_v57, 0.0  ;;  %v8754_v62 = vpop.f32.mrb[14].mxu0  ;;  %9810 = vmatpush3.bf16.msra.mxu1 %v9807_v35 }
 0x10a   : > { %695 = vst.msk [vmem:[#allocation2 + $0x68] sm:$0xff] %vm681_vm2, %v662_v60  ;;  %v566_v63 = vadd.f32 %v8754_v62, %v10559_v58  ;;  %v560_v0 = vpop.f32.mrb[15].mxu0  ;;  %v10640_v1 = vld [vmem:[#allocation2 + $0x39] sm:$0xff]  ;;  %v10642_v3 = vld [vmem:[#allocation2 + $0x41] sm:$0xff]  ;;  %9812 = vmatprep.subr.bf16.mxu1 %v10627_v53 }
 0x10b   : > { %v3391_v2 = vld [vmem:[#allocation2 + $0x3b] sm:$0xff]  ;;  %694 = vst.msk [vmem:[#allocation2 + $0x60] sm:$0xff] %vm681_vm2, %v661_v61  ;;  %v561_v4 = vadd.f32 %v10559_v58, %v560_v0  ;;  %8797 = vmatmul.mubr.msk.f32.gmra.mrb[38].mxu0 %vm681_vm2, %v10640_v1  ;;  %v3392_v5 = vld [vmem:[#allocation2 + $0x43] sm:$0xff] }
 0x10c   : > { %9186 = vmatmul.mubr.msk.f32.gmra.mrb[4].mxu1 %vm681_vm2, %v3391_v2  ;;  %v664_v6 = vmax.f32 %v566_v63, 0.0  ;;  %8799 = vmatprep.mubr.msk.f32.mxu0 %vm681_vm2, %v10642_v3 }
 0x10d   : > { %9188 = vmatprep.mubr.msk.f32.mxu1 %vm681_vm2, %v3392_v5  ;;  %v663_v7 = vmax.f32 %v561_v4, 0.0  ;;  %v8757_v8 = vpop.f32.mrb[16].mxu0 }
 0x10e   : > { %697 = vst.msk [vmem:[#allocation2 + $0x78] sm:$0xff] %vm681_vm2, %v664_v6  ;;  %v576_v9 = vadd.f32 %v8757_v8, %v10559_v58  ;;  %v570_v10 = vpop.f32.mrb[17].mxu0  ;;  %v10655_v11 = vld [vmem:[#allocation2 + $0x49] sm:$0xff]  ;;  %v10659_v13 = vld [vmem:[#allocation2 + $0x51] sm:$0xff] }
 0x10f   : > { %v10657_v12 = vld [vmem:[#allocation2 + $0x4b] sm:$0xff]  ;;  %696 = vst.msk [vmem:[#allocation2 + $0x70] sm:$0xff] %vm681_vm2, %v663_v7  ;;  %v571_v14 = vadd.f32 %v10559_v58, %v570_v10  ;;  %8800 = vmatmul.mubr.msk.f32.gmra.mrb[40].mxu0 %vm681_vm2, %v10655_v11  ;;  %v10667_v15 = vld [vmem:[#allocation2 + $0x53] sm:$0xff] }
 0x110   : > { %9189 = vmatmul.mubr.msk.f32.gmra.mrb[6].mxu1 %vm681_vm2, %v10657_v12  ;;  %v666_v16 = vmax.f32 %v576_v9, 0.0  ;;  %8802 = vmatprep.mubr.msk.f32.mxu0 %vm681_vm2, %v10659_v13 }
 0x111   : > { %9191 = vmatprep.mubr.msk.f32.mxu1 %vm681_vm2, %v10667_v15  ;;  %v665_v17 = vmax.f32 %v571_v14, 0.0  ;;  %v8760_v18 = vpop.f32.mrb[18].mxu0 }
 0x112   : > { %699 = vst.msk [vmem:[#allocation2 + $0x88] sm:$0xff] %vm681_vm2, %v666_v16  ;;  %v586_v19 = vadd.f32 %v8760_v18, %v10559_v58  ;;  %v580_v20 = vpop.f32.mrb[19].mxu0  ;;  %v10675_v21 = vld [vmem:[#allocation2 + $0x59] sm:$0xff]  ;;  %v10679_v23 = vld [vmem:[#allocation2 + $0x61] sm:$0xff] }
 0x113   : > { %v10677_v22 = vld [vmem:[#allocation2 + $0x5b] sm:$0xff]  ;;  %698 = vst.msk [vmem:[#allocation2 + $0x80] sm:$0xff] %vm681_vm2, %v665_v17  ;;  %v581_v24 = vadd.f32 %v10559_v58, %v580_v20  ;;  %8803 = vmatmul.mubr.msk.f32.gmra.mrb[42].mxu0 %vm681_vm2, %v10675_v21  ;;  %v10687_v25 = vld [vmem:[#allocation2 + $0x63] sm:$0xff] }
 0x114   : > { %9192 = vmatmul.mubr.msk.f32.gmra.mrb[8].mxu1 %vm681_vm2, %v10677_v22  ;;  %v668_v26 = vmax.f32 %v586_v19, 0.0  ;;  %8805 = vmatprep.mubr.msk.f32.mxu0 %vm681_vm2, %v10679_v23 }
 0x115   : > { %9194 = vmatprep.mubr.msk.f32.mxu1 %vm681_vm2, %v10687_v25  ;;  %v667_v27 = vmax.f32 %v581_v24, 0.0  ;;  %v8763_v28 = vpop.f32.mrb[20].mxu0 }
 0x116   : > { %701 = vst.msk [vmem:[#allocation2 + $0x98] sm:$0xff] %vm681_vm2, %v668_v26  ;;  %v596_v29 = vadd.f32 %v8763_v28, %v10559_v58  ;;  %v590_v30 = vpop.f32.mrb[21].mxu0  ;;  %v10695_v31 = vld [vmem:[#allocation2 + $0x69] sm:$0xff]  ;;  %v10699_v33 = vld [vmem:[#allocation2 + $0x71] sm:$0xff] }
 0x117   : > { %v10697_v32 = vld [vmem:[#allocation2 + $0x6b] sm:$0xff]  ;;  %700 = vst.msk [vmem:[#allocation2 + $0x90] sm:$0xff] %vm681_vm2, %v667_v27  ;;  %v591_v34 = vadd.f32 %v10559_v58, %v590_v30  ;;  %8806 = vmatmul.mubr.msk.f32.gmra.mrb[44].mxu0 %vm681_vm2, %v10695_v31  ;;  %v10707_v35 = vld [vmem:[#allocation2 + $0x73] sm:$0xff] }
 0x118   : > { %9195 = vmatmul.mubr.msk.f32.gmra.mrb[10].mxu1 %vm681_vm2, %v10697_v32  ;;  %v670_v36 = vmax.f32 %v596_v29, 0.0  ;;  %8808 = vmatprep.mubr.msk.f32.mxu0 %vm681_vm2, %v10699_v33 }
 0x119   : > { %9197 = vmatprep.mubr.msk.f32.mxu1 %vm681_vm2, %v10707_v35  ;;  %v669_v37 = vmax.f32 %v591_v34, 0.0  ;;  %v8766_v38 = vpop.f32.mrb[22].mxu0 }
 0x11a   : > { %703 = vst.msk [vmem:[#allocation2 + $0xa8] sm:$0xff] %vm681_vm2, %v670_v36  ;;  %v606_v39 = vadd.f32 %v8766_v38, %v10559_v58  ;;  %v600_v40 = vpop.f32.mrb[23].mxu0  ;;  %v10715_v41 = vld [vmem:[#allocation2 + $0x79] sm:$0xff]  ;;  %v10719_v44 = vld [vmem:[#allocation2 + $0x81] sm:$0xff] }
 0x11b   : > { %v10717_v43 = vld [vmem:[#allocation2 + $0x7b] sm:$0xff]  ;;  %702 = vst.msk [vmem:[#allocation2 + $0xa0] sm:$0xff] %vm681_vm2, %v669_v37  ;;  %v601_v45 = vadd.f32 %v10559_v58, %v600_v40  ;;  %8809 = vmatmul.mubr.msk.f32.gmra.mrb[46].mxu0 %vm681_vm2, %v10715_v41  ;;  %v10727_v46 = vld [vmem:[#allocation2 + $0x83] sm:$0xff] }
 0x11c   : > { %9198 = vmatmul.mubr.msk.f32.gmra.mrb[12].mxu1 %vm681_vm2, %v10717_v43  ;;  %v672_v47 = vmax.f32 %v606_v39, 0.0  ;;  %8811 = vmatprep.mubr.msk.f32.mxu0 %vm681_vm2, %v10719_v44 }
 0x11d   : > { %9200 = vmatprep.mubr.msk.f32.mxu1 %vm681_vm2, %v10727_v46  ;;  %v671_v48 = vmax.f32 %v601_v45, 0.0  ;;  %v8769_v49 = vpop.f32.mrb[24].mxu0 }
 0x11e   : > { %705 = vst.msk [vmem:[#allocation2 + $0xb8] sm:$0xff] %vm681_vm2, %v672_v47  ;;  %v616_v51 = vadd.f32 %v8769_v49, %v10559_v58  ;;  %v610_v52 = vpop.f32.mrb[25].mxu0  ;;  %v10735_v55 = vld [vmem:[#allocation2 + $0x89] sm:$0xff]  ;;  %v10739_v59 = vld [vmem:[#allocation2 + $0x91] sm:$0xff] }
 0x11f   : > { %v10737_v57 = vld [vmem:[#allocation2 + $0x8b] sm:$0xff]  ;;  %704 = vst.msk [vmem:[#allocation2 + $0xb0] sm:$0xff] %vm681_vm2, %v671_v48  ;;  %v611_v60 = vadd.f32 %v10559_v58, %v610_v52  ;;  %8812 = vmatmul.mubr.msk.f32.gmra.mrb[48].mxu0 %vm681_vm2, %v10735_v55  ;;  %v10747_v61 = vld [vmem:[#allocation2 + $0x93] sm:$0xff] }
 0x120   : > { %9201 = vmatmul.mubr.msk.f32.gmra.mrb[14].mxu1 %vm681_vm2, %v10737_v57  ;;  %v674_v62 = vmax.f32 %v616_v51, 0.0  ;;  %8814 = vmatprep.mubr.msk.f32.mxu0 %vm681_vm2, %v10739_v59 }
 0x121   : > { %9203 = vmatprep.mubr.msk.f32.mxu1 %vm681_vm2, %v10747_v61  ;;  %v673_v63 = vmax.f32 %v611_v60, 0.0  ;;  %v8772_v0 = vpop.f32.mrb[26].mxu0 }
 0x122   : > { %707 = vst.msk [vmem:[#allocation2 + $0xc8] sm:$0xff] %vm681_vm2, %v674_v62  ;;  %v626_v2 = vadd.f32 %v8772_v0, %v10559_v58  ;;  %v620_v4 = vpop.f32.mrb[27].mxu0  ;;  %v10755_v5 = vld [vmem:[#allocation2 + $0x99] sm:$0xff]  ;;  %v10759_v7 = vld [vmem:[#allocation2 + $0xa1] sm:$0xff] }
 0x123   : > { %v10757_v6 = vld [vmem:[#allocation2 + $0x9b] sm:$0xff]  ;;  %706 = vst.msk [vmem:[#allocation2 + $0xc0] sm:$0xff] %vm681_vm2, %v673_v63  ;;  %v621_v8 = vadd.f32 %v10559_v58, %v620_v4  ;;  %8815 = vmatmul.mubr.msk.f32.gmra.mrb[50].mxu0 %vm681_vm2, %v10755_v5  ;;  %v10767_v9 = vld [vmem:[#allocation2 + $0xa3] sm:$0xff] }
 0x124   : > { %9204 = vmatmul.mubr.msk.f32.gmra.mrb[16].mxu1 %vm681_vm2, %v10757_v6  ;;  %v676_v10 = vmax.f32 %v626_v2, 0.0  ;;  %8817 = vmatprep.mubr.msk.f32.mxu0 %vm681_vm2, %v10759_v7 }
 0x125   : > { %9206 = vmatprep.mubr.msk.f32.mxu1 %vm681_vm2, %v10767_v9  ;;  %v675_v14 = vmax.f32 %v621_v8, 0.0  ;;  %v8775_v16 = vpop.f32.mrb[28].mxu0 }
 0x126   : > { %709 = vst.msk [vmem:[#allocation2 + $0xd8] sm:$0xff] %vm681_vm2, %v676_v10  ;;  %v636_v17 = vadd.f32 %v8775_v16, %v10559_v58  ;;  %v630_v18 = vpop.f32.mrb[29].mxu0  ;;  %v10775_v19 = vld [vmem:[#allocation2 + $0xa9] sm:$0xff]  ;;  %v10779_v24 = vld [vmem:[#allocation2 + $0xb1] sm:$0xff] }
 0x127   : > { %v10777_v20 = vld [vmem:[#allocation2 + $0xab] sm:$0xff]  ;;  %708 = vst.msk [vmem:[#allocation2 + $0xd0] sm:$0xff] %vm681_vm2, %v675_v14  ;;  %v631_v26 = vadd.f32 %v10559_v58, %v630_v18  ;;  %8818 = vmatmul.mubr.msk.f32.gmra.mrb[52].mxu0 %vm681_vm2, %v10775_v19  ;;  %v10787_v27 = vld [vmem:[#allocation2 + $0xb3] sm:$0xff]  ;;  %v3416_v14 = vld [vmem:[#allocation2 + $0x103] sm:$0xff] }
 0x128   : > { %9207 = vmatmul.mubr.msk.f32.gmra.mrb[18].mxu1 %vm681_vm2, %v10777_v20  ;;  %v678_v28 = vmax.f32 %v636_v17, 0.0  ;;  %8820 = vmatprep.mubr.msk.f32.mxu0 %vm681_vm2, %v10779_v24  ;;  %v721_v18 = vld [vmem:[#allocation2] sm:$0xff] }
 0x129   : > { %9209 = vmatprep.mubr.msk.f32.mxu1 %vm681_vm2, %v10787_v27  ;;  %v677_v29 = vmax.f32 %v631_v26, 0.0  ;;  %v8778_v30 = vpop.f32.mrb[30].mxu0  ;;  %v7532_v26 = vld [vmem:[%s12404_s3 + $0x50] sm:$0xff] }
 0x12a   : > { %711 = vst.msk [vmem:[#allocation2 + $0xe8] sm:$0xff] %vm681_vm2, %v678_v28  ;;  %v646_v34 = vadd.f32 %v8778_v30, %v10559_v58  ;;  %v640_v36 = vpop.f32.mrb[31].mxu0  ;;  %v10795_v37 = vld [vmem:[#allocation2 + $0xb9] sm:$0xff]  ;;  %v10799_v39 = vld [vmem:[#allocation2 + $0xc1] sm:$0xff] }
 0x12b   : > { %v10797_v38 = vld [vmem:[#allocation2 + $0xbb] sm:$0xff]  ;;  %710 = vst.msk [vmem:[#allocation2 + $0xe0] sm:$0xff] %vm681_vm2, %v677_v29  ;;  %v641_v40 = vadd.f32 %v10559_v58, %v640_v36  ;;  %8821 = vmatmul.mubr.msk.f32.gmra.mrb[54].mxu0 %vm681_vm2, %v10795_v37  ;;  %v10807_v45 = vld [vmem:[#allocation2 + $0xc3] sm:$0xff]  ;;  %v3417_v29 = vld [vmem:[#allocation2 + $0x10b] sm:$0xff] }
 0x12c   : > { %9210 = vmatmul.mubr.msk.f32.gmra.mrb[20].mxu1 %vm681_vm2, %v10797_v38  ;;  %v680_v47 = vmax.f32 %v646_v34, 0.0  ;;  %8823 = vmatprep.mubr.msk.f32.mxu0 %vm681_vm2, %v10799_v39  ;;  %v7533_v28 = vld [vmem:[%s12404_s3 + $0x58] sm:$0xff]  ;;  %v722_v30 = vld [vmem:[#allocation2 + $0x8] sm:$0xff]  ;;  %v7784_v34 = vld [vmem:[%s12404_s3 + $0x130] sm:$0xff] }
 0x12d   : > { %9212 = vmatprep.mubr.msk.f32.mxu1 %vm681_vm2, %v10807_v45  ;;  %v679_v48 = vmax.f32 %v641_v40, 0.0  ;;  %v7785_v36 = vld [vmem:[%s12404_s3 + $0x138] sm:$0xff]  ;;  %v9759_v40 = vpack.c.bf16 %v7533_v28, %v7532_v26  ;;  %v10898_v26 = vld [vmem:[#allocation2 + $0x28] sm:$0xff]  ;;  %v7566_v28 = vld [vmem:[%s12404_s3 + $0x60] sm:$0xff] }
 0x12e   : > { %713 = vst.msk [vmem:[#allocation2 + $0xf8] sm:$0xff] %vm681_vm2, %v680_v47  ;;  %v10814_v49 = vld [vmem:[#allocation2 + $0xc9] sm:$0xff]  ;;  %v10818_v51 = vld [vmem:[#allocation2 + $0xd1] sm:$0xff]  ;;  %12449 = vst [vmem:[#allocation6_spill] sm:$0xff] %v10898_v26 }
 0x12f   : > { %v10816_v58 = vld [vmem:[#allocation2 + $0xcb] sm:$0xff]  ;;  %712 = vst.msk [vmem:[#allocation2 + $0xf0] sm:$0xff] %vm681_vm2, %v679_v48  ;;  %8824 = vmatmul.mubr.msk.f32.gmra.mrb[56].mxu0 %vm681_vm2, %v10814_v49  ;;  %v10825_v52 = vld [vmem:[#allocation2 + $0xd3] sm:$0xff]  ;;  %v10889_v48 = vld [vmem:[#allocation2 + $0x20] sm:$0xff] }
 0x130   : > { %9213 = vmatmul.mubr.msk.f32.gmra.mrb[22].mxu1 %vm681_vm2, %v10816_v58  ;;  %8826 = vmatprep.mubr.msk.f32.mxu0 %vm681_vm2, %v10818_v51  ;;  %v10887_v47 = vld [vmem:[#allocation2 + $0x10] sm:$0xff]  ;;  %12447 = vst [vmem:[#allocation4_spill] sm:$0xff] %v10889_v48 }
 0x131   : > { %9215 = vmatprep.mubr.msk.f32.mxu1 %vm681_vm2, %v10825_v52  ;;  %12446 = vst [vmem:[#allocation3_spill] sm:$0xff] %v10887_v47 }
 0x132   : > { %v10831_v60 = vld [vmem:[#allocation2 + $0xd9] sm:$0xff]  ;;  %v10835_v63 = vld [vmem:[#allocation2 + $0xe1] sm:$0xff] }
 0x133   : > { %v10833_v62 = vld [vmem:[#allocation2 + $0xdb] sm:$0xff]  ;;  %8827 = vmatmul.mubr.msk.f32.gmra.mrb[58].mxu0 %vm681_vm2, %v10831_v60  ;;  %v10841_v0 = vld [vmem:[#allocation2 + $0xe3] sm:$0xff] }
 0x134   : > { %9216 = vmatmul.mubr.msk.f32.gmra.mrb[24].mxu1 %vm681_vm2, %v10833_v62  ;;  %8829 = vmatprep.mubr.msk.f32.mxu0 %vm681_vm2, %v10835_v63 }
 0x135   : > { %9218 = vmatprep.mubr.msk.f32.mxu1 %vm681_vm2, %v10841_v0  ;;  %v10863_v16 = vld [vmem:[#allocation2 + $0xf9] sm:$0xff] }
 0x136   : > { %v10847_v2 = vld [vmem:[#allocation2 + $0xe9] sm:$0xff]  ;;  %v10851_v8 = vld [vmem:[#allocation2 + $0xf1] sm:$0xff]  ;;  %v10865_v17 = vld [vmem:[#allocation2 + $0xfb] sm:$0xff] }
 0x137   : > { %v10849_v4 = vld [vmem:[#allocation2 + $0xeb] sm:$0xff]  ;;  %8830 = vmatmul.mubr.msk.f32.gmra.mrb[60].mxu0 %vm681_vm2, %v10847_v2  ;;  %v10857_v10 = vld [vmem:[#allocation2 + $0xf3] sm:$0xff] }
 0x138   : > { %9219 = vmatmul.mubr.msk.f32.gmra.mrb[26].mxu1 %vm681_vm2, %v10849_v4  ;;  %8832 = vmatprep.mubr.msk.f32.mxu0 %vm681_vm2, %v10851_v8 }
 0x139   : > { %9221 = vmatprep.mubr.msk.f32.mxu1 %vm681_vm2, %v10857_v10 }
 0x13b   : > { %8833 = vmatmul.mubr.msk.f32.gmra.mrb[62].mxu0 %vm681_vm2, %v10863_v16 }
 0x13c   : > { %9222 = vmatmul.mubr.msk.f32.gmra.mrb[28].mxu1 %vm681_vm2, %v10865_v17  ;;  %8843 = vmatprep.mubr.msk.f32.mxu0 %vm681_vm2, %v721_v18  ;;  %v9815_v18 = vpack.c.bf16 %v7785_v36, %v7784_v34  ;;  %v10919_v34 = vld [vmem:[#allocation2 + $0x30] sm:$0xff] }
 0x13d   : > { %9224 = vmatprep.mubr.msk.f32.mxu1 %vm681_vm2, %v3416_v14  ;;  %v10895_v14 = vld [vmem:[#allocation2 + $0x18] sm:$0xff]  ;;  %12450 = vst [vmem:[#allocation7_spill] sm:$0xff] %v10919_v34 }
 0x13e   : > { %12448 = vst [vmem:[#allocation5_spill] sm:$0xff] %v10895_v14 }
 0x13f   : > { %8844 = vmatmul.mubr.msk.f32.vlgmr.msra.gmra.mrb[32].mxu0 %vm681_vm2, %v722_v30  ;;  %v7819_v30 = vld [vmem:[%s12404_s3 + $0x148] sm:$0xff] }
 0x140   : > { %9225 = vmatmul.mubr.msk.f32.gmra.mrb[30].mxu1 %vm681_vm2, %v3417_v29  ;;  %8846 = vmatprep.mubr.msk.f32.mxu0 %vm681_vm2, %v10887_v47  ;;  %v7567_v29 = vld [vmem:[%s12404_s3 + $0x68] sm:$0xff] }
 0x141   : > { %9235 = vmatprep.mubr.msk.f32.mxu1 %vm681_vm2, %v10889_v48  ;;  %9758 = vmatpush3.bf16.msra.mxu0 %v10619_v50  ;;  %v7818_v50 = vld [vmem:[%s12404_s3 + $0x140] sm:$0xff]  ;;  %v10923_v36 = vpack.c.bf16 %v7567_v29, %v7566_v28  ;;  %v10947_v28 = vld [vmem:[#allocation2 + $0x50] sm:$0xff] }
 0x142   : > { %9760 = vmatprep.subr.bf16.mxu0 %v9759_v40  ;;  %v10927_v47 = vpack.c.bf16 %v7819_v30, %v7818_v50  ;;  %12454 = vst [vmem:[#allocation11_spill] sm:$0xff] %v10947_v28  ;;  %v10959_v29 = vld [vmem:[#allocation2 + $0x60] sm:$0xff]  ;;  %v10965_v50 = vld [vmem:[#allocation2 + $0x68] sm:$0xff]  ;;  %v10971_v30 = vld [vmem:[#allocation2 + $0x70] sm:$0xff] }
 0x143   : > { %8847 = vmatmul.mubr.msk.f32.gmra.mrb[34].mxu0 %vm681_vm2, %v10895_v14  ;;  %v10925_v14 = vld [vmem:[#allocation2 + $0x38] sm:$0xff]  ;;  %12456 = vst [vmem:[#allocation13_spill] sm:$0xff] %v10959_v29  ;;  %12457 = vst [vmem:[#allocation14_spill] sm:$0xff] %v10965_v50 }
 0x144   : > { %9236 = vmatmul.mubr.msk.f32.vlgmr.msra.gmra.mrb[0].mxu1 %vm681_vm2, %v10898_v26  ;;  %8849 = vmatprep.mubr.msk.f32.mxu0 %vm681_vm2, %v10889_v48  ;;  %12451 = vst [vmem:[#allocation8_spill] sm:$0xff] %v10925_v14  ;;  %12458 = vst [vmem:[#allocation15_spill] sm:$0xff] %v10971_v30  ;;  %v7602_v48 = vld [vmem:[%s12404_s3 + $0x80] sm:$0xff] }
 0x145   : > { %9814 = vmatpush3.bf16.msra.mxu1 %v10627_v53  ;;  %9238 = vmatprep.mubr.msk.f32.mxu1 %vm681_vm2, %v10919_v34  ;;  %v10933_v53 = vld [vmem:[#allocation2 + $0x40] sm:$0xff] }
 0x146   : > { %9816 = vmatprep.subr.bf16.mxu1 %v9815_v18  ;;  %9762 = vmatpush3.bf16.msra.mxu0 %v9759_v40  ;;  %12452 = vst [vmem:[#allocation9_spill] sm:$0xff] %v10933_v53  ;;  %v10940_v40 = vld [vmem:[#allocation2 + $0x48] sm:$0xff] }
 0x147   : > { %8850 = vmatmul.mubr.msk.f32.gmra.mrb[36].mxu0 %vm681_vm2, %v10898_v26  ;;  %9764 = vmatprep.subr.bf16.mxu0 %v10923_v36  ;;  %12453 = vst [vmem:[#allocation10_spill] sm:$0xff] %v10940_v40  ;;  %v1438_v26 = vld [vmem:[#allocation2 + $0x12] sm:$0xff] }
 0x148   : > { %9239 = vmatmul.mubr.msk.f32.gmra.mrb[2].mxu1 %vm681_vm2, %v10925_v14  ;;  %8852 = vmatprep.mubr.msk.f32.mxu0 %vm681_vm2, %v10919_v34 }
 0x149   : > { %9241 = vmatprep.mubr.msk.f32.mxu1 %vm681_vm2, %v10933_v53  ;;  %9818 = vmatpush3.bf16.msra.mxu1 %v9815_v18  ;;  %v10953_v18 = vld [vmem:[#allocation2 + $0x58] sm:$0xff] }
 0x14a   : > { %9820 = vmatprep.subr.bf16.mxu1 %v10927_v47  ;;  %12455 = vst [vmem:[#allocation12_spill] sm:$0xff] %v10953_v18 }
 0x14b   : > { %8853 = vmatmul.mubr.msk.f32.gmra.mrb[38].mxu0 %vm681_vm2, %v10925_v14  ;;  %v1437_v14 = vld [vmem:[#allocation2 + $0xa] sm:$0xff] }
 0x14c   : > { %9242 = vmatmul.mubr.msk.f32.gmra.mrb[4].mxu1 %vm681_vm2, %v10940_v40  ;;  %8855 = vmatprep.mubr.msk.f32.mxu0 %vm681_vm2, %v10933_v53  ;;  %v1436_v53 = vld [vmem:[#allocation2 + $0x2] sm:$0xff] }
 0x14d   : > { %9244 = vmatprep.mubr.msk.f32.mxu1 %vm681_vm2, %v10947_v28 }
 0x14f   : > { %8856 = vmatmul.mubr.msk.f32.gmra.mrb[40].mxu0 %vm681_vm2, %v10940_v40  ;;  %v11075_v40 = vld [vmem:[#allocation2 + $0xf8] sm:$0xff] }
 0x150   : > { %9245 = vmatmul.mubr.msk.f32.gmra.mrb[6].mxu1 %vm681_vm2, %v10953_v18  ;;  %8858 = vmatprep.mubr.msk.f32.mxu0 %vm681_vm2, %v10947_v28  ;;  %v10977_v28 = vld [vmem:[#allocation2 + $0x78] sm:$0xff]  ;;  %12476 = vst [vmem:[#allocation33_spill] sm:$0xff] %v11075_v40 }
 0x151   : > { %9247 = vmatprep.mubr.msk.f32.mxu1 %vm681_vm2, %v10959_v29  ;;  %12459 = vst [vmem:[#allocation16_spill] sm:$0xff] %v10977_v28 }
 0x153   : > { %8859 = vmatmul.mubr.msk.f32.gmra.mrb[42].mxu0 %vm681_vm2, %v10953_v18  ;;  %v10983_v18 = vld [vmem:[#allocation2 + $0x80] sm:$0xff] }
 0x154   : > { %9248 = vmatmul.mubr.msk.f32.gmra.mrb[8].mxu1 %vm681_vm2, %v10965_v50  ;;  %8861 = vmatprep.mubr.msk.f32.mxu0 %vm681_vm2, %v10959_v29  ;;  %12460 = vst [vmem:[#allocation17_spill] sm:$0xff] %v10983_v18  ;;  %v10989_v29 = vld [vmem:[#allocation2 + $0x88] sm:$0xff] }
 0x155   : > { %9250 = vmatprep.mubr.msk.f32.mxu1 %vm681_vm2, %v10971_v30  ;;  %12461 = vst [vmem:[#allocation18_spill] sm:$0xff] %v10989_v29 }
 0x157   : > { %8862 = vmatmul.mubr.msk.f32.gmra.mrb[44].mxu0 %vm681_vm2, %v10965_v50  ;;  %v10995_v50 = vld [vmem:[#allocation2 + $0x90] sm:$0xff] }
 0x158   : > { %9251 = vmatmul.mubr.msk.f32.gmra.mrb[10].mxu1 %vm681_vm2, %v10977_v28  ;;  %8864 = vmatprep.mubr.msk.f32.mxu0 %vm681_vm2, %v10971_v30  ;;  %12462 = vst [vmem:[#allocation19_spill] sm:$0xff] %v10995_v50  ;;  %v11001_v30 = vld [vmem:[#allocation2 + $0x98] sm:$0xff] }
 0x159   : > { %9253 = vmatprep.mubr.msk.f32.mxu1 %vm681_vm2, %v10983_v18  ;;  %12463 = vst [vmem:[#allocation20_spill] sm:$0xff] %v11001_v30 }
 0x15b   : > { %8865 = vmatmul.mubr.msk.f32.gmra.mrb[46].mxu0 %vm681_vm2, %v10977_v28  ;;  %v11007_v28 = vld [vmem:[#allocation2 + $0xa0] sm:$0xff] }
 0x15c   : > { %9254 = vmatmul.mubr.msk.f32.gmra.mrb[12].mxu1 %vm681_vm2, %v10989_v29  ;;  %8867 = vmatprep.mubr.msk.f32.mxu0 %vm681_vm2, %v10983_v18  ;;  %12464 = vst [vmem:[#allocation21_spill] sm:$0xff] %v11007_v28  ;;  %v11013_v18 = vld [vmem:[#allocation2 + $0xa8] sm:$0xff] }
 0x15d   : > { %9256 = vmatprep.mubr.msk.f32.mxu1 %vm681_vm2, %v10995_v50  ;;  %12465 = vst [vmem:[#allocation22_spill] sm:$0xff] %v11013_v18 }
 0x15f   : > { %8868 = vmatmul.mubr.msk.f32.gmra.mrb[48].mxu0 %vm681_vm2, %v10989_v29  ;;  %v11019_v29 = vld [vmem:[#allocation2 + $0xb0] sm:$0xff] }
 0x160   : > { %9257 = vmatmul.mubr.msk.f32.gmra.mrb[14].mxu1 %vm681_vm2, %v11001_v30  ;;  %8870 = vmatprep.mubr.msk.f32.mxu0 %vm681_vm2, %v10995_v50  ;;  %12466 = vst [vmem:[#allocation23_spill] sm:$0xff] %v11019_v29  ;;  %v11025_v50 = vld [vmem:[#allocation2 + $0xb8] sm:$0xff] }
 0x161   : > { %9259 = vmatprep.mubr.msk.f32.mxu1 %vm681_vm2, %v11007_v28  ;;  %12467 = vst [vmem:[#allocation24_spill] sm:$0xff] %v11025_v50 }
 0x163   : > { %8871 = vmatmul.mubr.msk.f32.gmra.mrb[50].mxu0 %vm681_vm2, %v11001_v30  ;;  %v11031_v30 = vld [vmem:[#allocation2 + $0xc0] sm:$0xff] }
 0x164   : > { %9260 = vmatmul.mubr.msk.f32.gmra.mrb[16].mxu1 %vm681_vm2, %v11013_v18  ;;  %8873 = vmatprep.mubr.msk.f32.mxu0 %vm681_vm2, %v11007_v28  ;;  %12468 = vst [vmem:[#allocation25_spill] sm:$0xff] %v11031_v30  ;;  %v11037_v28 = vld [vmem:[#allocation2 + $0xc8] sm:$0xff] }
 0x165   : > { %9262 = vmatprep.mubr.msk.f32.mxu1 %vm681_vm2, %v11019_v29  ;;  %12469 = vst [vmem:[#allocation26_spill] sm:$0xff] %v11037_v28 }
 0x167   : > { %8874 = vmatmul.mubr.msk.f32.gmra.mrb[52].mxu0 %vm681_vm2, %v11013_v18  ;;  %v11043_v18 = vld [vmem:[#allocation2 + $0xd0] sm:$0xff] }
 0x168   : > { %9263 = vmatmul.mubr.msk.f32.gmra.mrb[18].mxu1 %vm681_vm2, %v11025_v50  ;;  %8876 = vmatprep.mubr.msk.f32.mxu0 %vm681_vm2, %v11019_v29  ;;  %12470 = vst [vmem:[#allocation27_spill] sm:$0xff] %v11043_v18  ;;  %v11049_v29 = vld [vmem:[#allocation2 + $0xd8] sm:$0xff] }
 0x169   : > { %9265 = vmatprep.mubr.msk.f32.mxu1 %vm681_vm2, %v11031_v30  ;;  %12471 = vst [vmem:[#allocation28_spill] sm:$0xff] %v11049_v29 }
 0x16b   : > { %8877 = vmatmul.mubr.msk.f32.gmra.mrb[54].mxu0 %vm681_vm2, %v11025_v50  ;;  %v11055_v50 = vld [vmem:[#allocation2 + $0xe0] sm:$0xff] }
 0x16c   : > { %9266 = vmatmul.mubr.msk.f32.gmra.mrb[20].mxu1 %vm681_vm2, %v11037_v28  ;;  %8879 = vmatprep.mubr.msk.f32.mxu0 %vm681_vm2, %v11031_v30  ;;  %12472 = vst [vmem:[#allocation29_spill] sm:$0xff] %v11055_v50  ;;  %v11061_v30 = vld [vmem:[#allocation2 + $0xe8] sm:$0xff] }
 0x16d   : > { %9268 = vmatprep.mubr.msk.f32.mxu1 %vm681_vm2, %v11043_v18  ;;  %12473 = vst [vmem:[#allocation30_spill] sm:$0xff] %v11061_v30 }
 0x16f   : > { %8880 = vmatmul.mubr.msk.f32.gmra.mrb[56].mxu0 %vm681_vm2, %v11037_v28  ;;  %v11067_v28 = vld [vmem:[#allocation2 + $0xf0] sm:$0xff] }
 0x170   : > { %9269 = vmatmul.mubr.msk.f32.gmra.mrb[22].mxu1 %vm681_vm2, %v11049_v29  ;;  %8882 = vmatprep.mubr.msk.f32.mxu0 %vm681_vm2, %v11043_v18  ;;  %12474 = vst [vmem:[#allocation31_spill] sm:$0xff] %v11067_v28  ;;  %v11073_v18 = vld [vmem:[#allocation2 + $0x100] sm:$0xff] }
 0x171   : > { %9271 = vmatprep.mubr.msk.f32.mxu1 %vm681_vm2, %v11055_v50  ;;  %12475 = vst [vmem:[#allocation32_spill] sm:$0xff] %v11073_v18 }
 0x173   : > { %8883 = vmatmul.mubr.msk.f32.gmra.mrb[58].mxu0 %vm681_vm2, %v11049_v29  ;;  %v3806_v29 = vld [vmem:[#allocation2 + $0x110] sm:$0xff] }
 0x174   : > { %9272 = vmatmul.mubr.msk.f32.gmra.mrb[24].mxu1 %vm681_vm2, %v11061_v30  ;;  %8885 = vmatprep.mubr.msk.f32.mxu0 %vm681_vm2, %v11055_v50  ;;  %v11085_v50 = vld [vmem:[#allocation2 + $0x108] sm:$0xff] }
 0x175   : > { %9274 = vmatprep.mubr.msk.f32.mxu1 %vm681_vm2, %v11067_v28  ;;  %12477 = vst [vmem:[#allocation34_spill] sm:$0xff] %v11085_v50 }
 0x177   : > { %8886 = vmatmul.mubr.msk.f32.gmra.mrb[60].mxu0 %vm681_vm2, %v11061_v30  ;;  %v7568_v30 = vld [vmem:[%s12404_s3 + $0x70] sm:$0xff] }
 0x178   : > { %9275 = vmatmul.mubr.msk.f32.gmra.mrb[26].mxu1 %vm681_vm2, %v11075_v40  ;;  %8888 = vmatprep.mubr.msk.f32.mxu0 %vm681_vm2, %v11067_v28  ;;  %v7569_v28 = vld [vmem:[%s12404_s3 + $0x78] sm:$0xff] }
 0x179   : > { %9277 = vmatprep.mubr.msk.f32.mxu1 %vm681_vm2, %v11073_v18  ;;  %v3807_v18 = vld [vmem:[#allocation2 + $0x118] sm:$0xff]  ;;  %v9767_v34 = vpack.c.bf16 %v7569_v28, %v7568_v30 }
 0x17a   : > { %v7605_v30 = vld [vmem:[%s12404_s3 + $0x98] sm:$0xff] }
 0x17b   : > { %8889 = vmatmul.mubr.msk.f32.gmra.mrb[62].mxu0 %vm681_vm2, %v11075_v40  ;;  %v7820_v40 = vld [vmem:[%s12404_s3 + $0x150] sm:$0xff] }
 0x17c   : > { %9278 = vmatmul.mubr.msk.f32.gmra.mrb[28].mxu1 %vm681_vm2, %v11085_v50  ;;  %8899 = vmatprep.mubr.msk.f32.mxu0 %vm681_vm2, %v1436_v53  ;;  %v7821_v50 = vld [vmem:[%s12404_s3 + $0x158] sm:$0xff] }
 0x17d   : > { %9280 = vmatprep.mubr.msk.f32.mxu1 %vm681_vm2, %v3806_v29  ;;  %v9823_v53 = vpack.c.bf16 %v7821_v50, %v7820_v40  ;;  %v1439_v29 = vld [vmem:[#allocation2 + $0x1a] sm:$0xff]  ;;  %v11135_v40 = vld [vmem:[#allocation2 + $0x2a] sm:$0xff] }
 0x17e   : > { %v7604_v50 = vld [vmem:[%s12404_s3 + $0x90] sm:$0xff] }
 0x17f   : > { %8900 = vmatmul.mubr.msk.f32.vlgmr.msra.gmra.mrb[32].mxu0 %vm681_vm2, %v1437_v14  ;;  %v7603_v14 = vld [vmem:[%s12404_s3 + $0x88] sm:$0xff] }
 0x180   : > { %9281 = vmatmul.mubr.msk.f32.gmra.mrb[30].mxu1 %vm681_vm2, %v3807_v18  ;;  %8902 = vmatprep.mubr.msk.f32.mxu0 %vm681_vm2, %v1438_v26  ;;  %v11120_v26 = vld [vmem:[#allocation2 + $0x22] sm:$0xff]  ;;  %v11299_v18 = vld [vmem:[#allocation2 + $0xfa] sm:$0xff] }
 0x181   : > { %9291 = vmatprep.mubr.msk.f32.mxu1 %vm681_vm2, %v10603_v42  ;;  %9766 = vmatpush3.bf16.msra.mxu0 %v10923_v36  ;;  %v7854_v42 = vld [vmem:[%s12404_s3 + $0x160] sm:$0xff]  ;;  %v7855_v36 = vld [vmem:[%s12404_s3 + $0x168] sm:$0xff] }
 0x182   : > { %9768 = vmatprep.subr.bf16.mxu0 %v9767_v34  ;;  %v11137_v28 = vpack.c.bf16 %v7855_v36, %v7854_v42  ;;  %v7857_v42 = vld [vmem:[%s12404_s3 + $0x178] sm:$0xff]  ;;  %v9775_v36 = vpack.c.bf16 %v7605_v30, %v7604_v50  ;;  %v7639_v50 = vld [vmem:[%s12404_s3 + $0xa8] sm:$0xff] }
 0x183   : > { %8903 = vmatmul.mubr.msk.f32.gmra.mrb[34].mxu0 %vm681_vm2, %v1439_v29  ;;  %v1827_v29 = vld [vmem:[#allocation2 + $0xb] sm:$0xff] }
 0x184   : > { %9292 = vmatmul.mubr.msk.f32.vlgmr.msra.gmra.mrb[0].mxu1 %vm681_vm2, %v10623_v54  ;;  %8905 = vmatprep.mubr.msk.f32.mxu0 %vm681_vm2, %v11120_v26  ;;  %v11133_v54 = vpack.c.bf16 %v7603_v14, %v7602_v48  ;;  %v11169_v48 = vld [vmem:[#allocation2 + $0x52] sm:$0xff] }
 0x185   : > { %9822 = vmatpush3.bf16.msra.mxu1 %v10927_v47  ;;  %9294 = vmatprep.mubr.msk.f32.mxu1 %vm681_vm2, %v10625_v56  ;;  %v11143_v47 = vld [vmem:[#allocation2 + $0x32] sm:$0xff]  ;;  %v11150_v56 = vld [vmem:[#allocation2 + $0x3a] sm:$0xff] }
 0x186   : > { %9824 = vmatprep.subr.bf16.mxu1 %v9823_v53  ;;  %9770 = vmatpush3.bf16.msra.mxu0 %v9767_v34  ;;  %v11285_v34 = vld [vmem:[#allocation2 + $0xea] sm:$0xff] }
 0x187   : > { %8906 = vmatmul.mubr.msk.f32.gmra.mrb[36].mxu0 %vm681_vm2, %v11135_v40  ;;  %9772 = vmatprep.subr.bf16.mxu0 %v11133_v54  ;;  %v7856_v14 = vld [vmem:[%s12404_s3 + $0x170] sm:$0xff] }
 0x188   : > { %9295 = vmatmul.mubr.msk.f32.gmra.mrb[2].mxu1 %vm681_vm2, %v10640_v1  ;;  %8908 = vmatprep.mubr.msk.f32.mxu0 %vm681_vm2, %v11143_v47  ;;  %v11157_v1 = vld [vmem:[#allocation2 + $0x42] sm:$0xff]  ;;  %v11349_v30 = vld [vmem:[#allocation2 + $0x2b] sm:$0xff] }
 0x189   : > { %9297 = vmatprep.mubr.msk.f32.mxu1 %vm681_vm2, %v10642_v3  ;;  %9826 = vmatpush3.bf16.msra.mxu1 %v9823_v53  ;;  %v11163_v3 = vld [vmem:[#allocation2 + $0x4a] sm:$0xff]  ;;  %v4197_v53 = vld [vmem:[#allocation2 + $0x119] sm:$0xff] }
 0x18a   : > { %9828 = vmatprep.subr.bf16.mxu1 %v11137_v28 }
 0x18b   : > { %8909 = vmatmul.mubr.msk.f32.gmra.mrb[38].mxu0 %vm681_vm2, %v11150_v56 }
 0x18c   : > { %9298 = vmatmul.mubr.msk.f32.gmra.mrb[4].mxu1 %vm681_vm2, %v10655_v11  ;;  %8911 = vmatprep.mubr.msk.f32.mxu0 %vm681_vm2, %v11157_v1  ;;  %v11175_v11 = vld [vmem:[#allocation2 + $0x5a] sm:$0xff] }
 0x18d   : > { %9300 = vmatprep.mubr.msk.f32.mxu1 %vm681_vm2, %v10659_v13  ;;  %v11181_v13 = vld [vmem:[#allocation2 + $0x62] sm:$0xff] }
 0x18f   : > { %8912 = vmatmul.mubr.msk.f32.gmra.mrb[40].mxu0 %vm681_vm2, %v11163_v3 }
 0x190   : > { %9301 = vmatmul.mubr.msk.f32.gmra.mrb[6].mxu1 %vm681_vm2, %v10675_v21  ;;  %8914 = vmatprep.mubr.msk.f32.mxu0 %vm681_vm2, %v11169_v48  ;;  %v11187_v21 = vld [vmem:[#allocation2 + $0x6a] sm:$0xff] }
 0x191   : > { %9303 = vmatprep.mubr.msk.f32.mxu1 %vm681_vm2, %v10679_v23  ;;  %v11193_v23 = vld [vmem:[#allocation2 + $0x72] sm:$0xff] }
 0x193   : > { %8915 = vmatmul.mubr.msk.f32.gmra.mrb[42].mxu0 %vm681_vm2, %v11175_v11 }
 0x194   : > { %9304 = vmatmul.mubr.msk.f32.gmra.mrb[8].mxu1 %vm681_vm2, %v10695_v31  ;;  %8917 = vmatprep.mubr.msk.f32.mxu0 %vm681_vm2, %v11181_v13  ;;  %v11199_v31 = vld [vmem:[#allocation2 + $0x7a] sm:$0xff] }
 0x195   : > { %9306 = vmatprep.mubr.msk.f32.mxu1 %vm681_vm2, %v10699_v33  ;;  %v11205_v33 = vld [vmem:[#allocation2 + $0x82] sm:$0xff] }
 0x197   : > { %8918 = vmatmul.mubr.msk.f32.gmra.mrb[44].mxu0 %vm681_vm2, %v11187_v21 }
 0x198   : > { %9307 = vmatmul.mubr.msk.f32.gmra.mrb[10].mxu1 %vm681_vm2, %v10715_v41  ;;  %8920 = vmatprep.mubr.msk.f32.mxu0 %vm681_vm2, %v11193_v23  ;;  %v11211_v41 = vld [vmem:[#allocation2 + $0x8a] sm:$0xff] }
 0x199   : > { %9309 = vmatprep.mubr.msk.f32.mxu1 %vm681_vm2, %v10719_v44  ;;  %v11217_v44 = vld [vmem:[#allocation2 + $0x92] sm:$0xff] }
 0x19b   : > { %8921 = vmatmul.mubr.msk.f32.gmra.mrb[46].mxu0 %vm681_vm2, %v11199_v31 }
 0x19c   : > { %9310 = vmatmul.mubr.msk.f32.gmra.mrb[12].mxu1 %vm681_vm2, %v10735_v55  ;;  %8923 = vmatprep.mubr.msk.f32.mxu0 %vm681_vm2, %v11205_v33  ;;  %v11223_v55 = vld [vmem:[#allocation2 + $0x9a] sm:$0xff] }
 0x19d   : > { %9312 = vmatprep.mubr.msk.f32.mxu1 %vm681_vm2, %v10739_v59  ;;  %v11229_v59 = vld [vmem:[#allocation2 + $0xa2] sm:$0xff] }
 0x19f   : > { %8924 = vmatmul.mubr.msk.f32.gmra.mrb[48].mxu0 %vm681_vm2, %v11211_v41 }
 0x1a0   : > { %9313 = vmatmul.mubr.msk.f32.gmra.mrb[14].mxu1 %vm681_vm2, %v10755_v5  ;;  %8926 = vmatprep.mubr.msk.f32.mxu0 %vm681_vm2, %v11217_v44  ;;  %v11235_v5 = vld [vmem:[#allocation2 + $0xaa] sm:$0xff] }
 0x1a1   : > { %9315 = vmatprep.mubr.msk.f32.mxu1 %vm681_vm2, %v10759_v7  ;;  %v11241_v7 = vld [vmem:[#allocation2 + $0xb2] sm:$0xff] }
 0x1a3   : > { %8927 = vmatmul.mubr.msk.f32.gmra.mrb[50].mxu0 %vm681_vm2, %v11223_v55 }
 0x1a4   : > { %9316 = vmatmul.mubr.msk.f32.gmra.mrb[16].mxu1 %vm681_vm2, %v10775_v19  ;;  %8929 = vmatprep.mubr.msk.f32.mxu0 %vm681_vm2, %v11229_v59  ;;  %v11247_v19 = vld [vmem:[#allocation2 + $0xba] sm:$0xff] }
 0x1a5   : > { %9318 = vmatprep.mubr.msk.f32.mxu1 %vm681_vm2, %v10779_v24  ;;  %v11253_v24 = vld [vmem:[#allocation2 + $0xc2] sm:$0xff] }
 0x1a7   : > { %8930 = vmatmul.mubr.msk.f32.gmra.mrb[52].mxu0 %vm681_vm2, %v11235_v5 }
 0x1a8   : > { %9319 = vmatmul.mubr.msk.f32.gmra.mrb[18].mxu1 %vm681_vm2, %v10795_v37  ;;  %8932 = vmatprep.mubr.msk.f32.mxu0 %vm681_vm2, %v11241_v7  ;;  %v11259_v37 = vld [vmem:[#allocation2 + $0xca] sm:$0xff] }
 0x1a9   : > { %9321 = vmatprep.mubr.msk.f32.mxu1 %vm681_vm2, %v10799_v39  ;;  %v11265_v39 = vld [vmem:[#allocation2 + $0xd2] sm:$0xff] }
 0x1ab   : > { %8933 = vmatmul.mubr.msk.f32.gmra.mrb[54].mxu0 %vm681_vm2, %v11247_v19 }
 0x1ac   : > { %9322 = vmatmul.mubr.msk.f32.gmra.mrb[20].mxu1 %vm681_vm2, %v10814_v49  ;;  %8935 = vmatprep.mubr.msk.f32.mxu0 %vm681_vm2, %v11253_v24  ;;  %v11271_v49 = vld [vmem:[#allocation2 + $0xda] sm:$0xff] }
 0x1ad   : > { %9324 = vmatprep.mubr.msk.f32.mxu1 %vm681_vm2, %v10818_v51  ;;  %v11277_v51 = vld [vmem:[#allocation2 + $0xe2] sm:$0xff] }
 0x1af   : > { %8936 = vmatmul.mubr.msk.f32.gmra.mrb[56].mxu0 %vm681_vm2, %v11259_v37 }
 0x1b0   : > { %9325 = vmatmul.mubr.msk.f32.gmra.mrb[22].mxu1 %vm681_vm2, %v10831_v60  ;;  %8938 = vmatprep.mubr.msk.f32.mxu0 %vm681_vm2, %v11265_v39  ;;  %v11283_v60 = vld [vmem:[#allocation2 + $0x101] sm:$0xff] }
 0x1b1   : > { %9327 = vmatprep.mubr.msk.f32.mxu1 %vm681_vm2, %v10835_v63  ;;  %12478 = vst [vmem:[#allocation35_spill] sm:$0xff] %v11283_v60  ;;  %v11291_v63 = vld [vmem:[#allocation2 + $0xf2] sm:$0xff] }
 0x1b3   : > { %8939 = vmatmul.mubr.msk.f32.gmra.mrb[58].mxu0 %vm681_vm2, %v11271_v49 }
 0x1b4   : > { %9328 = vmatmul.mubr.msk.f32.gmra.mrb[24].mxu1 %vm681_vm2, %v10847_v2  ;;  %8941 = vmatprep.mubr.msk.f32.mxu0 %vm681_vm2, %v11277_v51  ;;  %v11297_v2 = vld [vmem:[#allocation2 + $0x109] sm:$0xff] }
 0x1b5   : > { %9330 = vmatprep.mubr.msk.f32.mxu1 %vm681_vm2, %v10851_v8  ;;  %12479 = vst [vmem:[#allocation36_spill] sm:$0xff] %v11297_v2  ;;  %v4196_v8 = vld [vmem:[#allocation2 + $0x111] sm:$0xff] }
 0x1b7   : > { %8942 = vmatmul.mubr.msk.f32.gmra.mrb[60].mxu0 %vm681_vm2, %v11285_v34 }
 0x1b8   : > { %9331 = vmatmul.mubr.msk.f32.gmra.mrb[26].mxu1 %vm681_vm2, %v10863_v16  ;;  %8944 = vmatprep.mubr.msk.f32.mxu0 %vm681_vm2, %v11291_v63  ;;  %v1826_v16 = vld [vmem:[#allocation2 + $0x3] sm:$0xff] }
 0x1b9   : > { %9333 = vmatprep.mubr.msk.f32.mxu1 %vm681_vm2, %v11283_v60  ;;  %v7638_v60 = vld [vmem:[%s12404_s3 + $0xa0] sm:$0xff] }
 0x1bb   : > { %8945 = vmatmul.mubr.msk.f32.gmra.mrb[62].mxu0 %vm681_vm2, %v11299_v18 }
 0x1bc   : > { %9334 = vmatmul.mubr.msk.f32.gmra.mrb[28].mxu1 %vm681_vm2, %v11297_v2  ;;  %8955 = vmatprep.mubr.msk.f32.mxu0 %vm681_vm2, %v1826_v16  ;;  %v1828_v2 = vld [vmem:[#allocation2 + $0x13] sm:$0xff]  ;;  %v1829_v16 = vld [vmem:[#allocation2 + $0x1b] sm:$0xff] }
 0x1bd   : > { %9336 = vmatprep.mubr.msk.f32.mxu1 %vm681_vm2, %v4196_v8  ;;  %v9831_v8 = vpack.c.bf16 %v7857_v42, %v7856_v14  ;;  %v11615_v14 = vld [vmem:[#allocation2 + $0xb3] sm:$0xff] }
 0x1be   : > { %v12500_v42 = vld [vmem:[#allocation23_spill] sm:$0xff] }
 0x1bf   : > { %8956 = vmatmul.mubr.msk.f32.vlgmr.msra.gmra.mrb[32].mxu0 %vm681_vm2, %v1827_v29  ;;  %v12499_v29 = vld [vmem:[#allocation22_spill] sm:$0xff] }
 0x1c0   : > { %9337 = vmatmul.mubr.msk.f32.gmra.mrb[30].mxu1 %vm681_vm2, %v4197_v53  ;;  %8958 = vmatprep.mubr.msk.f32.mxu0 %vm681_vm2, %v1828_v2  ;;  %v11334_v2 = vld [vmem:[#allocation2 + $0x23] sm:$0xff] }
 0x1c1   : > { %9347 = vmatprep.mubr.msk.f32.mxu1 %vm681_vm2, %v11120_v26  ;;  %9774 = vmatpush3.bf16.msra.mxu0 %v11133_v54  ;;  %v7890_v26 = vld [vmem:[%s12404_s3 + $0x180] sm:$0xff]  ;;  %v7891_v54 = vld [vmem:[%s12404_s3 + $0x188] sm:$0xff] }
 0x1c2   : > { %9776 = vmatprep.subr.bf16.mxu0 %v9775_v36  ;;  %v11351_v53 = vpack.c.bf16 %v7891_v54, %v7890_v26  ;;  %v12503_v26 = vld [vmem:[#allocation26_spill] sm:$0xff] }
 0x1c3   : > { %8959 = vmatmul.mubr.msk.f32.gmra.mrb[34].mxu0 %vm681_vm2, %v1829_v16  ;;  %v11627_v16 = vld [vmem:[#allocation2 + $0xc3] sm:$0xff]  ;;  %v11639_v54 = vld [vmem:[#allocation2 + $0xd3] sm:$0xff] }
 0x1c4   : > { %9348 = vmatmul.mubr.msk.f32.vlgmr.msra.gmra.mrb[0].mxu1 %vm681_vm2, %v11135_v40  ;;  %8961 = vmatprep.mubr.msk.f32.mxu0 %vm681_vm2, %v11334_v2  ;;  %v11347_v40 = vpack.c.bf16 %v7639_v50, %v7638_v60  ;;  %v12497_v60 = vld [vmem:[#allocation20_spill] sm:$0xff]  ;;  %v12502_v50 = vld [vmem:[#allocation25_spill] sm:$0xff] }
 0x1c5   : > { %9830 = vmatpush3.bf16.msra.mxu1 %v11137_v28  ;;  %9350 = vmatprep.mubr.msk.f32.mxu1 %vm681_vm2, %v11143_v47  ;;  %v11357_v28 = vld [vmem:[#allocation2 + $0x33] sm:$0xff]  ;;  %v11364_v47 = vld [vmem:[#allocation2 + $0x3b] sm:$0xff] }
 0x1c6   : > { %9832 = vmatprep.subr.bf16.mxu1 %v9831_v8  ;;  %9778 = vmatpush3.bf16.msra.mxu0 %v9775_v36  ;;  %v11621_v36 = vld [vmem:[#allocation2 + $0xbb] sm:$0xff] }
 0x1c7   : > { %8962 = vmatmul.mubr.msk.f32.gmra.mrb[36].mxu0 %vm681_vm2, %v11349_v30  ;;  %9780 = vmatprep.subr.bf16.mxu0 %v11347_v40 }
 0x1c8   : > { %9351 = vmatmul.mubr.msk.f32.gmra.mrb[2].mxu1 %vm681_vm2, %v11150_v56  ;;  %8964 = vmatprep.mubr.msk.f32.mxu0 %vm681_vm2, %v11357_v28  ;;  %v11371_v56 = vld [vmem:[#allocation2 + $0x43] sm:$0xff] }
 0x1c9   : > { %9353 = vmatprep.mubr.msk.f32.mxu1 %vm681_vm2, %v11157_v1  ;;  %9834 = vmatpush3.bf16.msra.mxu1 %v9831_v8  ;;  %v11536_v1 = vld [vmem:[#allocation2 + $0x4b] sm:$0xff]  ;;  %v12501_v8 = vld [vmem:[#allocation24_spill] sm:$0xff] }
 0x1ca   : > { %9836 = vmatprep.subr.bf16.mxu1 %v11351_v53 }
 0x1cb   : > { %8965 = vmatmul.mubr.msk.f32.gmra.mrb[38].mxu0 %vm681_vm2, %v11364_v47 }
 0x1cc   : > { %9354 = vmatmul.mubr.msk.f32.gmra.mrb[4].mxu1 %vm681_vm2, %v11163_v3  ;;  %8967 = vmatprep.mubr.msk.f32.mxu0 %vm681_vm2, %v11371_v56  ;;  %v12487_v3 = vld [vmem:[#allocation10_spill] sm:$0xff] }
 0x1cd   : > { %9356 = vmatprep.mubr.msk.f32.mxu1 %vm681_vm2, %v11169_v48  ;;  %v11543_v48 = vld [vmem:[#allocation2 + $0x53] sm:$0xff] }
 0x1cf   : > { %8968 = vmatmul.mubr.msk.f32.gmra.mrb[40].mxu0 %vm681_vm2, %v10657_v12  ;;  %v11457_v12 = vld [vmem:[#allocation2 + $0x102] sm:$0xff] }
 0x1d0   : > { %9357 = vmatmul.mubr.msk.f32.gmra.mrb[6].mxu1 %vm681_vm2, %v11175_v11  ;;  %8970 = vmatprep.mubr.msk.f32.mxu0 %vm681_vm2, %v10667_v15  ;;  %v11467_v15 = vld [vmem:[#allocation2 + $0x10a] sm:$0xff]  ;;  %v12488_v11 = vld [vmem:[#allocation11_spill] sm:$0xff] }
 0x1d1   : > { %9359 = vmatprep.mubr.msk.f32.mxu1 %vm681_vm2, %v11181_v13  ;;  %v11549_v13 = vld [vmem:[#allocation2 + $0x5b] sm:$0xff] }
 0x1d3   : > { %8971 = vmatmul.mubr.msk.f32.gmra.mrb[42].mxu0 %vm681_vm2, %v10677_v22  ;;  %v11469_v22 = vld [vmem:[#allocation2 + $0x112] sm:$0xff] }
 0x1d4   : > { %9360 = vmatmul.mubr.msk.f32.gmra.mrb[8].mxu1 %vm681_vm2, %v11187_v21  ;;  %8973 = vmatprep.mubr.msk.f32.mxu0 %vm681_vm2, %v10687_v25  ;;  %v7640_v25 = vld [vmem:[%s12404_s3 + $0xb0] sm:$0xff]  ;;  %v12489_v21 = vld [vmem:[#allocation12_spill] sm:$0xff] }
 0x1d5   : > { %9362 = vmatprep.mubr.msk.f32.mxu1 %vm681_vm2, %v11193_v23  ;;  %v11555_v23 = vld [vmem:[#allocation2 + $0x63] sm:$0xff] }
 0x1d7   : > { %8974 = vmatmul.mubr.msk.f32.gmra.mrb[44].mxu0 %vm681_vm2, %v10697_v32  ;;  %v7641_v32 = vld [vmem:[%s12404_s3 + $0xb8] sm:$0xff] }
 0x1d8   : > { %9363 = vmatmul.mubr.msk.f32.gmra.mrb[10].mxu1 %vm681_vm2, %v11199_v31  ;;  %8976 = vmatprep.mubr.msk.f32.mxu0 %vm681_vm2, %v10707_v35  ;;  %v12480_v35 = vld [vmem:[#allocation3_spill] sm:$0xff]  ;;  %v12490_v31 = vld [vmem:[#allocation13_spill] sm:$0xff] }
 0x1d9   : > { %9365 = vmatprep.mubr.msk.f32.mxu1 %vm681_vm2, %v11205_v33  ;;  %v11561_v33 = vld [vmem:[#allocation2 + $0x6b] sm:$0xff] }
 0x1db   : > { %8977 = vmatmul.mubr.msk.f32.gmra.mrb[46].mxu0 %vm681_vm2, %v10717_v43  ;;  %v11485_v43 = vld [vmem:[#allocation2 + $0x11a] sm:$0xff] }
 0x1dc   : > { %9366 = vmatmul.mubr.msk.f32.gmra.mrb[12].mxu1 %vm681_vm2, %v11211_v41  ;;  %8979 = vmatprep.mubr.msk.f32.mxu0 %vm681_vm2, %v10727_v46  ;;  %v7892_v46 = vld [vmem:[%s12404_s3 + $0x190] sm:$0xff] }
 0x1dd   : > { %9368 = vmatprep.mubr.msk.f32.mxu1 %vm681_vm2, %v11217_v44  ;;  %v12491_v41 = vld [vmem:[#allocation14_spill] sm:$0xff] }
 0x1de   : > { %v11567_v44 = vld [vmem:[#allocation2 + $0x73] sm:$0xff] }
 0x1df   : > { %8980 = vmatmul.mubr.msk.f32.gmra.mrb[48].mxu0 %vm681_vm2, %v10737_v57  ;;  %v7893_v57 = vld [vmem:[%s12404_s3 + $0x198] sm:$0xff] }
 0x1e0   : > { %9369 = vmatmul.mubr.msk.f32.gmra.mrb[14].mxu1 %vm681_vm2, %v11223_v55  ;;  %8982 = vmatprep.mubr.msk.f32.mxu0 %vm681_vm2, %v10747_v61  ;;  %v9783_v61 = vpack.c.bf16 %v7641_v32, %v7640_v25  ;;  %v12492_v55 = vld [vmem:[#allocation15_spill] sm:$0xff]  ;;  %v12507_v25 = vld [vmem:[#allocation30_spill] sm:$0xff] }
 0x1e1   : > { %9371 = vmatprep.mubr.msk.f32.mxu1 %vm681_vm2, %v11229_v59  ;;  %v11573_v59 = vld [vmem:[#allocation2 + $0x7b] sm:$0xff]  ;;  %v11663_v32 = vld [vmem:[#allocation2 + $0xf3] sm:$0xff] }
 0x1e3   : > { %8983 = vmatmul.mubr.msk.f32.gmra.mrb[50].mxu0 %vm681_vm2, %v10757_v6  ;;  %v12481_v6 = vld [vmem:[#allocation5_spill] sm:$0xff] }
 0x1e4   : > { %9372 = vmatmul.mubr.msk.f32.gmra.mrb[16].mxu1 %vm681_vm2, %v11235_v5  ;;  %8985 = vmatprep.mubr.msk.f32.mxu0 %vm681_vm2, %v10767_v9  ;;  %v12482_v9 = vld [vmem:[#allocation4_spill] sm:$0xff] }
 0x1e5   : > { %9374 = vmatprep.mubr.msk.f32.mxu1 %vm681_vm2, %v11241_v7  ;;  %v12493_v5 = vld [vmem:[#allocation16_spill] sm:$0xff] }
 0x1e6   : > { %v11579_v7 = vld [vmem:[#allocation2 + $0x83] sm:$0xff] }
 0x1e7   : > { %8986 = vmatmul.mubr.msk.f32.gmra.mrb[52].mxu0 %vm681_vm2, %v10777_v20  ;;  %v9839_v20 = vpack.c.bf16 %v7893_v57, %v7892_v46  ;;  %v11669_v46 = vld [vmem:[#allocation2 + $0x103] sm:$0xff]  ;;  %v11671_v57 = vld [vmem:[#allocation2 + $0xfb] sm:$0xff] }
 0x1e8   : > { %9375 = vmatmul.mubr.msk.f32.gmra.mrb[18].mxu1 %vm681_vm2, %v11247_v19  ;;  %8988 = vmatprep.mubr.msk.f32.mxu0 %vm681_vm2, %v10787_v27  ;;  %v7674_v27 = vld [vmem:[%s12404_s3 + $0xc0] sm:$0xff]  ;;  %v12494_v19 = vld [vmem:[#allocation17_spill] sm:$0xff] }
 0x1e9   : > { %9377 = vmatprep.mubr.msk.f32.mxu1 %vm681_vm2, %v11253_v24  ;;  %v11585_v24 = vld [vmem:[#allocation2 + $0x8b] sm:$0xff] }
 0x1eb   : > { %8989 = vmatmul.mubr.msk.f32.gmra.mrb[54].mxu0 %vm681_vm2, %v10797_v38  ;;  %v7675_v38 = vld [vmem:[%s12404_s3 + $0xc8] sm:$0xff] }
 0x1ec   : > { %9378 = vmatmul.mubr.msk.f32.gmra.mrb[20].mxu1 %vm681_vm2, %v11259_v37  ;;  %8991 = vmatprep.mubr.msk.f32.mxu0 %vm681_vm2, %v10807_v45  ;;  %v12483_v45 = vld [vmem:[#allocation6_spill] sm:$0xff] }
 0x1ed   : > { %9380 = vmatprep.mubr.msk.f32.mxu1 %vm681_vm2, %v11265_v39  ;;  %v12495_v37 = vld [vmem:[#allocation18_spill] sm:$0xff] }
 0x1ee   : > { %v11591_v39 = vld [vmem:[#allocation2 + $0x93] sm:$0xff] }
 0x1ef   : > { %8992 = vmatmul.mubr.msk.f32.gmra.mrb[56].mxu0 %vm681_vm2, %v10816_v58  ;;  %v7926_v58 = vld [vmem:[%s12404_s3 + $0x1a0] sm:$0xff] }
 0x1f0   : > { %9381 = vmatmul.mubr.msk.f32.gmra.mrb[22].mxu1 %vm681_vm2, %v11271_v49  ;;  %8994 = vmatprep.mubr.msk.f32.mxu0 %vm681_vm2, %v10825_v52  ;;  %v7927_v52 = vld [vmem:[%s12404_s3 + $0x1a8] sm:$0xff]  ;;  %v12496_v49 = vld [vmem:[#allocation19_spill] sm:$0xff] }
 0x1f1   : > { %9383 = vmatprep.mubr.msk.f32.mxu1 %vm681_vm2, %v11277_v51  ;;  %v11597_v51 = vld [vmem:[#allocation2 + $0x9b] sm:$0xff] }
 0x1f3   : > { %8995 = vmatmul.mubr.msk.f32.gmra.mrb[58].mxu0 %vm681_vm2, %v10833_v62  ;;  %v12484_v62 = vld [vmem:[#allocation7_spill] sm:$0xff] }
 0x1f4   : > { %9384 = vmatmul.mubr.msk.f32.gmra.mrb[24].mxu1 %vm681_vm2, %v11285_v34  ;;  %8997 = vmatprep.mubr.msk.f32.mxu0 %vm681_vm2, %v10841_v0  ;;  %v11523_v0 = vpack.c.bf16 %v7675_v38, %v7674_v27  ;;  %v11603_v34 = vld [vmem:[#allocation2 + $0xa3] sm:$0xff]  ;;  %v12513_v27 = vld [vmem:[#allocation34_spill] sm:$0xff] }
 0x1f5   : > { %9386 = vmatprep.mubr.msk.f32.mxu1 %vm681_vm2, %v11291_v63  ;;  %v12498_v63 = vld [vmem:[#allocation21_spill] sm:$0xff]  ;;  %v2606_v38 = vld [vmem:[#allocation2 + $0x11] sm:$0xff] }
 0x1f7   : > { %8998 = vmatmul.mubr.msk.f32.gmra.mrb[60].mxu0 %vm681_vm2, %v10849_v4  ;;  %v11525_v4 = vpack.c.bf16 %v7927_v52, %v7926_v58  ;;  %v7677_v58 = vld [vmem:[%s12404_s3 + $0xd8] sm:$0xff] }
 0x1f8   : > { %9387 = vmatmul.mubr.msk.f32.gmra.mrb[26].mxu1 %vm681_vm2, %v11299_v18  ;;  %9000 = vmatprep.mubr.msk.f32.mxu0 %vm681_vm2, %v10857_v10  ;;  %v12485_v10 = vld [vmem:[#allocation8_spill] sm:$0xff]  ;;  %v11609_v18 = vld [vmem:[#allocation2 + $0xab] sm:$0xff] }
 0x1f9   : > { %9389 = vmatprep.mubr.msk.f32.mxu1 %vm681_vm2, %v11457_v12  ;;  %v11698_v52 = vld [vmem:[#allocation2 + $0x11b] sm:$0xff] }
 0x1fa   : > { %12514 = vst [vmem:[#allocation4_spill] sm:$0xff] %v11698_v52 }
 0x1fb   : > { %9001 = vmatmul.mubr.msk.f32.gmra.mrb[62].mxu0 %vm681_vm2, %v10865_v17  ;;  %v12486_v17 = vld [vmem:[#allocation9_spill] sm:$0xff] }
 0x1fc   : > { %9390 = vmatmul.mubr.msk.f32.gmra.mrb[28].mxu1 %vm681_vm2, %v11467_v15  ;;  %9011 = vmatprep.mubr.msk.f32.mxu0 %vm681_vm2, %v12480_v35  ;;  %v12508_v35 = vld [vmem:[#allocation31_spill] sm:$0xff] }
 0x1fd   : > { %9392 = vmatprep.mubr.msk.f32.mxu1 %vm681_vm2, %v11469_v22 }
 0x1ff   : > { %9012 = vmatmul.mubr.msk.f32.vlgmr.msra.gmra.mrb[32].mxu0 %vm681_vm2, %v12481_v6  ;;  %v12510_v6 = vld [vmem:[#allocation32_spill] sm:$0xff] }
 0x200   : > { %9393 = vmatmul.mubr.msk.f32.gmra.mrb[30].mxu1 %vm681_vm2, %v11485_v43  ;;  %9014 = vmatprep.mubr.msk.f32.mxu0 %vm681_vm2, %v12482_v9  ;;  %v11681_v9 = vld [vmem:[#allocation2 + $0x10b] sm:$0xff] }
 0x201   : > { %9403 = vmatprep.mubr.msk.f32.mxu1 %vm681_vm2, %v11334_v2  ;;  %9782 = vmatpush3.bf16.msra.mxu0 %v11347_v40  ;;  %v11633_v2 = vld [vmem:[#allocation2 + $0xcb] sm:$0xff]  ;;  %v12504_v40 = vld [vmem:[#allocation27_spill] sm:$0xff]  ;;  %12511 = vst [vmem:[#allocation3_spill] sm:$0xff] %v11681_v9 }
 0x202   : > { %9784 = vmatprep.subr.bf16.mxu0 %v9783_v61 }
 0x203   : > { %9015 = vmatmul.mubr.msk.f32.gmra.mrb[34].mxu0 %vm681_vm2, %v12483_v45  ;;  %v7676_v45 = vld [vmem:[%s12404_s3 + $0xd0] sm:$0xff] }
 0x204   : > { %9404 = vmatmul.mubr.msk.f32.vlgmr.msra.gmra.mrb[0].mxu1 %vm681_vm2, %v11349_v30  ;;  %9017 = vmatprep.mubr.msk.f32.mxu0 %vm681_vm2, %v12484_v62  ;;  %v11645_v30 = vld [vmem:[#allocation2 + $0xdb] sm:$0xff] }
 0x205   : > { %9838 = vmatpush3.bf16.msra.mxu1 %v11351_v53  ;;  %9406 = vmatprep.mubr.msk.f32.mxu1 %vm681_vm2, %v11357_v28  ;;  %v12505_v53 = vld [vmem:[#allocation28_spill] sm:$0xff] }
 0x206   : > { %9840 = vmatprep.subr.bf16.mxu1 %v9839_v20  ;;  %9786 = vmatpush3.bf16.msra.mxu0 %v9783_v61  ;;  %v11651_v28 = vld [vmem:[#allocation2 + $0xe3] sm:$0xff]  ;;  %v2607_v62 = vld [vmem:[#allocation2 + $0x19] sm:$0xff] }
 0x207   : > { %9018 = vmatmul.mubr.msk.f32.gmra.mrb[36].mxu0 %vm681_vm2, %v12485_v10  ;;  %9788 = vmatprep.subr.bf16.mxu0 %v11523_v0  ;;  %v12509_v61 = vld [vmem:[#allocation33_spill] sm:$0xff]  ;;  %v7928_v10 = vld [vmem:[%s12404_s3 + $0x1b0] sm:$0xff] }
 0x208   : > { %9407 = vmatmul.mubr.msk.f32.gmra.mrb[2].mxu1 %vm681_vm2, %v11364_v47  ;;  %9020 = vmatprep.mubr.msk.f32.mxu0 %vm681_vm2, %v12486_v17  ;;  %v12506_v47 = vld [vmem:[#allocation29_spill] sm:$0xff]  ;;  %v7929_v17 = vld [vmem:[%s12404_s3 + $0x1b8] sm:$0xff] }
 0x209   : > { %9409 = vmatprep.mubr.msk.f32.mxu1 %vm681_vm2, %v11371_v56  ;;  %9842 = vmatpush3.bf16.msra.mxu1 %v9839_v20  ;;  %v11657_v56 = vld [vmem:[#allocation2 + $0xeb] sm:$0xff]  ;;  %v11683_v20 = vld [vmem:[#allocation2 + $0x113] sm:$0xff] }
 0x20a   : > { %9844 = vmatprep.subr.bf16.mxu1 %v11525_v4  ;;  %12512 = vst [vmem:[#allocation5_spill] sm:$0xff] %v11683_v20 }
 0x20b   : > { %9021 = vmatmul.mubr.msk.f32.gmra.mrb[38].mxu0 %vm681_vm2, %v12487_v3  ;;  %v9791_v3 = vpack.c.bf16 %v7677_v58, %v7676_v45  ;;  %v5347_v45 = vld [vmem:[#allocation2 + $0x88] sm:$0xff] }
 0x20c   : > { %9410 = vmatmul.mubr.msk.f32.gmra.mrb[4].mxu1 %vm681_vm2, %v11536_v1  ;;  %9023 = vmatprep.mubr.msk.f32.mxu0 %vm681_vm2, %v12488_v11  ;;  %v2608_v11 = vld [vmem:[#allocation2 + $0x21] sm:$0xff] }
 0x20d   : > { %9412 = vmatprep.mubr.msk.f32.mxu1 %vm681_vm2, %v11543_v48  ;;  %v11774_v58 = vld [vmem:[#allocation2 + $0x81] sm:$0xff] }
 0x20f   : > { %9024 = vmatmul.mubr.msk.f32.gmra.mrb[40].mxu0 %vm681_vm2, %v12489_v21  ;;  %v5336_v21 = vld [vmem:[#allocation2 + $0x30] sm:$0xff] }
 0x210   : > { %9413 = vmatmul.mubr.msk.f32.gmra.mrb[6].mxu1 %vm681_vm2, %v11549_v13  ;;  %9026 = vmatprep.mubr.msk.f32.mxu0 %vm681_vm2, %v12490_v31  ;;  %v9847_v31 = vpack.c.bf16 %v7929_v17, %v7928_v10  ;;  %v11779_v10 = vld [vmem:[#allocation2 + $0x89] sm:$0xff]  ;;  %v5349_v17 = vld [vmem:[#allocation2 + $0x98] sm:$0xff] }
 0x211   : > { %9415 = vmatprep.mubr.msk.f32.mxu1 %vm681_vm2, %v11555_v23 }
 0x213   : > { %9027 = vmatmul.mubr.msk.f32.gmra.mrb[42].mxu0 %vm681_vm2, %v12491_v41  ;;  %v2609_v41 = vld [vmem:[#allocation2 + $0x29] sm:$0xff] }
 0x214   : > { %9416 = vmatmul.mubr.msk.f32.gmra.mrb[8].mxu1 %vm681_vm2, %v11561_v33  ;;  %9029 = vmatprep.mubr.msk.f32.mxu0 %vm681_vm2, %v12492_v55  ;;  %v5337_v55 = vld [vmem:[#allocation2 + $0x38] sm:$0xff] }
 0x215   : > { %9418 = vmatprep.mubr.msk.f32.mxu1 %vm681_vm2, %v11567_v44 }
 0x217   : > { %9030 = vmatmul.mubr.msk.f32.gmra.mrb[44].mxu0 %vm681_vm2, %v12493_v5  ;;  %v11714_v5 = vld [vmem:[#allocation2 + $0x31] sm:$0xff] }
 0x218   : > { %9419 = vmatmul.mubr.msk.f32.gmra.mrb[10].mxu1 %vm681_vm2, %v11573_v59  ;;  %9032 = vmatprep.mubr.msk.f32.mxu0 %vm681_vm2, %v12494_v19  ;;  %v7962_v19 = vld [vmem:[%s12404_s3 + $0x1c0] sm:$0xff] }
 0x219   : > { %9421 = vmatprep.mubr.msk.f32.mxu1 %vm681_vm2, %v11579_v7 }
 0x21b   : > { %9033 = vmatmul.mubr.msk.f32.gmra.mrb[46].mxu0 %vm681_vm2, %v12495_v37  ;;  %v7963_v37 = vld [vmem:[%s12404_s3 + $0x1c8] sm:$0xff] }
 0x21c   : > { %9422 = vmatmul.mubr.msk.f32.gmra.mrb[12].mxu1 %vm681_vm2, %v11585_v24  ;;  %9035 = vmatprep.mubr.msk.f32.mxu0 %vm681_vm2, %v12496_v49  ;;  %v11726_v49 = vld [vmem:[#allocation2 + $0x39] sm:$0xff] }
 0x21d   : > { %9424 = vmatprep.mubr.msk.f32.mxu1 %vm681_vm2, %v11591_v39 }
 0x21f   : > { %9036 = vmatmul.mubr.msk.f32.gmra.mrb[48].mxu0 %vm681_vm2, %v12497_v60  ;;  %v5339_v60 = vld [vmem:[#allocation2 + $0x48] sm:$0xff] }
 0x220   : > { %9425 = vmatmul.mubr.msk.f32.gmra.mrb[14].mxu1 %vm681_vm2, %v11597_v51  ;;  %9038 = vmatprep.mubr.msk.f32.mxu0 %vm681_vm2, %v12498_v63  ;;  %v11728_v63 = vpack.c.bf16 %v7963_v37, %v7962_v19  ;;  %v11799_v19 = vld [vmem:[#allocation2 + $0xa9] sm:$0xff]  ;;  %v5353_v37 = vld [vmem:[#allocation2 + $0xb8] sm:$0xff] }
 0x221   : > { %9427 = vmatprep.mubr.msk.f32.mxu1 %vm681_vm2, %v11603_v34 }
 0x223   : > { %9039 = vmatmul.mubr.msk.f32.gmra.mrb[50].mxu0 %vm681_vm2, %v12499_v29  ;;  %v11733_v29 = vld [vmem:[#allocation2 + $0x41] sm:$0xff] }
 0x224   : > { %9428 = vmatmul.mubr.msk.f32.gmra.mrb[16].mxu1 %vm681_vm2, %v11609_v18  ;;  %9041 = vmatprep.mubr.msk.f32.mxu0 %vm681_vm2, %v12500_v42  ;;  %v11738_v42 = vld [vmem:[#allocation2 + $0x49] sm:$0xff] }
 0x225   : > { %9430 = vmatprep.mubr.msk.f32.mxu1 %vm681_vm2, %v11615_v14 }
 0x227   : > { %9042 = vmatmul.mubr.msk.f32.gmra.mrb[52].mxu0 %vm681_vm2, %v12501_v8  ;;  %v5341_v8 = vld [vmem:[#allocation2 + $0x58] sm:$0xff] }
 0x228   : > { %9431 = vmatmul.mubr.msk.f32.gmra.mrb[18].mxu1 %vm681_vm2, %v11621_v36  ;;  %9044 = vmatprep.mubr.msk.f32.mxu0 %vm681_vm2, %v12502_v50  ;;  %v11744_v50 = vld [vmem:[#allocation2 + $0x51] sm:$0xff] }
 0x229   : > { %9433 = vmatprep.mubr.msk.f32.mxu1 %vm681_vm2, %v11627_v16 }
 0x22b   : > { %9045 = vmatmul.mubr.msk.f32.gmra.mrb[54].mxu0 %vm681_vm2, %v12503_v26  ;;  %v5342_v26 = vld [vmem:[#allocation2 + $0x60] sm:$0xff] }
 0x22c   : > { %9434 = vmatmul.mubr.msk.f32.gmra.mrb[20].mxu1 %vm681_vm2, %v11633_v2  ;;  %9047 = vmatprep.mubr.msk.f32.mxu0 %vm681_vm2, %v12504_v40  ;;  %v11749_v40 = vld [vmem:[#allocation2 + $0x59] sm:$0xff] }
 0x22d   : > { %9436 = vmatprep.mubr.msk.f32.mxu1 %vm681_vm2, %v11639_v54 }
 0x22f   : > { %9048 = vmatmul.mubr.msk.f32.gmra.mrb[56].mxu0 %vm681_vm2, %v12505_v53  ;;  %v5343_v53 = vld [vmem:[#allocation2 + $0x68] sm:$0xff] }
 0x230   : > { %9437 = vmatmul.mubr.msk.f32.gmra.mrb[22].mxu1 %vm681_vm2, %v11645_v30  ;;  %9050 = vmatprep.mubr.msk.f32.mxu0 %vm681_vm2, %v12506_v47  ;;  %v11754_v47 = vld [vmem:[#allocation2 + $0x61] sm:$0xff] }
 0x231   : > { %9439 = vmatprep.mubr.msk.f32.mxu1 %vm681_vm2, %v11651_v28 }
 0x233   : > { %9051 = vmatmul.mubr.msk.f32.gmra.mrb[58].mxu0 %vm681_vm2, %v12507_v25  ;;  %v5344_v25 = vld [vmem:[#allocation2 + $0x70] sm:$0xff] }
 0x234   : > { %9440 = vmatmul.mubr.msk.f32.gmra.mrb[24].mxu1 %vm681_vm2, %v11657_v56  ;;  %9053 = vmatprep.mubr.msk.f32.mxu0 %vm681_vm2, %v12508_v35  ;;  %v11759_v35 = vld [vmem:[#allocation2 + $0x69] sm:$0xff] }
 0x235   : > { %9442 = vmatprep.mubr.msk.f32.mxu1 %vm681_vm2, %v11663_v32 }
 0x237   : > { %9054 = vmatmul.mubr.msk.f32.gmra.mrb[60].mxu0 %vm681_vm2, %v12509_v61  ;;  %v5345_v61 = vld [vmem:[#allocation2 + $0x78] sm:$0xff] }
 0x238   : > { %9443 = vmatmul.mubr.msk.f32.gmra.mrb[26].mxu1 %vm681_vm2, %v11671_v57  ;;  %9056 = vmatprep.mubr.msk.f32.mxu0 %vm681_vm2, %v12510_v6  ;;  %v11764_v6 = vld [vmem:[#allocation2 + $0x71] sm:$0xff] }
 0x239   : > { %9445 = vmatprep.mubr.msk.f32.mxu1 %vm681_vm2, %v11669_v46 }
 0x23b   : > { %9057 = vmatmul.mubr.msk.f32.gmra.mrb[62].mxu0 %vm681_vm2, %v12513_v27  ;;  %v5346_v27 = vld [vmem:[#allocation2 + $0x80] sm:$0xff] }
 0x23c   : > { %9446 = vmatmul.mubr.msk.f32.gmra.mrb[28].mxu1 %vm681_vm2, %v11681_v9  ;;  %9067 = vmatprep.mubr.msk.f32.mxu0 %vm681_vm2, %v2606_v38  ;;  %v11769_v38 = vld [vmem:[#allocation2 + $0x79] sm:$0xff] }
 0x23d   : > { %9448 = vmatprep.mubr.msk.f32.mxu1 %vm681_vm2, %v11683_v20  ;;  %v5367_v20 = vld [vmem:[#allocation2 + $0x128] sm:$0xff]  ;;  %v2997_v9 = vld [vmem:[#allocation2 + $0x1a] sm:$0xff] }
 0x23f   : > { %9068 = vmatmul.mubr.msk.f32.vlgmr.msra.gmra.mrb[32].mxu0 %vm681_vm2, %v2607_v62  ;;  %v5348_v62 = vld [vmem:[#allocation2 + $0x90] sm:$0xff] }
 0x240   : > { %9449 = vmatmul.mubr.msk.f32.gmra.mrb[30].mxu1 %vm681_vm2, %v11698_v52  ;;  %9070 = vmatprep.mubr.msk.f32.mxu0 %vm681_vm2, %v2608_v11  ;;  %v5350_v11 = vld [vmem:[#allocation2 + $0xa0] sm:$0xff] }
 0x241   : > { %9459 = vmatprep.mubr.msk.f32.mxu1 %vm681_vm2, %v5336_v21  ;;  %9790 = vmatpush3.bf16.msra.mxu0 %v11523_v0  ;;  %v5338_v0 = vld [vmem:[#allocation2 + $0x40] sm:$0xff] }
 0x242   : > { %9792 = vmatprep.subr.bf16.mxu0 %v9791_v3  ;;  %v11789_v21 = vld [vmem:[#allocation2 + $0x99] sm:$0xff] }
 0x243   : > { %9071 = vmatmul.mubr.msk.f32.gmra.mrb[34].mxu0 %vm681_vm2, %v2609_v41  ;;  %v11794_v41 = vld [vmem:[#allocation2 + $0xa1] sm:$0xff] }
 0x244   : > { %9460 = vmatmul.mubr.msk.f32.vlgmr.msra.gmra.mrb[0].mxu1 %vm681_vm2, %v5337_v55  ;;  %9073 = vmatprep.mubr.msk.f32.mxu0 %vm681_vm2, %v11714_v5  ;;  %v5352_v55 = vld [vmem:[#allocation2 + $0xb0] sm:$0xff]  ;;  %v12516_v52 = vld [vmem:[#allocation36_spill] sm:$0xff] }
 0x245   : > { %9846 = vmatpush3.bf16.msra.mxu1 %v11525_v4  ;;  %9462 = vmatprep.mubr.msk.f32.mxu1 %vm681_vm2, %v5338_v0  ;;  %v5340_v4 = vld [vmem:[#allocation2 + $0x50] sm:$0xff] }
 0x246   : > { %9848 = vmatprep.subr.bf16.mxu1 %v9847_v31  ;;  %9794 = vmatpush3.bf16.msra.mxu0 %v9791_v3  ;;  %v11784_v3 = vld [vmem:[#allocation2 + $0x91] sm:$0xff] }
 0x247   : > { %9074 = vmatmul.mubr.msk.f32.gmra.mrb[36].mxu0 %vm681_vm2, %v11726_v49  ;;  %v11804_v0 = vld [vmem:[#allocation2 + $0xb1] sm:$0xff] }
 0x248   : > { %9463 = vmatmul.mubr.msk.f32.gmra.mrb[2].mxu1 %vm681_vm2, %v5339_v60  ;;  %9076 = vmatprep.mubr.msk.f32.mxu0 %vm681_vm2, %v11733_v29  ;;  %v5354_v60 = vld [vmem:[#allocation2 + $0xc0] sm:$0xff] }
 0x249   : > { %9465 = vmatprep.mubr.msk.f32.mxu1 %vm681_vm2, %v5340_v4  ;;  %9850 = vmatpush3.bf16.msra.mxu1 %v9847_v31  ;;  %v5351_v31 = vld [vmem:[#allocation2 + $0xa8] sm:$0xff]  ;;  %v11809_v4 = vld [vmem:[#allocation2 + $0xb9] sm:$0xff] }
 0x24a   : > { %9852 = vmatprep.subr.bf16.mxu1 %v11728_v63 }
 0x24b   : > { %9077 = vmatmul.mubr.msk.f32.gmra.mrb[38].mxu0 %vm681_vm2, %v11738_v42 }
 0x24c   : > { %9466 = vmatmul.mubr.msk.f32.gmra.mrb[4].mxu1 %vm681_vm2, %v5341_v8  ;;  %9079 = vmatprep.mubr.msk.f32.mxu0 %vm681_vm2, %v11744_v50  ;;  %v5355_v8 = vld [vmem:[#allocation2 + $0xc8] sm:$0xff] }
 0x24d   : > { %9468 = vmatprep.mubr.msk.f32.mxu1 %vm681_vm2, %v5342_v26  ;;  %v11814_v26 = vld [vmem:[#allocation2 + $0xc1] sm:$0xff] }
 0x24f   : > { %9080 = vmatmul.mubr.msk.f32.gmra.mrb[40].mxu0 %vm681_vm2, %v11749_v40 }
 0x250   : > { %9469 = vmatmul.mubr.msk.f32.gmra.mrb[6].mxu1 %vm681_vm2, %v5343_v53  ;;  %9082 = vmatprep.mubr.msk.f32.mxu0 %vm681_vm2, %v11754_v47  ;;  %v5356_v53 = vld [vmem:[#allocation2 + $0xd0] sm:$0xff] }
 0x251   : > { %9471 = vmatprep.mubr.msk.f32.mxu1 %vm681_vm2, %v5344_v25  ;;  %v11819_v25 = vld [vmem:[#allocation2 + $0xc9] sm:$0xff] }
 0x253   : > { %9083 = vmatmul.mubr.msk.f32.gmra.mrb[42].mxu0 %vm681_vm2, %v11759_v35 }
 0x254   : > { %9472 = vmatmul.mubr.msk.f32.gmra.mrb[8].mxu1 %vm681_vm2, %v5345_v61  ;;  %9085 = vmatprep.mubr.msk.f32.mxu0 %vm681_vm2, %v11764_v6  ;;  %v5357_v61 = vld [vmem:[#allocation2 + $0xd8] sm:$0xff] }
 0x255   : > { %9474 = vmatprep.mubr.msk.f32.mxu1 %vm681_vm2, %v5346_v27  ;;  %v11824_v27 = vld [vmem:[#allocation2 + $0xd1] sm:$0xff] }
 0x257   : > { %9086 = vmatmul.mubr.msk.f32.gmra.mrb[44].mxu0 %vm681_vm2, %v11769_v38 }
 0x258   : > { %9475 = vmatmul.mubr.msk.f32.gmra.mrb[10].mxu1 %vm681_vm2, %v5347_v45  ;;  %9088 = vmatprep.mubr.msk.f32.mxu0 %vm681_vm2, %v11774_v58  ;;  %v5358_v45 = vld [vmem:[#allocation2 + $0xe0] sm:$0xff] }
 0x259   : > { %9477 = vmatprep.mubr.msk.f32.mxu1 %vm681_vm2, %v5348_v62  ;;  %v11829_v62 = vld [vmem:[#allocation2 + $0xd9] sm:$0xff] }
 0x25b   : > { %9089 = vmatmul.mubr.msk.f32.gmra.mrb[46].mxu0 %vm681_vm2, %v11779_v10 }
 0x25c   : > { %9478 = vmatmul.mubr.msk.f32.gmra.mrb[12].mxu1 %vm681_vm2, %v5349_v17  ;;  %9091 = vmatprep.mubr.msk.f32.mxu0 %vm681_vm2, %v11784_v3  ;;  %v5359_v17 = vld [vmem:[#allocation2 + $0xe8] sm:$0xff] }
 0x25d   : > { %9480 = vmatprep.mubr.msk.f32.mxu1 %vm681_vm2, %v5350_v11  ;;  %v11834_v11 = vld [vmem:[#allocation2 + $0xe1] sm:$0xff] }
 0x25f   : > { %9092 = vmatmul.mubr.msk.f32.gmra.mrb[48].mxu0 %vm681_vm2, %v11789_v21 }
 0x260   : > { %9481 = vmatmul.mubr.msk.f32.gmra.mrb[14].mxu1 %vm681_vm2, %v5351_v31  ;;  %9094 = vmatprep.mubr.msk.f32.mxu0 %vm681_vm2, %v11794_v41  ;;  %v5360_v31 = vld [vmem:[#allocation2 + $0xf0] sm:$0xff] }
 0x261   : > { %9483 = vmatprep.mubr.msk.f32.mxu1 %vm681_vm2, %v5352_v55  ;;  %v5362_v55 = vld [vmem:[#allocation2 + $0x100] sm:$0xff] }
 0x263   : > { %9095 = vmatmul.mubr.msk.f32.gmra.mrb[50].mxu0 %vm681_vm2, %v11799_v19 }
 0x264   : > { %9484 = vmatmul.mubr.msk.f32.gmra.mrb[16].mxu1 %vm681_vm2, %v5353_v37  ;;  %9097 = vmatprep.mubr.msk.f32.mxu0 %vm681_vm2, %v11804_v0  ;;  %v11839_v37 = vld [vmem:[#allocation2 + $0xe9] sm:$0xff] }
 0x265   : > { %9486 = vmatprep.mubr.msk.f32.mxu1 %vm681_vm2, %v5354_v60  ;;  %v5361_v60 = vld [vmem:[#allocation2 + $0xf8] sm:$0xff] }
 0x267   : > { %9098 = vmatmul.mubr.msk.f32.gmra.mrb[52].mxu0 %vm681_vm2, %v11809_v4 }
 0x268   : > { %9487 = vmatmul.mubr.msk.f32.gmra.mrb[18].mxu1 %vm681_vm2, %v5355_v8  ;;  %9100 = vmatprep.mubr.msk.f32.mxu0 %vm681_vm2, %v11814_v26  ;;  %v11844_v8 = vld [vmem:[#allocation2 + $0xf1] sm:$0xff] }
 0x269   : > { %9489 = vmatprep.mubr.msk.f32.mxu1 %vm681_vm2, %v5356_v53  ;;  %v5363_v53 = vld [vmem:[#allocation2 + $0x108] sm:$0xff] }
 0x26b   : > { %9101 = vmatmul.mubr.msk.f32.gmra.mrb[54].mxu0 %vm681_vm2, %v11819_v25 }
 0x26c   : > { %9490 = vmatmul.mubr.msk.f32.gmra.mrb[20].mxu1 %vm681_vm2, %v5357_v61  ;;  %9103 = vmatprep.mubr.msk.f32.mxu0 %vm681_vm2, %v11824_v27  ;;  %v5364_v61 = vld [vmem:[#allocation2 + $0x110] sm:$0xff] }
 0x26d   : > { %9492 = vmatprep.mubr.msk.f32.mxu1 %vm681_vm2, %v5358_v45  ;;  %v11849_v45 = vld [vmem:[#allocation2 + $0xf9] sm:$0xff] }
 0x26f   : > { %9104 = vmatmul.mubr.msk.f32.gmra.mrb[56].mxu0 %vm681_vm2, %v11829_v62 }
 0x270   : > { %9493 = vmatmul.mubr.msk.f32.gmra.mrb[22].mxu1 %vm681_vm2, %v5359_v17  ;;  %9106 = vmatprep.mubr.msk.f32.mxu0 %vm681_vm2, %v11834_v11  ;;  %v12515_v17 = vld [vmem:[#allocation35_spill] sm:$0xff] }
 0x271   : > { %9495 = vmatprep.mubr.msk.f32.mxu1 %vm681_vm2, %v5360_v31  ;;  %v5365_v31 = vld [vmem:[#allocation2 + $0x118] sm:$0xff] }
 0x273   : > { %9107 = vmatmul.mubr.msk.f32.gmra.mrb[58].mxu0 %vm681_vm2, %v11839_v37 }
 0x274   : > { %9496 = vmatmul.mubr.msk.f32.gmra.mrb[24].mxu1 %vm681_vm2, %v5361_v60  ;;  %9109 = vmatprep.mubr.msk.f32.mxu0 %vm681_vm2, %v11844_v8  ;;  %v5366_v60 = vld [vmem:[#allocation2 + $0x120] sm:$0xff] }
 0x275   : > { %9498 = vmatprep.mubr.msk.f32.mxu1 %vm681_vm2, %v5362_v55  ;;  %v2996_v55 = vld [vmem:[#allocation2 + $0x12] sm:$0xff] }
 0x277   : > { %9110 = vmatmul.mubr.msk.f32.gmra.mrb[60].mxu0 %vm681_vm2, %v11849_v45 }
 0x278   : > { %9499 = vmatmul.mubr.msk.f32.gmra.mrb[26].mxu1 %vm681_vm2, %v5363_v53  ;;  %9112 = vmatprep.mubr.msk.f32.mxu0 %vm681_vm2, %v12515_v17  ;;  %v7964_v53 = vld [vmem:[%s12404_s3 + $0x1d0] sm:$0xff] }
 0x279   : > { %9501 = vmatprep.mubr.msk.f32.mxu1 %vm681_vm2, %v5364_v61  ;;  %v7965_v61 = vld [vmem:[%s12404_s3 + $0x1d8] sm:$0xff] }
 0x27a   : > { %v9855_v17 = vpack.c.bf16 %v7965_v61, %v7964_v53  ;;  %v3020_v53 = vld [vmem:[#allocation2 + $0xd2] sm:$0xff]  ;;  %v5753_v61 = vld [vmem:[#allocation2 + $0x109] sm:$0xff] }
 0x27b   : > { %9113 = vmatmul.mubr.msk.f32.gmra.mrb[62].mxu0 %vm681_vm2, %v12516_v52  ;;  %v2998_v52 = vld [vmem:[#allocation2 + $0x22] sm:$0xff] }
 0x27c   : > { %9502 = vmatmul.mubr.msk.f32.gmra.mrb[28].mxu1 %vm681_vm2, %v5365_v31  ;;  %9123 = vmatprep.mubr.msk.f32.mxu0 %vm681_vm2, %v2996_v55  ;;  %v2999_v31 = vld [vmem:[#allocation2 + $0x2a] sm:$0xff]  ;;  %v11897_v55 = vld [vmem:[#allocation2 + $0x42] sm:$0xff] }
 0x27d   : > { %9504 = vmatprep.mubr.msk.f32.mxu1 %vm681_vm2, %v5366_v60  ;;  %v11876_v60 = vld [vmem:[#allocation2 + $0x32] sm:$0xff] }
 0x27f   : > { %9124 = vmatmul.mubr.msk.f32.vlgmr.msra.gmra.mrb[32].mxu0 %vm681_vm2, %v2997_v9  ;;  %v7998_v9 = vld [vmem:[%s12404_s3 + $0x1e0] sm:$0xff] }
 0x280   : > { %9505 = vmatmul.mubr.msk.f32.gmra.mrb[30].mxu1 %vm681_vm2, %v5367_v20  ;;  %9126 = vmatprep.mubr.msk.f32.mxu0 %vm681_vm2, %v2998_v52  ;;  %v7999_v20 = vld [vmem:[%s12404_s3 + $0x1e8] sm:$0xff]  ;;  %v3025_v52 = vld [vmem:[#allocation2 + $0xfa] sm:$0xff] }
 0x281   : > { %9515 = vmatprep.mubr.msk.f32.mxu1 %vm681_vm2, %v11714_v5  ;;  %v11889_v5 = vld [vmem:[#allocation2 + $0x3a] sm:$0xff] }
 0x283   : > { %9127 = vmatmul.mubr.msk.f32.gmra.mrb[34].mxu0 %vm681_vm2, %v2999_v31  ;;  %v8000_v31 = vld [vmem:[%s12404_s3 + $0x1f0] sm:$0xff] }
 0x284   : > { %9516 = vmatmul.mubr.msk.f32.vlgmr.msra.gmra.mrb[0].mxu1 %vm681_vm2, %v11726_v49  ;;  %9129 = vmatprep.mubr.msk.f32.mxu0 %vm681_vm2, %v11876_v60  ;;  %v11891_v49 = vpack.c.bf16 %v7999_v20, %v7998_v9  ;;  %v8001_v9 = vld [vmem:[%s12404_s3 + $0x1f8] sm:$0xff] }
 0x285   : > { %9854 = vmatpush3.bf16.msra.mxu1 %v11728_v63  ;;  %9518 = vmatprep.mubr.msk.f32.mxu1 %vm681_vm2, %v11733_v29  ;;  %v11903_v63 = vld [vmem:[#allocation2 + $0x4a] sm:$0xff]  ;;  %v11910_v29 = vld [vmem:[#allocation2 + $0x52] sm:$0xff]  ;;  %v9863_v20 = vpack.c.bf16 %v8001_v9, %v8000_v31 }
 0x286   : > { %9856 = vmatprep.subr.bf16.mxu1 %v9855_v17 }
 0x287   : > { %9130 = vmatmul.mubr.msk.f32.gmra.mrb[36].mxu0 %vm681_vm2, %v11889_v5 }
 0x288   : > { %9519 = vmatmul.mubr.msk.f32.gmra.mrb[2].mxu1 %vm681_vm2, %v11738_v42  ;;  %9132 = vmatprep.mubr.msk.f32.mxu0 %vm681_vm2, %v11897_v55  ;;  %v11916_v42 = vld [vmem:[#allocation2 + $0x5a] sm:$0xff] }
 0x289   : > { %9521 = vmatprep.mubr.msk.f32.mxu1 %vm681_vm2, %v11744_v50  ;;  %9858 = vmatpush3.bf16.msra.mxu1 %v9855_v17  ;;  %v11922_v50 = vld [vmem:[#allocation2 + $0x62] sm:$0xff] }
 0x28a   : > { %9860 = vmatprep.subr.bf16.mxu1 %v11891_v49  ;;  %v5756_v17 = vld [vmem:[#allocation2 + $0x121] sm:$0xff] }
 0x28b   : > { %9133 = vmatmul.mubr.msk.f32.gmra.mrb[38].mxu0 %vm681_vm2, %v11903_v63 }
 0x28c   : > { %9522 = vmatmul.mubr.msk.f32.gmra.mrb[4].mxu1 %vm681_vm2, %v11749_v40  ;;  %9135 = vmatprep.mubr.msk.f32.mxu0 %vm681_vm2, %v11910_v29  ;;  %v11928_v40 = vld [vmem:[#allocation2 + $0x6a] sm:$0xff] }
 0x28d   : > { %9524 = vmatprep.mubr.msk.f32.mxu1 %vm681_vm2, %v11754_v47  ;;  %v11934_v47 = vld [vmem:[#allocation2 + $0x72] sm:$0xff] }
 0x28f   : > { %9136 = vmatmul.mubr.msk.f32.gmra.mrb[40].mxu0 %vm681_vm2, %v11916_v42 }
 0x290   : > { %9525 = vmatmul.mubr.msk.f32.gmra.mrb[6].mxu1 %vm681_vm2, %v11759_v35  ;;  %9138 = vmatprep.mubr.msk.f32.mxu0 %vm681_vm2, %v11922_v50  ;;  %v11940_v35 = vld [vmem:[#allocation2 + $0x7a] sm:$0xff] }
 0x291   : > { %9527 = vmatprep.mubr.msk.f32.mxu1 %vm681_vm2, %v11764_v6  ;;  %v11946_v6 = vld [vmem:[#allocation2 + $0x82] sm:$0xff] }
 0x293   : > { %9139 = vmatmul.mubr.msk.f32.gmra.mrb[42].mxu0 %vm681_vm2, %v11928_v40 }
 0x294   : > { %9528 = vmatmul.mubr.msk.f32.gmra.mrb[8].mxu1 %vm681_vm2, %v11769_v38  ;;  %9141 = vmatprep.mubr.msk.f32.mxu0 %vm681_vm2, %v11934_v47  ;;  %v11952_v38 = vld [vmem:[#allocation2 + $0x8a] sm:$0xff] }
 0x295   : > { %9530 = vmatprep.mubr.msk.f32.mxu1 %vm681_vm2, %v11774_v58  ;;  %v11958_v58 = vld [vmem:[#allocation2 + $0x92] sm:$0xff] }
 0x297   : > { %9142 = vmatmul.mubr.msk.f32.gmra.mrb[44].mxu0 %vm681_vm2, %v11940_v35 }
 0x298   : > { %9531 = vmatmul.mubr.msk.f32.gmra.mrb[10].mxu1 %vm681_vm2, %v11779_v10  ;;  %9144 = vmatprep.mubr.msk.f32.mxu0 %vm681_vm2, %v11946_v6  ;;  %v11964_v10 = vld [vmem:[#allocation2 + $0x9a] sm:$0xff] }
 0x299   : > { %9533 = vmatprep.mubr.msk.f32.mxu1 %vm681_vm2, %v11784_v3  ;;  %v11970_v3 = vld [vmem:[#allocation2 + $0xa2] sm:$0xff] }
 0x29b   : > { %9145 = vmatmul.mubr.msk.f32.gmra.mrb[46].mxu0 %vm681_vm2, %v11952_v38 }
 0x29c   : > { %9534 = vmatmul.mubr.msk.f32.gmra.mrb[12].mxu1 %vm681_vm2, %v11789_v21  ;;  %9147 = vmatprep.mubr.msk.f32.mxu0 %vm681_vm2, %v11958_v58  ;;  %v11976_v21 = vld [vmem:[#allocation2 + $0xaa] sm:$0xff] }
 0x29d   : > { %9536 = vmatprep.mubr.msk.f32.mxu1 %vm681_vm2, %v11794_v41  ;;  %v11982_v41 = vld [vmem:[#allocation2 + $0xb2] sm:$0xff] }
 0x29f   : > { %9148 = vmatmul.mubr.msk.f32.gmra.mrb[48].mxu0 %vm681_vm2, %v11964_v10 }
 0x2a0   : > { %9537 = vmatmul.mubr.msk.f32.gmra.mrb[14].mxu1 %vm681_vm2, %v11799_v19  ;;  %9150 = vmatprep.mubr.msk.f32.mxu0 %vm681_vm2, %v11970_v3  ;;  %v3017_v19 = vld [vmem:[#allocation2 + $0xba] sm:$0xff] }
 0x2a1   : > { %9539 = vmatprep.mubr.msk.f32.mxu1 %vm681_vm2, %v11804_v0  ;;  %v3018_v0 = vld [vmem:[#allocation2 + $0xc2] sm:$0xff] }
 0x2a3   : > { %9151 = vmatmul.mubr.msk.f32.gmra.mrb[50].mxu0 %vm681_vm2, %v11976_v21 }
 0x2a4   : > { %9540 = vmatmul.mubr.msk.f32.gmra.mrb[16].mxu1 %vm681_vm2, %v11809_v4  ;;  %9153 = vmatprep.mubr.msk.f32.mxu0 %vm681_vm2, %v11982_v41  ;;  %v3019_v4 = vld [vmem:[#allocation2 + $0xca] sm:$0xff] }
 0x2a5   : > { %9542 = vmatprep.mubr.msk.f32.mxu1 %vm681_vm2, %v11814_v26  ;;  %v3021_v26 = vld [vmem:[#allocation2 + $0xda] sm:$0xff] }
 0x2a7   : > { %9154 = vmatmul.mubr.msk.f32.gmra.mrb[52].mxu0 %vm681_vm2, %v3017_v19 }
 0x2a8   : > { %9543 = vmatmul.mubr.msk.f32.gmra.mrb[18].mxu1 %vm681_vm2, %v11819_v25  ;;  %9156 = vmatprep.mubr.msk.f32.mxu0 %vm681_vm2, %v3018_v0  ;;  %v3022_v25 = vld [vmem:[#allocation2 + $0xe2] sm:$0xff] }
 0x2a9   : > { %9545 = vmatprep.mubr.msk.f32.mxu1 %vm681_vm2, %v11824_v27  ;;  %v5752_v27 = vld [vmem:[#allocation2 + $0x101] sm:$0xff] }
 0x2ab   : > { %9157 = vmatmul.mubr.msk.f32.gmra.mrb[54].mxu0 %vm681_vm2, %v3019_v4 }
 0x2ac   : > { %9546 = vmatmul.mubr.msk.f32.gmra.mrb[20].mxu1 %vm681_vm2, %v11829_v62  ;;  %9159 = vmatprep.mubr.msk.f32.mxu0 %vm681_vm2, %v3020_v53  ;;  %v3023_v62 = vld [vmem:[#allocation2 + $0xea] sm:$0xff] }
 0x2ad   : > { %9548 = vmatprep.mubr.msk.f32.mxu1 %vm681_vm2, %v11834_v11  ;;  %v3024_v11 = vld [vmem:[#allocation2 + $0xf2] sm:$0xff] }
 0x2af   : > { %9160 = vmatmul.mubr.msk.f32.gmra.mrb[56].mxu0 %vm681_vm2, %v3021_v26 }
 0x2b0   : > { %9549 = vmatmul.mubr.msk.f32.gmra.mrb[22].mxu1 %vm681_vm2, %v11839_v37  ;;  %9162 = vmatprep.mubr.msk.f32.mxu0 %vm681_vm2, %v3022_v25  ;;  %v5754_v37 = vld [vmem:[#allocation2 + $0x111] sm:$0xff] }
 0x2b1   : > { %9551 = vmatprep.mubr.msk.f32.mxu1 %vm681_vm2, %v11844_v8  ;;  %v5755_v8 = vld [vmem:[#allocation2 + $0x119] sm:$0xff] }
 0x2b3   : > { %9163 = vmatmul.mubr.msk.f32.gmra.mrb[58].mxu0 %vm681_vm2, %v3023_v62 }
 0x2b4   : > { %9552 = vmatmul.mubr.msk.f32.gmra.mrb[24].mxu1 %vm681_vm2, %v11849_v45  ;;  %9165 = vmatprep.mubr.msk.f32.mxu0 %vm681_vm2, %v3024_v11  ;;  %v5757_v45 = vld [vmem:[#allocation2 + $0x129] sm:$0xff] }
 0x2b5   : > { %9554 = vmatprep.mubr.msk.f32.mxu1 %vm681_vm2, %v5752_v27 }
 0x2b7   : > { %9166 = vmatmul.mubr.msk.f32.gmra.mrb[60].mxu0 %vm681_vm2, %v3025_v52 }
 0x2b8   : > { %9555 = vmatmul.mubr.msk.f32.gmra.mrb[26].mxu1 %vm681_vm2, %v5753_v61  ;;  %9168 = vmatprep.mubr.msk.f32.mxu0 %vm681_vm2, %v11457_v12 }
 0x2b9   : > { %9557 = vmatprep.mubr.msk.f32.mxu1 %vm681_vm2, %v5754_v37 }
 0x2bb   : > { %9169 = vmatmul.mubr.msk.f32.gmra.mrb[62].mxu0 %vm681_vm2, %v11467_v15 }
 0x2bc   : > { %9558 = vmatmul.mubr.msk.f32.gmra.mrb[28].mxu1 %vm681_vm2, %v5755_v8 }
 0x2bd   : > { %9560 = vmatprep.mubr.msk.f32.mxu1 %vm681_vm2, %v5756_v17 }
 0x2c0   : > { %9561 = vmatmul.mubr.msk.f32.gmra.mrb[30].mxu1 %vm681_vm2, %v5757_v45 }
 0x2c1   : > { %9571 = vmatprep.mubr.msk.f32.mxu1 %vm681_vm2, %v11876_v60  ;;  %v6146_v60 = vld [vmem:[#allocation2 + $0x122] sm:$0xff] }
 0x2c4   : > { %9572 = vmatmul.mubr.msk.f32.vlgmr.msra.gmra.mrb[0].mxu1 %vm681_vm2, %v11889_v5  ;;  %v6147_v5 = vld [vmem:[#allocation2 + $0x12a] sm:$0xff] }
 0x2c5   : > { %9862 = vmatpush3.bf16.msra.mxu1 %v11891_v49  ;;  %9574 = vmatprep.mubr.msk.f32.mxu1 %vm681_vm2, %v11897_v55  ;;  %v6506_v49 = vld [vmem:[#allocation2 + $0x33] sm:$0xff]  ;;  %v6507_v55 = vld [vmem:[#allocation2 + $0x3b] sm:$0xff] }
 0x2c6   : > { %9864 = vmatprep.subr.bf16.mxu1 %v9863_v20 }
 0x2c8   : > { %9575 = vmatmul.mubr.msk.f32.gmra.mrb[2].mxu1 %vm681_vm2, %v11903_v63 }
 0x2c9   : > { %9577 = vmatprep.mubr.msk.f32.mxu1 %vm681_vm2, %v11910_v29  ;;  %9866 = vmatpush3.bf16.msra.mxu1 %v9863_v20 }
 0x2cc   : > { %9578 = vmatmul.mubr.msk.f32.gmra.mrb[4].mxu1 %vm681_vm2, %v11916_v42 }
 0x2cd   : > { %9580 = vmatprep.mubr.msk.f32.mxu1 %vm681_vm2, %v11922_v50 }
 0x2d0   : > { %9581 = vmatmul.mubr.msk.f32.gmra.mrb[6].mxu1 %vm681_vm2, %v11928_v40 }
 0x2d1   : > { %9583 = vmatprep.mubr.msk.f32.mxu1 %vm681_vm2, %v11934_v47 }
 0x2d4   : > { %9584 = vmatmul.mubr.msk.f32.gmra.mrb[8].mxu1 %vm681_vm2, %v11940_v35 }
 0x2d5   : > { %9586 = vmatprep.mubr.msk.f32.mxu1 %vm681_vm2, %v11946_v6 }
 0x2d8   : > { %9587 = vmatmul.mubr.msk.f32.gmra.mrb[10].mxu1 %vm681_vm2, %v11952_v38 }
 0x2d9   : > { %9589 = vmatprep.mubr.msk.f32.mxu1 %vm681_vm2, %v11958_v58 }
 0x2dc   : > { %9590 = vmatmul.mubr.msk.f32.gmra.mrb[12].mxu1 %vm681_vm2, %v11964_v10 }
 0x2dd   : > { %9592 = vmatprep.mubr.msk.f32.mxu1 %vm681_vm2, %v11970_v3 }
 0x2e0   : > { %9593 = vmatmul.mubr.msk.f32.gmra.mrb[14].mxu1 %vm681_vm2, %v11976_v21 }
 0x2e1   : > { %9595 = vmatprep.mubr.msk.f32.mxu1 %vm681_vm2, %v11982_v41 }
 0x2e4   : > { %9596 = vmatmul.mubr.msk.f32.gmra.mrb[16].mxu1 %vm681_vm2, %v3017_v19 }
 0x2e5   : > { %9598 = vmatprep.mubr.msk.f32.mxu1 %vm681_vm2, %v3018_v0 }
 0x2e8   : > { %9599 = vmatmul.mubr.msk.f32.gmra.mrb[18].mxu1 %vm681_vm2, %v3019_v4 }
 0x2e9   : > { %9601 = vmatprep.mubr.msk.f32.mxu1 %vm681_vm2, %v3020_v53  ;;  %v12201_v53 = vld [vmem:[%s12405_s4] ss:$0 sm:$0xff] }
 0x2ec   : > { %9602 = vmatmul.mubr.msk.f32.gmra.mrb[20].mxu1 %vm681_vm2, %v3021_v26 }
 0x2ed   : > { %9604 = vmatprep.mubr.msk.f32.mxu1 %vm681_vm2, %v3022_v25 }
 0x2f0   : > { %9605 = vmatmul.mubr.msk.f32.gmra.mrb[22].mxu1 %vm681_vm2, %v3023_v62 }
 0x2f1   : > { %9607 = vmatprep.mubr.msk.f32.mxu1 %vm681_vm2, %v3024_v11 }
 0x2f4   : > { %9608 = vmatmul.mubr.msk.f32.gmra.mrb[24].mxu1 %vm681_vm2, %v3025_v52 }
 0x2f5   : > { %9610 = vmatprep.mubr.msk.f32.mxu1 %vm681_vm2, %v11457_v12  ;;  %v6508_v12 = vld [vmem:[#allocation2 + $0x43] sm:$0xff] }
 0x2f8   : > { %9611 = vmatmul.mubr.msk.f32.gmra.mrb[26].mxu1 %vm681_vm2, %v11467_v15  ;;  %v6967_v15 = vld [vmem:[%s12406_s5] sm:$0xff] }
 0x2f9   : > { %9613 = vmatprep.mubr.msk.f32.mxu1 %vm681_vm2, %v11469_v22  ;;  %v6968_v22 = vld [vmem:[%s12406_s5 + $0x8] sm:$0xff] }
 0x2fc   : > { %9614 = vmatmul.mubr.msk.f32.gmra.mrb[28].mxu1 %vm681_vm2, %v11485_v43  ;;  %v6969_v43 = vld [vmem:[%s12406_s5 + $0x10] sm:$0xff] }
 0x2fd   : > { %9616 = vmatprep.mubr.msk.f32.mxu1 %vm681_vm2, %v6146_v60 }
 0x300   : > { %9617 = vmatmul.mubr.msk.f32.gmra.mrb[30].mxu1 %vm681_vm2, %v6147_v5 }
 0x301   : > { %9627 = vmatprep.mubr.msk.f32.mxu1 %vm681_vm2, %v6506_v49 }
 0x304   : > { %9628 = vmatmul.mubr.msk.f32.vlgmr.msra.gmra.mrb[0].mxu1 %vm681_vm2, %v6507_v55 }
 0x305   : > { %9630 = vmatprep.mubr.msk.f32.mxu1 %vm681_vm2, %v6508_v12 }
 0x308   : > { %9631 = vmatmul.mubr.msk.f32.gmra.mrb[2].mxu1 %vm681_vm2, %v11536_v1  ;;  %v9867_v1 = vpack.c.bf16 %v6968_v22, %v6967_v15 }
 0x309   : > { %9633 = vmatprep.mubr.msk.f32.mxu1 %vm681_vm2, %v11543_v48  ;;  %v6970_v48 = vld [vmem:[%s12406_s5 + $0x18] sm:$0xff] }
 0x30a   : > { %9868 = vmatprep.subr.bf16.mxu0 %v9867_v1 }
 0x30b   : > { %9870 = vmatpush3.bf16.msra.mxu0 %v9867_v1 }
 0x30c   : > { %9634 = vmatmul.mubr.msk.f32.gmra.mrb[4].mxu1 %vm681_vm2, %v11549_v13  ;;  %v9871_v13 = vpack.c.bf16 %v6970_v48, %v6969_v43 }
 0x30d   : > { %9636 = vmatprep.mubr.msk.f32.mxu1 %vm681_vm2, %v11555_v23  ;;  %v12517_v23 = vld [vmem:[#allocation3_spill] sm:$0xff] }
 0x30e   : > { %9872 = vmatprep.subr.bf16.mxu0 %v9871_v13 }
 0x30f   : > { %9874 = vmatpush3.bf16.msra.mxu0 %v9871_v13 }
 0x310   : > { %9637 = vmatmul.mubr.msk.f32.gmra.mrb[6].mxu1 %vm681_vm2, %v11561_v33  ;;  %v12518_v33 = vld [vmem:[#allocation5_spill] sm:$0xff] }
 0x311   : > { %9639 = vmatprep.mubr.msk.f32.mxu1 %vm681_vm2, %v11567_v44  ;;  %v6536_v44 = vld [vmem:[#allocation2 + $0x123] sm:$0xff] }
 0x314   : > { %9640 = vmatmul.mubr.msk.f32.gmra.mrb[8].mxu1 %vm681_vm2, %v11573_v59  ;;  %v12519_v59 = vld [vmem:[#allocation4_spill] sm:$0xff] }
 0x315   : > { %9642 = vmatprep.mubr.msk.f32.mxu1 %vm681_vm2, %v11579_v7  ;;  %v6537_v7 = vld [vmem:[#allocation2 + $0x12b] sm:$0xff] }
 0x318   : > { %9643 = vmatmul.mubr.msk.f32.gmra.mrb[10].mxu1 %vm681_vm2, %v11585_v24 }
 0x319   : > { %9645 = vmatprep.mubr.msk.f32.mxu1 %vm681_vm2, %v11591_v39 }
 0x31c   : > { %9646 = vmatmul.mubr.msk.f32.gmra.mrb[12].mxu1 %vm681_vm2, %v11597_v51 }
 0x31d   : > { %9648 = vmatprep.mubr.msk.f32.mxu1 %vm681_vm2, %v11603_v34 }
 0x320   : > { %9649 = vmatmul.mubr.msk.f32.gmra.mrb[14].mxu1 %vm681_vm2, %v11609_v18 }
 0x321   : > { %9651 = vmatprep.mubr.msk.f32.mxu1 %vm681_vm2, %v11615_v14 }
 0x324   : > { %9652 = vmatmul.mubr.msk.f32.gmra.mrb[16].mxu1 %vm681_vm2, %v11621_v36 }
 0x325   : > { %9654 = vmatprep.mubr.msk.f32.mxu1 %vm681_vm2, %v11627_v16 }
 0x328   : > { %9655 = vmatmul.mubr.msk.f32.gmra.mrb[18].mxu1 %vm681_vm2, %v11633_v2 }
 0x329   : > { %9657 = vmatprep.mubr.msk.f32.mxu1 %vm681_vm2, %v11639_v54 }
 0x32c   : > { %9658 = vmatmul.mubr.msk.f32.gmra.mrb[20].mxu1 %vm681_vm2, %v11645_v30 }
 0x32d   : > { %9660 = vmatprep.mubr.msk.f32.mxu1 %vm681_vm2, %v11651_v28 }
 0x330   : > { %9661 = vmatmul.mubr.msk.f32.gmra.mrb[22].mxu1 %vm681_vm2, %v11657_v56 }
 0x331   : > { %9663 = vmatprep.mubr.msk.f32.mxu1 %vm681_vm2, %v11663_v32 }
 0x334   : > { %9664 = vmatmul.mubr.msk.f32.gmra.mrb[24].mxu1 %vm681_vm2, %v11671_v57 }
 0x335   : > { %9666 = vmatprep.mubr.msk.f32.mxu1 %vm681_vm2, %v11669_v46 }
 0x338   : > { %9667 = vmatmul.mubr.msk.f32.gmra.mrb[26].mxu1 %vm681_vm2, %v12517_v23 }
 0x339   : > { %9669 = vmatprep.mubr.msk.f32.mxu1 %vm681_vm2, %v12518_v33 }
 0x33c   : > { %9670 = vmatmul.mubr.msk.f32.gmra.mrb[28].mxu1 %vm681_vm2, %v12519_v59 }
 0x33d   : > { %9672 = vmatprep.mubr.msk.f32.mxu1 %vm681_vm2, %v6536_v44 }
 0x340   : > { %9673 = vmatmul.mubr.msk.f32.gmra.mrb[30].mxu1 %vm681_vm2, %v6537_v7 }
 0x352   : > { %v9125_v24 = vpop.f32.mrb[32].mxu0 }
 0x353   : > { %v3195_v39 = vpop.f32.mrb[33].mxu0 }
 0x356   : > { %v9128_v51 = vpop.f32.mrb[34].mxu0 }
 0x357   : > { %v3205_v34 = vpop.f32.mrb[35].mxu0 }
 0x35a   : > { %v9131_v18 = vpop.f32.mrb[36].mxu0 }
 0x35b   : > { %v3215_v14 = vpop.f32.mrb[37].mxu0 }
 0x35e   : > { %v9134_v36 = vpop.f32.mrb[38].mxu0 }
 0x35f   : > { %v3225_v16 = vpop.f32.mrb[39].mxu0 }
 0x362   : > { %v9137_v2 = vpop.f32.mrb[40].mxu0 }
 0x363   : > { %v12152_v54 = vpop.f32.mrb[41].mxu0 }
 0x366   : > { %v12154_v30 = vpop.f32.mrb[42].mxu0 }
 0x367   : > { %v12156_v28 = vpop.f32.mrb[43].mxu0 }
 0x36a   : > { %v12158_v56 = vpop.f32.mrb[44].mxu0 }
 0x36b   : > { %v12160_v32 = vpop.f32.mrb[45].mxu0 }
 0x36e   : > { %v12162_v46 = vpop.f32.mrb[46].mxu0 }
 0x36f   : > { %v12164_v57 = vpop.f32.mrb[47].mxu0 }
 0x372   : > { %v12166_v63 = vpop.f32.mrb[48].mxu0 }
 0x373   : > { %v12168_v29 = vpop.f32.mrb[49].mxu0 }
 0x376   : > { %v12170_v42 = vpop.f32.mrb[50].mxu0 }
 0x377   : > { %v12172_v50 = vpop.f32.mrb[51].mxu0 }
 0x37a   : > { %v12174_v40 = vpop.f32.mrb[52].mxu0 }
 0x37b   : > { %v12176_v47 = vpop.f32.mrb[53].mxu0 }
 0x37e   : > { %v12178_v35 = vpop.f32.mrb[54].mxu0 }
 0x37f   : > { %v12180_v6 = vpop.f32.mrb[55].mxu0 }
 0x382   : > { %v12182_v38 = vpop.f32.mrb[56].mxu0 }
 0x383   : > { %v12184_v58 = vpop.f32.mrb[57].mxu0 }
 0x386   : > { %v12186_v10 = vpop.f32.mrb[58].mxu0 }
 0x387   : > { %v12188_v3 = vpop.f32.mrb[59].mxu0 }
 0x38a   : > { %v12190_v21 = vpop.f32.mrb[60].mxu0 }
 0x38b   : > { %v12192_v41 = vpop.f32.mrb[61].mxu0 }
 0x38e   : > { %v12194_v19 = vpop.f32.mrb[62].mxu0 }
 0x38f   : > { %v12196_v0 = vpop.f32.mrb[63].mxu0 }
 0x3d7   : > { %v9629_v4 = vpop.f32.mrb[0].mxu1 }
 0x3d8   : > { %v9875_v26 = vadd.f32 %v9629_v4, %v9125_v24  ;;  %v6705_v25 = vpop.f32.mrb[1].mxu1 }
 0x3d9   : > { %v9876_v27 = vadd.f32 %v6705_v25, %v3195_v39 }
 0x3da   : > { %v6904_v62 = vadd.f32 %v9875_v26, %v12201_v53 }
 0x3db   : > { %v6903_v11 = vadd.f32 %v9876_v27, %v12201_v53  ;;  %v9632_v61 = vpop.f32.mrb[2].mxu1 }
 0x3dc   : > { %v9877_v37 = vadd.f32 %v9632_v61, %v9128_v51  ;;  %v6715_v52 = vpop.f32.mrb[3].mxu1  ;;  %v6936_v45 = vmax.f32 %v6904_v62, 0.0 }
 0x3dd   : > { %v6935_v8 = vmax.f32 %v6903_v11, 0.0  ;;  %v9878_v17 = vadd.f32 %v6715_v52, %v3205_v34 }
 0x3de   : > { %v6906_v31 = vadd.f32 %v9877_v37, %v12201_v53 }
 0x3df   : > { %v6905_v9 = vadd.f32 %v9878_v17, %v12201_v53  ;;  %v9635_v20 = vpop.f32.mrb[4].mxu1  ;;  %9683 = vmatprep.mubr.msk.f32.mxu0 %vm681_vm2, %v6935_v8 }
 0x3e0   : > { %v9879_v60 = vadd.f32 %v9635_v20, %v9131_v18  ;;  %v6725_v5 = vpop.f32.mrb[5].mxu1  ;;  %9684 = vmatmul.mubr.msk.f32.vlgmr.msra.gmra.mrb[64].mxu0 %vm681_vm2, %v6936_v45  ;;  %v6938_v12 = vmax.f32 %v6906_v31, 0.0 }
 0x3e1   : > { %v6937_v49 = vmax.f32 %v6905_v9, 0.0  ;;  %v9880_v55 = vadd.f32 %v6725_v5, %v3215_v14 }
 0x3e2   : > { %v6908_v15 = vadd.f32 %v9879_v60, %v12201_v53 }
 0x3e3   : > { %v6907_v22 = vadd.f32 %v9880_v55, %v12201_v53  ;;  %v9638_v43 = vpop.f32.mrb[6].mxu1  ;;  %9686 = vmatprep.mubr.msk.f32.mxu0 %vm681_vm2, %v6937_v49 }
 0x3e4   : > { %v9881_v1 = vadd.f32 %v9638_v43, %v9134_v36  ;;  %v6735_v48 = vpop.f32.mrb[7].mxu1  ;;  %9687 = vmatmul.mubr.msk.f32.gmra.mrb[66].mxu0 %vm681_vm2, %v6938_v12  ;;  %v6940_v33 = vmax.f32 %v6908_v15, 0.0 }
 0x3e5   : > { %v6939_v13 = vmax.f32 %v6907_v22, 0.0  ;;  %v9882_v23 = vadd.f32 %v6735_v48, %v3225_v16 }
 0x3e6   : > { %v6910_v44 = vadd.f32 %v9881_v1, %v12201_v53 }
 0x3e7   : > { %v6909_v59 = vadd.f32 %v9882_v23, %v12201_v53  ;;  %v9641_v7 = vpop.f32.mrb[8].mxu1  ;;  %9689 = vmatprep.mubr.msk.f32.mxu0 %vm681_vm2, %v6939_v13 }
 0x3e8   : > { %v9883_v24 = vadd.f32 %v9641_v7, %v9137_v2  ;;  %v6745_v39 = vpop.f32.mrb[9].mxu1  ;;  %9690 = vmatmul.mubr.msk.f32.gmra.mrb[68].mxu0 %vm681_vm2, %v6940_v33  ;;  %v6942_v18 = vmax.f32 %v6910_v44, 0.0 }
 0x3e9   : > { %v6941_v51 = vmax.f32 %v6909_v59, 0.0  ;;  %v9884_v34 = vadd.f32 %v6745_v39, %v12152_v54 }
 0x3ea   : > { %v6912_v14 = vadd.f32 %v9883_v24, %v12201_v53 }
 0x3eb   : > { %v6911_v36 = vadd.f32 %v9884_v34, %v12201_v53  ;;  %v9644_v16 = vpop.f32.mrb[10].mxu1  ;;  %9692 = vmatprep.mubr.msk.f32.mxu0 %vm681_vm2, %v6941_v51 }
 0x3ec   : > { %v9885_v4 = vadd.f32 %v9644_v16, %v12154_v30  ;;  %v6755_v26 = vpop.f32.mrb[11].mxu1  ;;  %9693 = vmatmul.mubr.msk.f32.gmra.mrb[70].mxu0 %vm681_vm2, %v6942_v18  ;;  %v6944_v27 = vmax.f32 %v6912_v14, 0.0 }
 0x3ed   : > { %v6943_v2 = vmax.f32 %v6911_v36, 0.0  ;;  %v9886_v25 = vadd.f32 %v6755_v26, %v12156_v28 }
 0x3ee   : > { %v6914_v62 = vadd.f32 %v9885_v4, %v12201_v53 }
 0x3ef   : > { %v6913_v54 = vadd.f32 %v9886_v25, %v12201_v53  ;;  %v9647_v11 = vpop.f32.mrb[12].mxu1  ;;  %9695 = vmatprep.mubr.msk.f32.mxu0 %vm681_vm2, %v6943_v2 }
 0x3f0   : > { %v9887_v61 = vadd.f32 %v9647_v11, %v12158_v56  ;;  %v6765_v37 = vpop.f32.mrb[13].mxu1  ;;  %9696 = vmatmul.mubr.msk.f32.gmra.mrb[72].mxu0 %vm681_vm2, %v6944_v27  ;;  %v6946_v8 = vmax.f32 %v6914_v62, 0.0 }
 0x3f1   : > { %v6945_v30 = vmax.f32 %v6913_v54, 0.0  ;;  %v9888_v52 = vadd.f32 %v6765_v37, %v12160_v32 }
 0x3f2   : > { %v6916_v17 = vadd.f32 %v9887_v61, %v12201_v53 }
 0x3f3   : > { %v6915_v28 = vadd.f32 %v9888_v52, %v12201_v53  ;;  %v9650_v45 = vpop.f32.mrb[14].mxu1  ;;  %9698 = vmatprep.mubr.msk.f32.mxu0 %vm681_vm2, %v6945_v30 }
 0x3f4   : > { %v9889_v31 = vadd.f32 %v9650_v45, %v12162_v46  ;;  %v6775_v9 = vpop.f32.mrb[15].mxu1  ;;  %9699 = vmatmul.mubr.msk.f32.gmra.mrb[74].mxu0 %vm681_vm2, %v6946_v8  ;;  %v6948_v60 = vmax.f32 %v6916_v17, 0.0 }
 0x3f5   : > { %v6947_v56 = vmax.f32 %v6915_v28, 0.0  ;;  %v9890_v20 = vadd.f32 %v6775_v9, %v12164_v57 }
 0x3f6   : > { %v6918_v5 = vadd.f32 %v9889_v31, %v12201_v53 }
 0x3f7   : > { %v6917_v32 = vadd.f32 %v9890_v20, %v12201_v53  ;;  %v9653_v49 = vpop.f32.mrb[16].mxu1  ;;  %9701 = vmatprep.mubr.msk.f32.mxu0 %vm681_vm2, %v6947_v56 }
 0x3f8   : > { %v9891_v55 = vadd.f32 %v9653_v49, %v12166_v63  ;;  %v6785_v12 = vpop.f32.mrb[17].mxu1  ;;  %9702 = vmatmul.mubr.msk.f32.gmra.mrb[76].mxu0 %vm681_vm2, %v6948_v60  ;;  %v6950_v22 = vmax.f32 %v6918_v5, 0.0 }
 0x3f9   : > { %v6949_v46 = vmax.f32 %v6917_v32, 0.0  ;;  %v9892_v15 = vadd.f32 %v6785_v12, %v12168_v29 }
 0x3fa   : > { %v6920_v43 = vadd.f32 %v9891_v55, %v12201_v53 }
 0x3fb   : > { %v6919_v57 = vadd.f32 %v9892_v15, %v12201_v53  ;;  %v9656_v1 = vpop.f32.mrb[18].mxu1  ;;  %9704 = vmatprep.mubr.msk.f32.mxu0 %vm681_vm2, %v6949_v46 }
 0x3fc   : > { %v9893_v48 = vadd.f32 %v9656_v1, %v12170_v42  ;;  %v6795_v13 = vpop.f32.mrb[19].mxu1  ;;  %9705 = vmatmul.mubr.msk.f32.gmra.mrb[78].mxu0 %vm681_vm2, %v6950_v22  ;;  %v6952_v33 = vmax.f32 %v6920_v43, 0.0 }
 0x3fd   : > { %v6951_v63 = vmax.f32 %v6919_v57, 0.0  ;;  %v9894_v23 = vadd.f32 %v6795_v13, %v12172_v50 }
 0x3fe   : > { %v6922_v44 = vadd.f32 %v9893_v48, %v12201_v53 }
 0x3ff   : > { %v6921_v29 = vadd.f32 %v9894_v23, %v12201_v53  ;;  %v9659_v59 = vpop.f32.mrb[20].mxu1  ;;  %9707 = vmatprep.mubr.msk.f32.mxu0 %vm681_vm2, %v6951_v63 }
 0x400   : > { %v9895_v7 = vadd.f32 %v9659_v59, %v12174_v40  ;;  %v6805_v24 = vpop.f32.mrb[21].mxu1  ;;  %9708 = vmatmul.mubr.msk.f32.gmra.mrb[80].mxu0 %vm681_vm2, %v6952_v33  ;;  %v6954_v51 = vmax.f32 %v6922_v44, 0.0 }
 0x401   : > { %v6953_v42 = vmax.f32 %v6921_v29, 0.0  ;;  %v9896_v39 = vadd.f32 %v6805_v24, %v12176_v47 }
 0x402   : > { %v6924_v34 = vadd.f32 %v9895_v7, %v12201_v53 }
 0x403   : > { %v6923_v50 = vadd.f32 %v9896_v39, %v12201_v53  ;;  %v9662_v18 = vpop.f32.mrb[22].mxu1  ;;  %9710 = vmatprep.mubr.msk.f32.mxu0 %vm681_vm2, %v6953_v42 }
 0x404   : > { %v9897_v14 = vadd.f32 %v9662_v18, %v12178_v35  ;;  %v6815_v36 = vpop.f32.mrb[23].mxu1  ;;  %9711 = vmatmul.mubr.msk.f32.gmra.mrb[82].mxu0 %vm681_vm2, %v6954_v51  ;;  %v6956_v4 = vmax.f32 %v6924_v34, 0.0 }
 0x405   : > { %v6955_v40 = vmax.f32 %v6923_v50, 0.0  ;;  %v9898_v16 = vadd.f32 %v6815_v36, %v12180_v6 }
 0x406   : > { %v6926_v26 = vadd.f32 %v9897_v14, %v12201_v53 }
 0x407   : > { %v6925_v47 = vadd.f32 %v9898_v16, %v12201_v53  ;;  %v9665_v2 = vpop.f32.mrb[24].mxu1  ;;  %9713 = vmatprep.mubr.msk.f32.mxu0 %vm681_vm2, %v6955_v40 }
 0x408   : > { %v9899_v25 = vadd.f32 %v9665_v2, %v12182_v38  ;;  %v6825_v27 = vpop.f32.mrb[25].mxu1  ;;  %9714 = vmatmul.mubr.msk.f32.gmra.mrb[84].mxu0 %vm681_vm2, %v6956_v4  ;;  %v6958_v54 = vmax.f32 %v6926_v26, 0.0 }
 0x409   : > { %v6957_v35 = vmax.f32 %v6925_v47, 0.0  ;;  %v9900_v62 = vadd.f32 %v6825_v27, %v12184_v58 }
 0x40a   : > { %v6928_v11 = vadd.f32 %v9899_v25, %v12201_v53 }
 0x40b   : > { %v6927_v6 = vadd.f32 %v9900_v62, %v12201_v53  ;;  %v9668_v61 = vpop.f32.mrb[26].mxu1  ;;  %9716 = vmatprep.mubr.msk.f32.mxu0 %vm681_vm2, %v6957_v35 }
 0x40c   : > { %v9901_v37 = vadd.f32 %v9668_v61, %v12186_v10  ;;  %v6835_v30 = vpop.f32.mrb[27].mxu1  ;;  %9717 = vmatmul.mubr.msk.f32.gmra.mrb[86].mxu0 %vm681_vm2, %v6958_v54  ;;  %v6960_v8 = vmax.f32 %v6928_v11, 0.0 }
 0x40d   : > { %v6959_v38 = vmax.f32 %v6927_v6, 0.0  ;;  %v9902_v52 = vadd.f32 %v6835_v30, %v12188_v3 }
 0x40e   : > { %v6930_v17 = vadd.f32 %v9901_v37, %v12201_v53 }
 0x40f   : > { %v6929_v58 = vadd.f32 %v9902_v52, %v12201_v53  ;;  %v9671_v28 = vpop.f32.mrb[28].mxu1  ;;  %9719 = vmatprep.mubr.msk.f32.mxu0 %vm681_vm2, %v6959_v38 }
 0x410   : > { %v9903_v45 = vadd.f32 %v9671_v28, %v12190_v21  ;;  %v6845_v31 = vpop.f32.mrb[29].mxu1  ;;  %9720 = vmatmul.mubr.msk.f32.gmra.mrb[88].mxu0 %vm681_vm2, %v6960_v8  ;;  %v6962_v56 = vmax.f32 %v6930_v17, 0.0 }
 0x411   : > { %v6961_v10 = vmax.f32 %v6929_v58, 0.0  ;;  %v9904_v9 = vadd.f32 %v6845_v31, %v12192_v41 }
 0x412   : > { %v6932_v20 = vadd.f32 %v9903_v45, %v12201_v53 }
 0x413   : > { %v6931_v3 = vadd.f32 %v9904_v9, %v12201_v53  ;;  %v9674_v60 = vpop.f32.mrb[30].mxu1  ;;  %9722 = vmatprep.mubr.msk.f32.mxu0 %vm681_vm2, %v6961_v10 }
 0x414   : > { %v9905_v5 = vadd.f32 %v9674_v60, %v12194_v19  ;;  %v6855_v32 = vpop.f32.mrb[31].mxu1  ;;  %9723 = vmatmul.mubr.msk.f32.gmra.mrb[90].mxu0 %vm681_vm2, %v6962_v56  ;;  %v6964_v55 = vmax.f32 %v6932_v20, 0.0  ;;  %v12293_v19 = vld [vmem:[%s12407_s6] ss:$0 sm:$0xff] }
 0x415   : > { %v6963_v21 = vmax.f32 %v6931_v3, 0.0  ;;  %v9906_v49 = vadd.f32 %v6855_v32, %v12196_v0 }
 0x416   : > { %v6934_v41 = vadd.f32 %v9905_v5, %v12201_v53 }
 0x417   : > { %v6933_v12 = vadd.f32 %v9906_v49, %v12201_v53  ;;  %9725 = vmatprep.mubr.msk.f32.mxu0 %vm681_vm2, %v6963_v21 }
 0x418   : > { %9726 = vmatmul.mubr.msk.f32.gmra.mrb[92].mxu0 %vm681_vm2, %v6964_v55  ;;  %v6966_v15 = vmax.f32 %v6934_v41, 0.0 }
 0x419   : > { %v6965_v46 = vmax.f32 %v6933_v12, 0.0 }
 0x41b   : > { %9728 = vmatprep.mubr.msk.f32.mxu0 %vm681_vm2, %v6965_v46 }
 0x41c   : > { %9729 = vmatmul.mubr.msk.f32.gmra.mrb[94].mxu0 %vm681_vm2, %v6966_v15 }
 0x4b3   : > { %v9685_v0 = vpop.f32.mrb[64].mxu0 }
 0x4b4   : > { %v7146_v22 = vadd.f32 %v9685_v0, %v12293_v19  ;;  %v7140_v43 = vpop.f32.mrb[65].mxu0 }
 0x4b5   : > { %v7141_v53 = vadd.f32 %v12293_v19, %v7140_v43 }
 0x4b6   : > { %v7300_v57 = vmax.f32 %v7146_v22, 0.0 }
 0x4b7   : > { %v7299_v1 = vmax.f32 %v7141_v53, 0.0  ;;  %v9688_v48 = vpop.f32.mrb[66].mxu0 }
 0x4b8   : > { %7333 = vst.msk [vmem:[%s12301_s21 + $0x8] sm:$0xff] %vm7331_vm3, %v7300_v57  ;;  %v7156_v13 = vadd.f32 %v9688_v48, %v12293_v19  ;;  %v7150_v63 = vpop.f32.mrb[67].mxu0 }
 0x4b9   : > { %7332 = vst.msk [vmem:[%s12301_s21] sm:$0xff] %vm7331_vm3, %v7299_v1  ;;  %v7151_v23 = vadd.f32 %v12293_v19, %v7150_v63 }
 0x4ba   : > { %v7302_v33 = vmax.f32 %v7156_v13, 0.0 }
 0x4bb   : > { %v7301_v44 = vmax.f32 %v7151_v23, 0.0  ;;  %v9691_v29 = vpop.f32.mrb[68].mxu0 }
 0x4bc   : > { %7335 = vst.msk [vmem:[%s12301_s21 + $0x18] sm:$0xff] %vm7331_vm3, %v7302_v33  ;;  %v7166_v59 = vadd.f32 %v9691_v29, %v12293_v19  ;;  %v7160_v7 = vpop.f32.mrb[69].mxu0 }
 0x4bd   : > { %7334 = vst.msk [vmem:[%s12301_s21 + $0x10] sm:$0xff] %vm7331_vm3, %v7301_v44  ;;  %v7161_v24 = vadd.f32 %v12293_v19, %v7160_v7 }
 0x4be   : > { %v7304_v42 = vmax.f32 %v7166_v59, 0.0 }
 0x4bf   : > { %v7303_v39 = vmax.f32 %v7161_v24, 0.0  ;;  %v9694_v51 = vpop.f32.mrb[70].mxu0 }
 0x4c0   : > { %7337 = vst.msk [vmem:[%s12301_s21 + $0x28] sm:$0xff] %vm7331_vm3, %v7304_v42  ;;  %v7176_v34 = vadd.f32 %v9694_v51, %v12293_v19  ;;  %v7170_v50 = vpop.f32.mrb[71].mxu0 }
 0x4c1   : > { %7336 = vst.msk [vmem:[%s12301_s21 + $0x20] sm:$0xff] %vm7331_vm3, %v7303_v39  ;;  %v7171_v18 = vadd.f32 %v12293_v19, %v7170_v50 }
 0x4c2   : > { %v7306_v14 = vmax.f32 %v7176_v34, 0.0 }
 0x4c3   : > { %v7305_v36 = vmax.f32 %v7171_v18, 0.0  ;;  %v9697_v40 = vpop.f32.mrb[72].mxu0 }
 0x4c4   : > { %7339 = vst.msk [vmem:[%s12301_s21 + $0x38] sm:$0xff] %vm7331_vm3, %v7306_v14  ;;  %v7186_v16 = vadd.f32 %v9697_v40, %v12293_v19  ;;  %v7180_v4 = vpop.f32.mrb[73].mxu0 }
 0x4c5   : > { %7338 = vst.msk [vmem:[%s12301_s21 + $0x30] sm:$0xff] %vm7331_vm3, %v7305_v36  ;;  %v7181_v26 = vadd.f32 %v12293_v19, %v7180_v4 }
 0x4c6   : > { %v7308_v47 = vmax.f32 %v7186_v16, 0.0 }
 0x4c7   : > { %v7307_v2 = vmax.f32 %v7181_v26, 0.0  ;;  %v9700_v25 = vpop.f32.mrb[74].mxu0 }
 0x4c8   : > { %7341 = vst.msk [vmem:[%s12301_s21 + $0x48] sm:$0xff] %vm7331_vm3, %v7308_v47  ;;  %v7196_v27 = vadd.f32 %v9700_v25, %v12293_v19  ;;  %v7190_v35 = vpop.f32.mrb[75].mxu0 }
 0x4c9   : > { %7340 = vst.msk [vmem:[%s12301_s21 + $0x40] sm:$0xff] %vm7331_vm3, %v7307_v2  ;;  %v7191_v62 = vadd.f32 %v12293_v19, %v7190_v35 }
 0x4ca   : > { %v7310_v54 = vmax.f32 %v7196_v27, 0.0 }
 0x4cb   : > { %v7309_v11 = vmax.f32 %v7191_v62, 0.0  ;;  %v9703_v6 = vpop.f32.mrb[76].mxu0 }
 0x4cc   : > { %7343 = vst.msk [vmem:[%s12301_s21 + $0x58] sm:$0xff] %vm7331_vm3, %v7310_v54  ;;  %v7206_v61 = vadd.f32 %v9703_v6, %v12293_v19  ;;  %v7200_v37 = vpop.f32.mrb[77].mxu0 }
 0x4cd   : > { %7342 = vst.msk [vmem:[%s12301_s21 + $0x50] sm:$0xff] %vm7331_vm3, %v7309_v11  ;;  %v7201_v30 = vadd.f32 %v12293_v19, %v7200_v37 }
 0x4ce   : > { %v7312_v38 = vmax.f32 %v7206_v61, 0.0 }
 0x4cf   : > { %v7311_v52 = vmax.f32 %v7201_v30, 0.0  ;;  %v9706_v8 = vpop.f32.mrb[78].mxu0 }
 0x4d0   : > { %7345 = vst.msk [vmem:[%s12301_s21 + $0x68] sm:$0xff] %vm7331_vm3, %v7312_v38  ;;  %v7216_v17 = vadd.f32 %v9706_v8, %v12293_v19  ;;  %v7210_v58 = vpop.f32.mrb[79].mxu0 }
 0x4d1   : > { %7344 = vst.msk [vmem:[%s12301_s21 + $0x60] sm:$0xff] %vm7331_vm3, %v7311_v52  ;;  %v7211_v28 = vadd.f32 %v12293_v19, %v7210_v58 }
 0x4d2   : > { %v7314_v45 = vmax.f32 %v7216_v17, 0.0 }
 0x4d3   : > { %v7313_v31 = vmax.f32 %v7211_v28, 0.0  ;;  %v9709_v10 = vpop.f32.mrb[80].mxu0 }
 0x4d4   : > { %7347 = vst.msk [vmem:[%s12301_s21 + $0x78] sm:$0xff] %vm7331_vm3, %v7314_v45  ;;  %v7226_v9 = vadd.f32 %v9709_v10, %v12293_v19  ;;  %v7220_v56 = vpop.f32.mrb[81].mxu0 }
 0x4d5   : > { %7346 = vst.msk [vmem:[%s12301_s21 + $0x70] sm:$0xff] %vm7331_vm3, %v7313_v31  ;;  %v7221_v20 = vadd.f32 %v12293_v19, %v7220_v56 }
 0x4d6   : > { %v7316_v3 = vmax.f32 %v7226_v9, 0.0 }
 0x4d7   : > { %v7315_v60 = vmax.f32 %v7221_v20, 0.0  ;;  %v9712_v5 = vpop.f32.mrb[82].mxu0 }
 0x4d8   : > { %7349 = vst.msk [vmem:[%s12301_s21 + $0x88] sm:$0xff] %vm7331_vm3, %v7316_v3  ;;  %v7236_v32 = vadd.f32 %v9712_v5, %v12293_v19  ;;  %v7230_v21 = vpop.f32.mrb[83].mxu0 }
 0x4d9   : > { %7348 = vst.msk [vmem:[%s12301_s21 + $0x80] sm:$0xff] %vm7331_vm3, %v7315_v60  ;;  %v7231_v49 = vadd.f32 %v12293_v19, %v7230_v21 }
 0x4da   : > { %v7318_v55 = vmax.f32 %v7236_v32, 0.0 }
 0x4db   : > { %v7317_v41 = vmax.f32 %v7231_v49, 0.0  ;;  %v9715_v12 = vpop.f32.mrb[84].mxu0 }
 0x4dc   : > { %7351 = vst.msk [vmem:[%s12301_s21 + $0x98] sm:$0xff] %vm7331_vm3, %v7318_v55  ;;  %v7246_v46 = vadd.f32 %v9715_v12, %v12293_v19  ;;  %v7240_v15 = vpop.f32.mrb[85].mxu0 }
 0x4dd   : > { %7350 = vst.msk [vmem:[%s12301_s21 + $0x90] sm:$0xff] %vm7331_vm3, %v7317_v41  ;;  %v7241_v0 = vadd.f32 %v12293_v19, %v7240_v15 }
 0x4de   : > { %v7320_v22 = vmax.f32 %v7246_v46, 0.0 }
 0x4df   : > { %v7319_v43 = vmax.f32 %v7241_v0, 0.0  ;;  %v9718_v53 = vpop.f32.mrb[86].mxu0 }
 0x4e0   : > { %7353 = vst.msk [vmem:[%s12301_s21 + $0xa8] sm:$0xff] %vm7331_vm3, %v7320_v22  ;;  %v7256_v57 = vadd.f32 %v9718_v53, %v12293_v19  ;;  %v7250_v1 = vpop.f32.mrb[87].mxu0 }
 0x4e1   : > { %7352 = vst.msk [vmem:[%s12301_s21 + $0xa0] sm:$0xff] %vm7331_vm3, %v7319_v43  ;;  %v7251_v48 = vadd.f32 %v12293_v19, %v7250_v1 }
 0x4e2   : > { %v7322_v13 = vmax.f32 %v7256_v57, 0.0 }
 0x4e3   : > { %v7321_v63 = vmax.f32 %v7251_v48, 0.0  ;;  %v9721_v23 = vpop.f32.mrb[88].mxu0 }
 0x4e4   : > { %7355 = vst.msk [vmem:[%s12301_s21 + $0xb8] sm:$0xff] %vm7331_vm3, %v7322_v13  ;;  %v7266_v33 = vadd.f32 %v9721_v23, %v12293_v19  ;;  %v7260_v44 = vpop.f32.mrb[89].mxu0 }
 0x4e5   : > { %7354 = vst.msk [vmem:[%s12301_s21 + $0xb0] sm:$0xff] %vm7331_vm3, %v7321_v63  ;;  %v7261_v29 = vadd.f32 %v12293_v19, %v7260_v44 }
 0x4e6   : > { %v7324_v59 = vmax.f32 %v7266_v33, 0.0 }
 0x4e7   : > { %v7323_v7 = vmax.f32 %v7261_v29, 0.0  ;;  %v9724_v24 = vpop.f32.mrb[90].mxu0 }
 0x4e8   : > { %7357 = vst.msk [vmem:[%s12301_s21 + $0xc8] sm:$0xff] %vm7331_vm3, %v7324_v59  ;;  %v7276_v42 = vadd.f32 %v9724_v24, %v12293_v19  ;;  %v7270_v39 = vpop.f32.mrb[91].mxu0 }
 0x4e9   : > { %7356 = vst.msk [vmem:[%s12301_s21 + $0xc0] sm:$0xff] %vm7331_vm3, %v7323_v7  ;;  %v7271_v51 = vadd.f32 %v12293_v19, %v7270_v39 }
 0x4ea   : > { %v7326_v34 = vmax.f32 %v7276_v42, 0.0 }
 0x4eb   : > { %v7325_v50 = vmax.f32 %v7271_v51, 0.0  ;;  %v9727_v18 = vpop.f32.mrb[92].mxu0 }
 0x4ec   : > { %7359 = vst.msk [vmem:[%s12301_s21 + $0xd8] sm:$0xff] %vm7331_vm3, %v7326_v34  ;;  %v7286_v14 = vadd.f32 %v9727_v18, %v12293_v19  ;;  %v7280_v36 = vpop.f32.mrb[93].mxu0 }
 0x4ed   : > { %7358 = vst.msk [vmem:[%s12301_s21 + $0xd0] sm:$0xff] %vm7331_vm3, %v7325_v50  ;;  %v7281_v40 = vadd.f32 %v12293_v19, %v7280_v36 }
 0x4ee   : > { %v7328_v16 = vmax.f32 %v7286_v14, 0.0 }
 0x4ef   : > { %v7327_v4 = vmax.f32 %v7281_v40, 0.0  ;;  %v9730_v26 = vpop.f32.mrb[94].mxu0 }
 0x4f0   : > { %7361 = vst.msk [vmem:[%s12301_s21 + $0xe8] sm:$0xff] %vm7331_vm3, %v7328_v16  ;;  %v7296_v47 = vadd.f32 %v9730_v26, %v12293_v19  ;;  %v7290_v2 = vpop.f32.mrb[95].mxu0 }
 0x4f1   : > { %7360 = vst.msk [vmem:[%s12301_s21 + $0xe0] sm:$0xff] %vm7331_vm3, %v7327_v4  ;;  %v7291_v25 = vadd.f32 %v12293_v19, %v7290_v2 }
 0x4f2   : > { %v7330_v27 = vmax.f32 %v7296_v47, 0.0 }
 0x4f3   : > { %v7329_v35 = vmax.f32 %v7291_v25, 0.0 }
 0x4f4   : > { %7363 = vst.msk [vmem:[%s12301_s21 + $0xf8] sm:$0xff] %vm7331_vm3, %v7330_v27 }
 0x4f5   : > { %7362 = vst.msk [vmem:[%s12301_s21 + $0xf0] sm:$0xff] %vm7331_vm3, %v7329_v35 }
 0x4f6 PF: > { %s17_s24 = sadd.s32 1, %s10370_s24  }
 0x4f7   : > { %p14_p4 = scmp.ge.s32.totalorder %s17_s24, 4  }
 0x4f9   :  { %16 = sbr.rel (!%p14_p4) target bundleno = 1 (0x1), region = 93 }

</bundles_post_ra>
